<compile_context>
chip_gen: v6e
topology: v6e:2x2x1
jax: 0.10.0
libtpu: 0.0.40
codegen_flags: <defaults>
</compile_context>

<pallas_src>
import functools

import jax
import jax.numpy as jnp
from jax.experimental import pallas as pl
from jax.experimental.pallas import tpu as pltpu


# ----------------------------------------------------------------------------
# Single fused kernel: conv(3x3, pad=1, as im2col matmul) + ReLU + global avg
# pool + class classifier (Linear-ReLU-Linear) + domain classifier
# (Linear-BN-ReLU-Linear-BN-ReLU-Linear).  One grid point; everything in VMEM.
# ----------------------------------------------------------------------------
def dann_fused_kernel(patch_ref, conv_w_ref, conv_b_ref, pool_ref,
                      cls_w1_ref, cls_w2_ref, bias32_ref,
                      dom_w1_ref, dom_w2_ref, dom_w3_ref, dom_bn_ref,
                      out_ref):
    # ---- backbone: conv as one im2col matmul + bias + ReLU ----
    conv = jnp.dot(patch_ref[...], conv_w_ref[...],
                   preferred_element_type=jnp.float32)            # (B*H*W, Cout)
    conv = jnp.maximum(conv + conv_b_ref[...], 0.0)

    # ---- AdaptiveAvgPool2d((1,1)) + flatten as a block-diagonal matmul ----
    # pool_ref is (BP, B*H*W) with 1/(H*W) on each image's positions; rows >= B
    # are zero, so the batch is padded up to 8 sublanes for everything below.
    feats = jnp.dot(pool_ref[...], conv,
                    preferred_element_type=jnp.float32)            # (BP, Cout)

    # ---- class classifier: Linear -> ReLU -> Linear (N padded to 32 lanes) ----
    h1 = jnp.dot(feats, cls_w1_ref[...],
                 preferred_element_type=jnp.float32) + bias32_ref[0:1, :]
    h2 = jnp.maximum(h1, 0.0)
    logits = jnp.dot(h2, cls_w2_ref[...],
                     preferred_element_type=jnp.float32) + bias32_ref[1:2, :]

    # ---- domain classifier (GradientReversal == identity in forward) ----
    # bf16 weights / activations, f32 accumulation; Linear bias folded into the
    # BN shift (rows of dom_bn_ref are [scale1, shift1, scale2, shift2, 0...]).
    d = jnp.dot(feats.astype(jnp.bfloat16), dom_w1_ref[...],
                preferred_element_type=jnp.float32)
    d = d * dom_bn_ref[0:1, :] + dom_bn_ref[1:2, :]                # BN1 (eval)
    d = jnp.maximum(d, 0.0)
    d = jnp.dot(d.astype(jnp.bfloat16), dom_w2_ref[...],
                preferred_element_type=jnp.float32)
    d = d * dom_bn_ref[2:3, :] + dom_bn_ref[3:4, :]                # BN2 (eval)
    d = jnp.maximum(d, 0.0)
    dom = jnp.dot(d.astype(jnp.bfloat16), dom_w3_ref[...],
                  preferred_element_type=jnp.float32) + bias32_ref[2:3, :]

    # single lane-dense (BP, 128) store: [h1 | h2 | logits(pad 32) | dom(pad 32)]
    out_ref[...] = jnp.concatenate([h1, h2, logits, dom], axis=-1)


# ----------------------------------------------------------------------------
# Host-side glue: layout conversion, im2col, parameter folding / padding.
# ----------------------------------------------------------------------------
def im2col_3x3_pad1(x_nhwc):
    B, H, W, C = x_nhwc.shape
    xp = jnp.pad(x_nhwc, ((0, 0), (1, 1), (1, 1), (0, 0)))
    cols = [xp[:, ky:ky + H, kx:kx + W, :] for ky in range(3) for kx in range(3)]
    # last-dim order (ky, kx, cin) matches conv weight reshape below
    return jnp.concatenate(cols, axis=-1).reshape(B * H * W, 9 * C)


def init_params(key, cin=4, cout=8, hidden=32, num_classes=10, dom_hidden=1024):
    """PyTorch-structured parameters for the synthetic backbone + DANN heads."""
    keys = jax.random.split(key, 6)

    def dense(k, fan_in, shape):
        return jax.random.normal(k, shape, jnp.float32) / jnp.sqrt(fan_in)

    p = {}
    p['conv_w'] = dense(keys[0], 9 * cin, (3, 3, cin, cout))       # (KH,KW,Cin,Cout)
    p['conv_b'] = jnp.full((cout,), 0.01, jnp.float32)

    p['cls_w1'] = dense(keys[1], cout, (cout, hidden))
    p['cls_b1'] = jnp.zeros((hidden,), jnp.float32)
    p['cls_w2'] = dense(keys[2], hidden, (hidden, num_classes))
    p['cls_b2'] = jnp.zeros((num_classes,), jnp.float32)

    p['dom_w1'] = dense(keys[3], cout, (cout, dom_hidden))
    p['dom_b1'] = jnp.zeros((dom_hidden,), jnp.float32)
    p['dom_w2'] = dense(keys[4], dom_hidden, (dom_hidden, dom_hidden))
    p['dom_b2'] = jnp.zeros((dom_hidden,), jnp.float32)
    p['dom_w3'] = dense(keys[5], dom_hidden, (dom_hidden, 1))
    p['dom_b3'] = jnp.zeros((1,), jnp.float32)

    # BatchNorm1d eval-mode params (PyTorch defaults)
    for i in (1, 2):
        p[f'bn{i}_gamma'] = jnp.ones((dom_hidden,), jnp.float32)
        p[f'bn{i}_beta'] = jnp.zeros((dom_hidden,), jnp.float32)
        p[f'bn{i}_mean'] = jnp.zeros((dom_hidden,), jnp.float32)
        p[f'bn{i}_var'] = jnp.ones((dom_hidden,), jnp.float32)
    return p


def prepare_kernel_params(p, batch, spatial, eps=1e-5):
    """Fold / pad / cast params into the layout the fused kernel consumes."""
    cin9, cout = 9 * p['conv_w'].shape[2], p['conv_w'].shape[3]
    hidden = p['cls_w1'].shape[1]
    num_classes = p['cls_w2'].shape[1]
    dom_hidden = p['dom_w1'].shape[1]
    assert hidden == 32 and num_classes <= 32 and dom_hidden % 128 == 0

    P = spatial
    BP = max(8, ((batch + 7) // 8) * 8)                 # batch padded to sublanes

    kp = {}
    kp['conv_w'] = p['conv_w'].reshape(cin9, cout)
    kp['conv_b'] = p['conv_b'].reshape(1, cout)

    # mean pool over spatial positions as a (BP, B*P) block-diagonal matmul
    rows = jnp.arange(BP)[:, None]
    cols = jnp.arange(batch * P)[None, :]
    kp['pool_mat'] = jnp.where(cols // P == rows, 1.0 / P, 0.0).astype(jnp.float32)

    kp['cls_w1'] = p['cls_w1']
    kp['cls_w2'] = jnp.zeros((hidden, 32), jnp.float32).at[:, :num_classes].set(p['cls_w2'])

    bias32 = jnp.zeros((8, 32), jnp.float32)
    bias32 = bias32.at[0, :].set(p['cls_b1'])
    bias32 = bias32.at[1, :num_classes].set(p['cls_b2'])
    bias32 = bias32.at[2, 0].set(p['dom_b3'][0])
    kp['bias32'] = bias32

    # BatchNorm1d (eval) folded to scale/shift; preceding Linear bias folded in:
    #   s*(x@W + b - mean) + beta == s*(x@W) + (s*(b - mean) + beta)
    s1 = p['bn1_gamma'] / jnp.sqrt(p['bn1_var'] + eps)
    t1 = p['bn1_beta'] + s1 * (p['dom_b1'] - p['bn1_mean'])
    s2 = p['bn2_gamma'] / jnp.sqrt(p['bn2_var'] + eps)
    t2 = p['bn2_beta'] + s2 * (p['dom_b2'] - p['bn2_mean'])
    dom_bn = jnp.zeros((8, dom_hidden), jnp.float32)
    dom_bn = dom_bn.at[0].set(s1).at[1].set(t1).at[2].set(s2).at[3].set(t2)
    kp['dom_bn'] = dom_bn

    # bf16 weights: the 1024x1024 weight stream dominates HBM traffic
    kp['dom_w1'] = p['dom_w1'].astype(jnp.bfloat16)
    kp['dom_w2'] = p['dom_w2'].astype(jnp.bfloat16)
    kp['dom_w3'] = (jnp.zeros((dom_hidden, 32), jnp.float32)
                    .at[:, :1].set(p['dom_w3'])).astype(jnp.bfloat16)
    return kp


def dann_forward(x_nchw, kp, num_classes=10, rev_grad_alpha=1.0):
    """Forward pass; returns {'class', 'domain', 'classifier_layers'}."""
    del rev_grad_alpha  # identity in forward; only flips gradients in backward
    B, C, H, W = x_nchw.shape
    BP = kp['pool_mat'].shape[0]

    x_nhwc = jnp.transpose(x_nchw, (0, 2, 3, 1)).astype(jnp.float32)
    patches = im2col_3x3_pad1(x_nhwc)                   # (B*H*W, 9*C) -- small here
    # TODO(synk): for large spatial sizes build the 3x3 patches in-kernel from an
    # NHWC VMEM block instead of materializing the 9x im2col buffer in HBM.

    args = (patches, kp['conv_w'], kp['conv_b'], kp['pool_mat'],
            kp['cls_w1'], kp['cls_w2'], kp['bias32'],
            kp['dom_w1'], kp['dom_w2'], kp['dom_w3'], kp['dom_bn'])

    out = pl.pallas_call(
        dann_fused_kernel,
        out_shape=jax.ShapeDtypeStruct((BP, 128), jnp.float32),
        grid=(1,),
        in_specs=[pl.BlockSpec(a.shape, lambda i: (0, 0)) for a in args],
        out_specs=pl.BlockSpec((BP, 128), lambda i: (0, 0)),
        compiler_params=pltpu.CompilerParams(dimension_semantics=("arbitrary",)),
    )(*args)

    o1 = out[:B, 0:32]                    # after class Linear 1
    o2 = out[:B, 32:64]                   # after ReLU
    o3 = out[:B, 64:64 + num_classes]     # after class Linear 2 (= 'class')
    dom = out[:B, 96:97]                  # domain logit
    return {'class': o3, 'domain': dom, 'classifier_layers': [o1, o2, o3]}


# ----------------------------------------------------------------------------
# Pure-JAX reference (mirrors the kernel's bf16 precision choices) for checking.
# ----------------------------------------------------------------------------
def dann_reference(x_nchw, p, eps=1e-5):
    x = jnp.transpose(x_nchw, (0, 2, 3, 1)).astype(jnp.float32)
    B, H, W, C = x.shape
    patches = im2col_3x3_pad1(x)
    conv = jnp.maximum(patches @ p['conv_w'].reshape(9 * C, -1)
                       + p['conv_b'][None, :], 0.0)
    feats = conv.reshape(B, H * W, -1).mean(axis=1)

    h1 = feats @ p['cls_w1'] + p['cls_b1'][None, :]
    h2 = jnp.maximum(h1, 0.0)
    o3 = h2 @ p['cls_w2'] + p['cls_b2'][None, :]

    def bn(h, g, b, m, v):
        return (h - m[None, :]) / jnp.sqrt(v[None, :] + eps) * g[None, :] + b[None, :]

    def bf16_dot(a, w):
        return jnp.dot(a.astype(jnp.bfloat16), w.astype(jnp.bfloat16),
                       preferred_element_type=jnp.float32)

    d = bf16_dot(feats, p['dom_w1']) + p['dom_b1'][None, :]
    d = jnp.maximum(bn(d, p['bn1_gamma'], p['bn1_beta'], p['bn1_mean'], p['bn1_var']), 0.0)
    d = bf16_dot(d, p['dom_w2']) + p['dom_b2'][None, :]
    d = jnp.maximum(bn(d, p['bn2_gamma'], p['bn2_beta'], p['bn2_mean'], p['bn2_var']), 0.0)
    dom = bf16_dot(d, p['dom_w3']) + p['dom_b3'][None, :]
    return {'class': o3, 'domain': dom, 'classifier_layers': [h1, h2, o3]}


if __name__ == "__main__":
    import numpy as np

    key = jax.random.PRNGKey(0)
    k_x, k_p = jax.random.split(key)
    x = jax.random.normal(k_x, (2, 4, 16, 16), jnp.float32)      # NCHW like PyTorch
    params = init_params(k_p)
    kparams = prepare_kernel_params(params, batch=x.shape[0],
                                    spatial=x.shape[2] * x.shape[3])

    fwd = jax.jit(functools.partial(dann_forward,
                                    num_classes=params['cls_w2'].shape[1]))
    out = jax.block_until_ready(fwd(x, kparams))

    assert out['class'].shape == (2, 10)
    assert out['domain'].shape == (2, 1)
    assert len(out['classifier_layers']) == 3
    assert all(bool(jnp.all(jnp.isfinite(v))) for v in
               [out['class'], out['domain']] + out['classifier_layers'])

    ref = dann_reference(x, params)
    np.testing.assert_allclose(out['class'], ref['class'], rtol=2e-2, atol=2e-2)
    np.testing.assert_allclose(out['domain'], ref['domain'], rtol=5e-2, atol=5e-2)
    for a, b in zip(out['classifier_layers'], ref['classifier_layers']):
        np.testing.assert_allclose(a, b, rtol=2e-2, atol=2e-2)

    print("KERNEL_OK")
</pallas_src>

<mosaic_0001>
module attributes {stable_mosaic.version = 11 : i64} {
  func.func @dann_fused_kernel(%arg0: i32, %arg1: memref<512x36xf32, #tpu.memory_space<vmem>>, %arg2: memref<36x8xf32, #tpu.memory_space<vmem>>, %arg3: memref<1x8xf32, #tpu.memory_space<vmem>>, %arg4: memref<8x512xf32, #tpu.memory_space<vmem>>, %arg5: memref<8x32xf32, #tpu.memory_space<vmem>>, %arg6: memref<32x32xf32, #tpu.memory_space<vmem>>, %arg7: memref<8x32xf32, #tpu.memory_space<vmem>>, %arg8: memref<8x1024xbf16, #tpu.memory_space<vmem>>, %arg9: memref<1024x1024xbf16, #tpu.memory_space<vmem>>, %arg10: memref<1024x32xbf16, #tpu.memory_space<vmem>>, %arg11: memref<8x1024xf32, #tpu.memory_space<vmem>>, %arg12: memref<8x128xf32, #tpu.memory_space<vmem>>) attributes {dimension_semantics = [#tpu.dimension_semantics<arbitrary>], iteration_bounds = array<i64: 1>, scalar_prefetch = 0 : i64, scratch_operands = 0 : i64, tpu.core_type = #tpu.core_type<tc>, window_params = [{pipeline_mode = #tpu.pipeline_mode<synchronous>, transform_indices = @transform_0, window_bounds = array<i64: 512, 36>}, {pipeline_mode = #tpu.pipeline_mode<synchronous>, transform_indices = @transform_1, window_bounds = array<i64: 36, 8>}, {pipeline_mode = #tpu.pipeline_mode<synchronous>, transform_indices = @transform_2, window_bounds = array<i64: 1, 8>}, {pipeline_mode = #tpu.pipeline_mode<synchronous>, transform_indices = @transform_3, window_bounds = array<i64: 8, 512>}, {pipeline_mode = #tpu.pipeline_mode<synchronous>, transform_indices = @transform_4, window_bounds = array<i64: 8, 32>}, {pipeline_mode = #tpu.pipeline_mode<synchronous>, transform_indices = @transform_5, window_bounds = array<i64: 32, 32>}, {pipeline_mode = #tpu.pipeline_mode<synchronous>, transform_indices = @transform_6, window_bounds = array<i64: 8, 32>}, {pipeline_mode = #tpu.pipeline_mode<synchronous>, transform_indices = @transform_7, window_bounds = array<i64: 8, 1024>}, {pipeline_mode = #tpu.pipeline_mode<synchronous>, transform_indices = @transform_8, window_bounds = array<i64: 1024, 1024>}, {pipeline_mode = #tpu.pipeline_mode<synchronous>, transform_indices = @transform_9, window_bounds = array<i64: 1024, 32>}, {pipeline_mode = #tpu.pipeline_mode<synchronous>, transform_indices = @transform_10, window_bounds = array<i64: 8, 1024>}, {pipeline_mode = #tpu.pipeline_mode<synchronous>, transform_indices = @transform_11, window_bounds = array<i64: 8, 128>}]} {
    %c0 = arith.constant 0 : index
    %c0_0 = arith.constant 0 : index
    %0 = vector.load %arg1[%c0, %c0_0] : memref<512x36xf32, #tpu.memory_space<vmem>>, vector<512x36xf32>
    %c0_1 = arith.constant 0 : index
    %c0_2 = arith.constant 0 : index
    %1 = vector.load %arg2[%c0_1, %c0_2] : memref<36x8xf32, #tpu.memory_space<vmem>>, vector<36x8xf32>
    %cst = arith.constant dense<0.000000e+00> : vector<512x8xf32>
    %2 = tpu.matmul %0, %1, %cst {dimension_numbers = #tpu.dot_dimension_numbers<[1], [0], [0], [1], [0, 0, 1, 1], [], []>} : vector<512x36xf32>, vector<36x8xf32>, vector<512x8xf32> -> vector<512x8xf32>
    %c0_3 = arith.constant 0 : index
    %c0_4 = arith.constant 0 : index
    %3 = vector.load %arg3[%c0_3, %c0_4] : memref<1x8xf32, #tpu.memory_space<vmem>>, vector<1x8xf32>
    %4 = vector.broadcast %3 : vector<1x8xf32> to vector<512x8xf32>
    %5 = arith.addf %2, %4 : vector<512x8xf32>
    %cst_5 = arith.constant 0.000000e+00 : f32
    %6 = vector.broadcast %cst_5 : f32 to vector<512x8xf32>
    %7 = arith.maximumf %5, %6 : vector<512x8xf32>
    %c0_6 = arith.constant 0 : index
    %c0_7 = arith.constant 0 : index
    %8 = vector.load %arg4[%c0_6, %c0_7] : memref<8x512xf32, #tpu.memory_space<vmem>>, vector<8x512xf32>
    %cst_8 = arith.constant dense<0.000000e+00> : vector<8x8xf32>
    %9 = tpu.matmul %8, %7, %cst_8 {dimension_numbers = #tpu.dot_dimension_numbers<[1], [0], [0], [1], [0, 0, 1, 1], [], []>} : vector<8x512xf32>, vector<512x8xf32>, vector<8x8xf32> -> vector<8x8xf32>
    %c0_9 = arith.constant 0 : index
    %c0_10 = arith.constant 0 : index
    %10 = vector.load %arg5[%c0_9, %c0_10] : memref<8x32xf32, #tpu.memory_space<vmem>>, vector<8x32xf32>
    %cst_11 = arith.constant dense<0.000000e+00> : vector<8x32xf32>
    %11 = tpu.matmul %9, %10, %cst_11 {dimension_numbers = #tpu.dot_dimension_numbers<[1], [0], [0], [1], [0, 0, 1, 1], [], []>} : vector<8x8xf32>, vector<8x32xf32>, vector<8x32xf32> -> vector<8x32xf32>
    %c0_12 = arith.constant 0 : index
    %c0_13 = arith.constant 0 : index
    %12 = vector.load %arg7[%c0_12, %c0_13] : memref<8x32xf32, #tpu.memory_space<vmem>>, vector<1x32xf32>
    %13 = vector.broadcast %12 : vector<1x32xf32> to vector<8x32xf32>
    %14 = arith.addf %11, %13 : vector<8x32xf32>
    %cst_14 = arith.constant 0.000000e+00 : f32
    %15 = vector.broadcast %cst_14 : f32 to vector<8x32xf32>
    %16 = arith.maximumf %14, %15 : vector<8x32xf32>
    %c0_15 = arith.constant 0 : index
    %c0_16 = arith.constant 0 : index
    %17 = vector.load %arg6[%c0_15, %c0_16] : memref<32x32xf32, #tpu.memory_space<vmem>>, vector<32x32xf32>
    %cst_17 = arith.constant dense<0.000000e+00> : vector<8x32xf32>
    %18 = tpu.matmul %16, %17, %cst_17 {dimension_numbers = #tpu.dot_dimension_numbers<[1], [0], [0], [1], [0, 0, 1, 1], [], []>} : vector<8x32xf32>, vector<32x32xf32>, vector<8x32xf32> -> vector<8x32xf32>
    %c1 = arith.constant 1 : index
    %c0_18 = arith.constant 0 : index
    %19 = vector.load %arg7[%c1, %c0_18] : memref<8x32xf32, #tpu.memory_space<vmem>>, vector<1x32xf32>
    %20 = vector.broadcast %19 : vector<1x32xf32> to vector<8x32xf32>
    %21 = arith.addf %18, %20 : vector<8x32xf32>
    %22 = arith.truncf %9 : vector<8x8xf32> to vector<8x8xbf16>
    %c0_19 = arith.constant 0 : index
    %c0_20 = arith.constant 0 : index
    %23 = vector.load %arg8[%c0_19, %c0_20] : memref<8x1024xbf16, #tpu.memory_space<vmem>>, vector<8x1024xbf16>
    %cst_21 = arith.constant dense<0.000000e+00> : vector<8x1024xf32>
    %24 = tpu.matmul %22, %23, %cst_21 {dimension_numbers = #tpu.dot_dimension_numbers<[1], [0], [0], [1], [0, 0, 1, 1], [], []>} : vector<8x8xbf16>, vector<8x1024xbf16>, vector<8x1024xf32> -> vector<8x1024xf32>
    %c0_22 = arith.constant 0 : index
    %c0_23 = arith.constant 0 : index
    %25 = vector.load %arg11[%c0_22, %c0_23] : memref<8x1024xf32, #tpu.memory_space<vmem>>, vector<1x1024xf32>
    %26 = vector.broadcast %25 : vector<1x1024xf32> to vector<8x1024xf32>
    %27 = arith.mulf %24, %26 : vector<8x1024xf32>
    %c1_24 = arith.constant 1 : index
    %c0_25 = arith.constant 0 : index
    %28 = vector.load %arg11[%c1_24, %c0_25] : memref<8x1024xf32, #tpu.memory_space<vmem>>, vector<1x1024xf32>
    %29 = vector.broadcast %28 : vector<1x1024xf32> to vector<8x1024xf32>
    %30 = arith.addf %27, %29 : vector<8x1024xf32>
    %cst_26 = arith.constant 0.000000e+00 : f32
    %31 = vector.broadcast %cst_26 : f32 to vector<8x1024xf32>
    %32 = arith.maximumf %30, %31 : vector<8x1024xf32>
    %33 = arith.truncf %32 : vector<8x1024xf32> to vector<8x1024xbf16>
    %c0_27 = arith.constant 0 : index
    %c0_28 = arith.constant 0 : index
    %34 = vector.load %arg9[%c0_27, %c0_28] : memref<1024x1024xbf16, #tpu.memory_space<vmem>>, vector<1024x1024xbf16>
    %cst_29 = arith.constant dense<0.000000e+00> : vector<8x1024xf32>
    %35 = tpu.matmul %33, %34, %cst_29 {dimension_numbers = #tpu.dot_dimension_numbers<[1], [0], [0], [1], [0, 0, 1, 1], [], []>} : vector<8x1024xbf16>, vector<1024x1024xbf16>, vector<8x1024xf32> -> vector<8x1024xf32>
    %c2 = arith.constant 2 : index
    %c0_30 = arith.constant 0 : index
    %36 = vector.load %arg11[%c2, %c0_30] : memref<8x1024xf32, #tpu.memory_space<vmem>>, vector<1x1024xf32>
    %37 = vector.broadcast %36 : vector<1x1024xf32> to vector<8x1024xf32>
    %38 = arith.mulf %35, %37 : vector<8x1024xf32>
    %c3 = arith.constant 3 : index
    %c0_31 = arith.constant 0 : index
    %39 = vector.load %arg11[%c3, %c0_31] : memref<8x1024xf32, #tpu.memory_space<vmem>>, vector<1x1024xf32>
    %40 = vector.broadcast %39 : vector<1x1024xf32> to vector<8x1024xf32>
    %41 = arith.addf %38, %40 : vector<8x1024xf32>
    %cst_32 = arith.constant 0.000000e+00 : f32
    %42 = vector.broadcast %cst_32 : f32 to vector<8x1024xf32>
    %43 = arith.maximumf %41, %42 : vector<8x1024xf32>
    %44 = arith.truncf %43 : vector<8x1024xf32> to vector<8x1024xbf16>
    %c0_33 = arith.constant 0 : index
    %c0_34 = arith.constant 0 : index
    %45 = vector.load %arg10[%c0_33, %c0_34] : memref<1024x32xbf16, #tpu.memory_space<vmem>>, vector<1024x32xbf16>
    %cst_35 = arith.constant dense<0.000000e+00> : vector<8x32xf32>
    %46 = tpu.matmul %44, %45, %cst_35 {dimension_numbers = #tpu.dot_dimension_numbers<[1], [0], [0], [1], [0, 0, 1, 1], [], []>} : vector<8x1024xbf16>, vector<1024x32xbf16>, vector<8x32xf32> -> vector<8x32xf32>
    %c2_36 = arith.constant 2 : index
    %c0_37 = arith.constant 0 : index
    %47 = vector.load %arg7[%c2_36, %c0_37] : memref<8x32xf32, #tpu.memory_space<vmem>>, vector<1x32xf32>
    %48 = vector.broadcast %47 : vector<1x32xf32> to vector<8x32xf32>
    %49 = arith.addf %46, %48 : vector<8x32xf32>
    %50 = tpu.concatenate %14, %16, %21, %49 in 1 : vector<8x32xf32>, vector<8x32xf32>, vector<8x32xf32>, vector<8x32xf32> -> vector<8x128xf32>
    %c0_38 = arith.constant 0 : index
    %c0_39 = arith.constant 0 : index
    %51 = vector.load %arg12[%c0_38, %c0_39] : memref<8x128xf32, #tpu.memory_space<vmem>>, vector<8x128xf32>
    tpu.vector_store %arg12[%c0_38, %c0_39], %50 {strides = array<i32>} : memref<8x128xf32, #tpu.memory_space<vmem>>, vector<8x128xf32>,
    return
  }
  func.func @transform_0(%arg0: i32) -> (i32, i32) {
    %c0_i32 = arith.constant 0 : i32
    %c0_i32_0 = arith.constant 0 : i32
    %c0_i32_1 = arith.constant 0 : i32
    return %c0_i32, %c0_i32_0 : i32, i32
  }
  func.func @transform_1(%arg0: i32) -> (i32, i32) {
    %c0_i32 = arith.constant 0 : i32
    %c0_i32_0 = arith.constant 0 : i32
    %c0_i32_1 = arith.constant 0 : i32
    return %c0_i32, %c0_i32_0 : i32, i32
  }
  func.func @transform_2(%arg0: i32) -> (i32, i32) {
    %c0_i32 = arith.constant 0 : i32
    %c0_i32_0 = arith.constant 0 : i32
    %c0_i32_1 = arith.constant 0 : i32
    return %c0_i32, %c0_i32_0 : i32, i32
  }
  func.func @transform_3(%arg0: i32) -> (i32, i32) {
    %c0_i32 = arith.constant 0 : i32
    %c0_i32_0 = arith.constant 0 : i32
    %c0_i32_1 = arith.constant 0 : i32
    return %c0_i32, %c0_i32_0 : i32, i32
  }
  func.func @transform_4(%arg0: i32) -> (i32, i32) {
    %c0_i32 = arith.constant 0 : i32
    %c0_i32_0 = arith.constant 0 : i32
    %c0_i32_1 = arith.constant 0 : i32
    return %c0_i32, %c0_i32_0 : i32, i32
  }
  func.func @transform_5(%arg0: i32) -> (i32, i32) {
    %c0_i32 = arith.constant 0 : i32
    %c0_i32_0 = arith.constant 0 : i32
    %c0_i32_1 = arith.constant 0 : i32
    return %c0_i32, %c0_i32_0 : i32, i32
  }
  func.func @transform_6(%arg0: i32) -> (i32, i32) {
    %c0_i32 = arith.constant 0 : i32
    %c0_i32_0 = arith.constant 0 : i32
    %c0_i32_1 = arith.constant 0 : i32
    return %c0_i32, %c0_i32_0 : i32, i32
  }
  func.func @transform_7(%arg0: i32) -> (i32, i32) {
    %c0_i32 = arith.constant 0 : i32
    %c0_i32_0 = arith.constant 0 : i32
    %c0_i32_1 = arith.constant 0 : i32
    return %c0_i32, %c0_i32_0 : i32, i32
  }
  func.func @transform_8(%arg0: i32) -> (i32, i32) {
    %c0_i32 = arith.constant 0 : i32
    %c0_i32_0 = arith.constant 0 : i32
    %c0_i32_1 = arith.constant 0 : i32
    return %c0_i32, %c0_i32_0 : i32, i32
  }
  func.func @transform_9(%arg0: i32) -> (i32, i32) {
    %c0_i32 = arith.constant 0 : i32
    %c0_i32_0 = arith.constant 0 : i32
    %c0_i32_1 = arith.constant 0 : i32
    return %c0_i32, %c0_i32_0 : i32, i32
  }
  func.func @transform_10(%arg0: i32) -> (i32, i32) {
    %c0_i32 = arith.constant 0 : i32
    %c0_i32_0 = arith.constant 0 : i32
    %c0_i32_1 = arith.constant 0 : i32
    return %c0_i32, %c0_i32_0 : i32, i32
  }
  func.func @transform_11(%arg0: i32) -> (i32, i32) {
    %c0_i32 = arith.constant 0 : i32
    %c0_i32_0 = arith.constant 0 : i32
    %c0_i32_1 = arith.constant 0 : i32
    return %c0_i32, %c0_i32_0 : i32, i32
  }
}

</mosaic_0001>

<bundles_post_ra>
// kernel: dann_forward.1
= control target key start
LH: loop header
LB: loop body
LE: loop exit
PB: predicated region body
PF: predicated region fallthrough
CT: control target
= control target key end

     0   :  { %vm308_vm0 = vcmask 1043456   ;;  %vm115_vm1 = vcmask 293888   ;;  %vm7058_vm2 = vmmov 0   ;;  %vm911_vm3 = vcmask 64512   ;;  %s7061_s15 = smov 64   ;;  %s9609_s1 = inlined_call_operand.vmem [shape: f32[36,8], index: 1, kind: input, shape index: {}]   ;;  %s9610_s0 = inlined_call_operand.vmem [shape: f32[512,36], index: 0, kind: input, shape index: {}]   ;;  %s9611_s3 = inlined_call_operand.vmem [shape: f32[8,512], index: 3, kind: input, shape index: {}]   ;;  %s9612_s2 = inlined_call_operand.vmem [shape: f32[1,8], index: 2, kind: input, shape index: {}]   ;;  %s9613_s4 = inlined_call_operand.vmem [shape: f32[8,32], index: 4, kind: input, shape index: {}]   ;;  %s9614_s5 = inlined_call_operand.vmem [shape: f32[32,32], index: 5, kind: input, shape index: {}]   ;;  %s9615_s7 = inlined_call_operand.vmem [shape: bf16[8,1024], index: 7, kind: input, shape index: {}]   ;;  %s9616_s8 = inlined_call_operand.vmem [shape: bf16[1024,1024], index: 8, kind: input, shape index: {}]   ;;  %s9617_s6 = inlined_call_operand.vmem [shape: f32[8,32], index: 6, kind: input, shape index: {}]   ;;  %s9618_s10 = inlined_call_operand.vmem [shape: f32[8,1024], index: 10, kind: input, shape index: {}]   ;;  %s9619_s9 = inlined_call_operand.vmem [shape: bf16[1024,32], index: 9, kind: input, shape index: {}]   ;;  %s9620_s11 = inlined_call_operand.vmem [shape: f32[8,128], index: 11, kind: output, shape index: {}]  }
   0x1   :  { %v107_v0 = vld [vmem:[%s9609_s1 + $0x20] sm:$0xf]  ;;  %v106_v1 = vld [vmem:[%s9609_s1 + $0x18] sm:$0xff]  ;;  %v105_v3 = vld [vmem:[%s9609_s1 + $0x10] sm:$0xff]  ;;  %vm995_vm4 = vcmask 261120   ;;  %vm5945_vm5 = vcmask 523264  }
   0x2   :  { %6857 = vmatprep.subr.msk.mxu0 %vm308_vm0, %v107_v0  ;;  %v39_v2 = vld [vmem:[%s9610_s0] sm:$0xff]  ;;  %v104_v4 = vld [vmem:[%s9609_s1 + $0x8] sm:$0xff]  ;;  %v41_v7 = vld [vmem:[%s9610_s0 + $0x10] sm:$0xff]  ;;  %vm5947_vm6 = vcmask 785408  }
   0x3   :  { %6858 = vmatpush3.msk.msra.mxu0 %vm308_vm0, %v107_v0  ;;  %6867 = vmatprep.mubr.msk.f32.mxu0 %vm115_vm1, %v39_v2  ;;  %v103_v5 = vld [vmem:[%s9609_s1] sm:$0xff]  ;;  %v40_v6 = vld [vmem:[%s9610_s0 + $0x8] sm:$0xff]  ;;  %v42_v8 = vld [vmem:[%s9610_s0 + $0x18] sm:$0xff] }
   0x4   :  { %6859 = vmatprep.subr.mxu0 %v106_v1  ;;  %v43_v9 = vld [vmem:[%s9610_s0 + $0x20] sm:$0xff]  ;;  %v44_v10 = vld [vmem:[%s9610_s0 + $0x28] sm:$0xff]  ;;  %v45_v11 = vld [vmem:[%s9610_s0 + $0x30] sm:$0xff] }
   0x5   :  { %6860 = vmatpush3.msra.mxu0 %v106_v1  ;;  %v46_v12 = vld [vmem:[%s9610_s0 + $0x38] sm:$0xff]  ;;  %v47_v13 = vld [vmem:[%s9610_s0 + $0x40] sm:$0xff]  ;;  %v48_v14 = vld [vmem:[%s9610_s0 + $0x48] sm:$0xff] }
   0x6   :  { %6861 = vmatprep.subr.mxu0 %v105_v3  ;;  %v49_v15 = vld [vmem:[%s9610_s0 + $0x50] sm:$0xff]  ;;  %v50_v16 = vld [vmem:[%s9610_s0 + $0x58] sm:$0xff]  ;;  %v51_v17 = vld [vmem:[%s9610_s0 + $0x60] sm:$0xff] }
   0x7   :  { %6862 = vmatpush3.msra.mxu0 %v105_v3  ;;  %v52_v18 = vld [vmem:[%s9610_s0 + $0x68] sm:$0xff]  ;;  %v53_v19 = vld [vmem:[%s9610_s0 + $0x70] sm:$0xff]  ;;  %v54_v20 = vld [vmem:[%s9610_s0 + $0x78] sm:$0xff] }
   0x8   :  { %6863 = vmatprep.subr.mxu0 %v104_v4  ;;  %v55_v21 = vld [vmem:[%s9610_s0 + $0x80] sm:$0xff]  ;;  %v56_v22 = vld [vmem:[%s9610_s0 + $0x88] sm:$0xff]  ;;  %v57_v23 = vld [vmem:[%s9610_s0 + $0x90] sm:$0xff] }
   0x9   :  { %6864 = vmatpush3.msra.mxu0 %v104_v4  ;;  %v58_v24 = vld [vmem:[%s9610_s0 + $0x98] sm:$0xff]  ;;  %v59_v25 = vld [vmem:[%s9610_s0 + $0xa0] sm:$0xff]  ;;  %v60_v26 = vld [vmem:[%s9610_s0 + $0xa8] sm:$0xff] }
   0xa   :  { %6865 = vmatprep.subr.mxu0 %v103_v5  ;;  %v61_v27 = vld [vmem:[%s9610_s0 + $0xb0] sm:$0xff]  ;;  %v62_v28 = vld [vmem:[%s9610_s0 + $0xb8] sm:$0xff]  ;;  %v63_v29 = vld [vmem:[%s9610_s0 + $0xc0] sm:$0xff] }
   0xb   :  { %6866 = vmatpush3.msra.mxu0 %v103_v5  ;;  %v64_v30 = vld [vmem:[%s9610_s0 + $0xc8] sm:$0xff]  ;;  %v65_v31 = vld [vmem:[%s9610_s0 + $0xd0] sm:$0xff]  ;;  %v66_v32 = vld [vmem:[%s9610_s0 + $0xd8] sm:$0xff] }
   0xc   :  { %6868 = vmatmul.mubr.msk.f32.vlgmr.msra.gmra.mxu0 %vm115_vm1, %v40_v6  ;;  %v67_v33 = vld [vmem:[%s9610_s0 + $0xe0] sm:$0xff]  ;;  %v68_v34 = vld [vmem:[%s9610_s0 + $0xe8] sm:$0xff]  ;;  %v69_v35 = vld [vmem:[%s9610_s0 + $0xf0] sm:$0xff] }
   0xd   :  { %6870 = vmatprep.mubr.msk.f32.mxu0 %vm115_vm1, %v41_v7  ;;  %v70_v36 = vld [vmem:[%s9610_s0 + $0xf8] sm:$0xff]  ;;  %v71_v37 = vld [vmem:[%s9610_s0 + $0x100] sm:$0xff]  ;;  %v72_v38 = vld [vmem:[%s9610_s0 + $0x108] sm:$0xff] }
   0xe   :  { %v73_v39 = vld [vmem:[%s9610_s0 + $0x110] sm:$0xff]  ;;  %v74_v40 = vld [vmem:[%s9610_s0 + $0x118] sm:$0xff]  ;;  %v75_v41 = vld [vmem:[%s9610_s0 + $0x120] sm:$0xff] }
   0xf   :  { %v76_v42 = vld [vmem:[%s9610_s0 + $0x128] sm:$0xff]  ;;  %v77_v43 = vld [vmem:[%s9610_s0 + $0x130] sm:$0xff]  ;;  %v78_v44 = vld [vmem:[%s9610_s0 + $0x138] sm:$0xff] }
  0x10   :  { %6871 = vmatmul.mubr.msk.f32.gmra.mxu0 %vm115_vm1, %v42_v8  ;;  %v79_v45 = vld [vmem:[%s9610_s0 + $0x140] sm:$0xff]  ;;  %v80_v46 = vld [vmem:[%s9610_s0 + $0x148] sm:$0xff]  ;;  %v81_v47 = vld [vmem:[%s9610_s0 + $0x150] sm:$0xff] }
  0x11   :  { %6873 = vmatprep.mubr.msk.f32.mxu0 %vm115_vm1, %v43_v9  ;;  %v82_v48 = vld [vmem:[%s9610_s0 + $0x158] sm:$0xff]  ;;  %v83_v49 = vld [vmem:[%s9610_s0 + $0x160] sm:$0xff]  ;;  %v84_v50 = vld [vmem:[%s9610_s0 + $0x168] sm:$0xff] }
  0x12   :  { %v85_v51 = vld [vmem:[%s9610_s0 + $0x170] sm:$0xff]  ;;  %v86_v52 = vld [vmem:[%s9610_s0 + $0x178] sm:$0xff]  ;;  %v87_v53 = vld [vmem:[%s9610_s0 + $0x180] sm:$0xff] }
  0x13   :  { %v88_v54 = vld [vmem:[%s9610_s0 + $0x188] sm:$0xff]  ;;  %v89_v55 = vld [vmem:[%s9610_s0 + $0x190] sm:$0xff]  ;;  %v90_v56 = vld [vmem:[%s9610_s0 + $0x198] sm:$0xff] }
  0x14   :  { %6874 = vmatmul.mubr.msk.f32.gmra.mxu0 %vm115_vm1, %v44_v10  ;;  %v91_v57 = vld [vmem:[%s9610_s0 + $0x1a0] sm:$0xff]  ;;  %v92_v58 = vld [vmem:[%s9610_s0 + $0x1a8] sm:$0xff]  ;;  %v93_v59 = vld [vmem:[%s9610_s0 + $0x1b0] sm:$0xff] }
  0x15   :  { %6876 = vmatprep.mubr.msk.f32.mxu0 %vm115_vm1, %v45_v11  ;;  %v94_v60 = vld [vmem:[%s9610_s0 + $0x1b8] sm:$0xff]  ;;  %v95_v61 = vld [vmem:[%s9610_s0 + $0x1c0] sm:$0xff]  ;;  %v96_v62 = vld [vmem:[%s9610_s0 + $0x1c8] sm:$0xff] }
  0x16   :  { %v97_v63 = vld [vmem:[%s9610_s0 + $0x1d0] sm:$0xff]  ;;  %v98_v0 = vld [vmem:[%s9610_s0 + $0x1d8] sm:$0xff]  ;;  %v99_v1 = vld [vmem:[%s9610_s0 + $0x1e0] sm:$0xff] }
  0x17   :  { %v100_v2 = vld [vmem:[%s9610_s0 + $0x1e8] sm:$0xff]  ;;  %v101_v3 = vld [vmem:[%s9610_s0 + $0x1f0] sm:$0xff]  ;;  %v102_v4 = vld [vmem:[%s9610_s0 + $0x1f8] sm:$0xff] }
  0x18   :  { %6877 = vmatmul.mubr.msk.f32.gmra.mxu0 %vm115_vm1, %v46_v12  ;;  %v762_v5 = vld [vmem:[%s9611_s3 + $0x8] sm:$0xff] }
  0x19   :  { %6879 = vmatprep.mubr.msk.f32.mxu0 %vm115_vm1, %v47_v13  ;;  %829 = vmatprep.mubr.f32.mxu1 %v762_v5 }
  0x1c   :  { %6880 = vmatmul.mubr.msk.f32.gmra.mxu0 %vm115_vm1, %v48_v14 }
  0x1d   :  { %6882 = vmatprep.mubr.msk.f32.mxu0 %vm115_vm1, %v49_v15 }
  0x20   :  { %6883 = vmatmul.mubr.msk.f32.gmra.mxu0 %vm115_vm1, %v50_v16 }
  0x21   :  { %6885 = vmatprep.mubr.msk.f32.mxu0 %vm115_vm1, %v51_v17 }
  0x24   :  { %6886 = vmatmul.mubr.msk.f32.gmra.mxu0 %vm115_vm1, %v52_v18 }
  0x25   :  { %6888 = vmatprep.mubr.msk.f32.mxu0 %vm115_vm1, %v53_v19 }
  0x28   :  { %6889 = vmatmul.mubr.msk.f32.gmra.mxu0 %vm115_vm1, %v54_v20 }
  0x29   :  { %6891 = vmatprep.mubr.msk.f32.mxu0 %vm115_vm1, %v55_v21 }
  0x2c   :  { %6892 = vmatmul.mubr.msk.f32.gmra.mxu0 %vm115_vm1, %v56_v22 }
  0x2d   :  { %6894 = vmatprep.mubr.msk.f32.mxu0 %vm115_vm1, %v57_v23 }
  0x30   :  { %6895 = vmatmul.mubr.msk.f32.gmra.mxu0 %vm115_vm1, %v58_v24 }
  0x31   :  { %6897 = vmatprep.mubr.msk.f32.mxu0 %vm115_vm1, %v59_v25 }
  0x34   :  { %6898 = vmatmul.mubr.msk.f32.gmra.mxu0 %vm115_vm1, %v60_v26 }
  0x35   :  { %6900 = vmatprep.mubr.msk.f32.mxu0 %vm115_vm1, %v61_v27 }
  0x38   :  { %6901 = vmatmul.mubr.msk.f32.gmra.mxu0 %vm115_vm1, %v62_v28 }
  0x39   :  { %6903 = vmatprep.mubr.msk.f32.mxu0 %vm115_vm1, %v63_v29 }
  0x3c   :  { %6904 = vmatmul.mubr.msk.f32.gmra.mxu0 %vm115_vm1, %v64_v30 }
  0x3d   :  { %6906 = vmatprep.mubr.msk.f32.mxu0 %vm115_vm1, %v65_v31 }
  0x40   :  { %6907 = vmatmul.mubr.msk.f32.gmra.mxu0 %vm115_vm1, %v66_v32 }
  0x41   :  { %6909 = vmatprep.mubr.msk.f32.mxu0 %vm115_vm1, %v67_v33 }
  0x44   :  { %6910 = vmatmul.mubr.msk.f32.gmra.mxu0 %vm115_vm1, %v68_v34 }
  0x45   :  { %6912 = vmatprep.mubr.msk.f32.mxu0 %vm115_vm1, %v69_v35 }
  0x48   :  { %6913 = vmatmul.mubr.msk.f32.gmra.mxu0 %vm115_vm1, %v70_v36  ;;  %v7432_v36 = vld [vmem:[%s9612_s2] ss:$0 sm:$0xff] }
  0x49   :  { %6915 = vmatprep.mubr.msk.f32.mxu0 %vm115_vm1, %v71_v37 }
  0x4c   :  { %6916 = vmatmul.mubr.msk.f32.gmra.mxu0 %vm115_vm1, %v72_v38 }
  0x4d   :  { %6918 = vmatprep.mubr.msk.f32.mxu0 %vm115_vm1, %v73_v39 }
  0x50   :  { %6919 = vmatmul.mubr.msk.f32.gmra.mxu0 %vm115_vm1, %v74_v40 }
  0x51   :  { %6921 = vmatprep.mubr.msk.f32.mxu0 %vm115_vm1, %v75_v41 }
  0x54   :  { %6922 = vmatmul.mubr.msk.f32.gmra.mxu0 %vm115_vm1, %v76_v42 }
  0x55   :  { %6924 = vmatprep.mubr.msk.f32.mxu0 %vm115_vm1, %v77_v43 }
  0x58   :  { %6925 = vmatmul.mubr.msk.f32.gmra.mxu0 %vm115_vm1, %v78_v44 }
  0x59   :  { %6927 = vmatprep.mubr.msk.f32.mxu0 %vm115_vm1, %v79_v45 }
  0x5c   :  { %6928 = vmatmul.mubr.msk.f32.gmra.mxu0 %vm115_vm1, %v80_v46 }
  0x5d   :  { %6930 = vmatprep.mubr.msk.f32.mxu0 %vm115_vm1, %v81_v47 }
  0x60   :  { %6931 = vmatmul.mubr.msk.f32.gmra.mxu0 %vm115_vm1, %v82_v48 }
  0x61   :  { %6933 = vmatprep.mubr.msk.f32.mxu0 %vm115_vm1, %v83_v49 }
  0x64   :  { %6934 = vmatmul.mubr.msk.f32.gmra.mxu0 %vm115_vm1, %v84_v50 }
  0x65   :  { %6936 = vmatprep.mubr.msk.f32.mxu0 %vm115_vm1, %v85_v51 }
  0x68   :  { %6937 = vmatmul.mubr.msk.f32.gmra.mxu0 %vm115_vm1, %v86_v52 }
  0x69   :  { %6939 = vmatprep.mubr.msk.f32.mxu0 %vm115_vm1, %v87_v53 }
  0x6c   :  { %6940 = vmatmul.mubr.msk.f32.gmra.mxu0 %vm115_vm1, %v88_v54 }
  0x6d   :  { %6942 = vmatprep.mubr.msk.f32.mxu0 %vm115_vm1, %v89_v55 }
  0x70   :  { %6943 = vmatmul.mubr.msk.f32.gmra.mxu0 %vm115_vm1, %v90_v56 }
  0x71   :  { %6945 = vmatprep.mubr.msk.f32.mxu0 %vm115_vm1, %v91_v57 }
  0x74   :  { %6946 = vmatmul.mubr.msk.f32.gmra.mxu0 %vm115_vm1, %v92_v58 }
  0x75   :  { %6948 = vmatprep.mubr.msk.f32.mxu0 %vm115_vm1, %v93_v59 }
  0x78   :  { %6949 = vmatmul.mubr.msk.f32.gmra.mxu0 %vm115_vm1, %v94_v60 }
  0x79   :  { %6951 = vmatprep.mubr.msk.f32.mxu0 %vm115_vm1, %v95_v61 }
  0x7c   :  { %6952 = vmatmul.mubr.msk.f32.gmra.mxu0 %vm115_vm1, %v96_v62 }
  0x7d   :  { %6954 = vmatprep.mubr.msk.f32.mxu0 %vm115_vm1, %v97_v63 }
  0x80   :  { %6955 = vmatmul.mubr.msk.f32.gmra.mxu0 %vm115_vm1, %v98_v0 }
  0x81   :  { %6957 = vmatprep.mubr.msk.f32.mxu0 %vm115_vm1, %v99_v1 }
  0x84   :  { %6958 = vmatmul.mubr.msk.f32.gmra.mxu0 %vm115_vm1, %v100_v2 }
  0x85   :  { %6960 = vmatprep.mubr.msk.f32.mxu0 %vm115_vm1, %v101_v3 }
  0x88   :  { %6961 = vmatmul.mubr.msk.f32.gmra.mxu0 %vm115_vm1, %v102_v4 }
  0xcc   :  { %v7399_v6 = vpop.f32.mrf.mxu0 }
  0xce   :  { %v7401_v7 = vpop.f32.mrf.mxu0 }
  0xd0   :  { %v7403_v8 = vpop.f32.mrf.mxu0 }
  0xd2   :  { %v7405_v9 = vpop.f32.mrf.mxu0 }
  0xd4   :  { %v7407_v10 = vpop.f32.mrf.mxu0 }
  0xd6   :  { %v7409_v11 = vpop.f32.mrf.mxu0 }
  0xd8   :  { %v7411_v12 = vpop.f32.mrf.mxu0 }
  0xda   :  { %v7413_v13 = vpop.f32.mrf.mxu0 }
  0xdc   :  { %v6881_v14 = vpop.f32.mrf.mxu0 }
  0xdd   :  { %v424_v1 = vadd.f32 %v6881_v14, %v7432_v36  ;;  %v414_v14 = vadd.f32 %v7411_v12, %v7432_v36  ;;  %v404_v12 = vadd.f32 %v7407_v10, %v7432_v36 }
  0xde   :  { %v7415_v15 = vpop.f32.mrf.mxu0 }
  0xe0   :  { %v6884_v16 = vpop.f32.mrf.mxu0 }
  0xe1   :  { %v434_v55 = vadd.f32 %v6884_v16, %v7432_v36  ;;  %v419_v16 = vadd.f32 %v7432_v36, %v7415_v15  ;;  %v409_v15 = vadd.f32 %v7432_v36, %v7413_v13 }
  0xe2   :  { %v428_v17 = vpop.f32.mrf.mxu0 }
  0xe3   :  { %v429_v60 = vadd.f32 %v7432_v36, %v428_v17  ;;  %v708_v2 = vmax.f32 %v434_v55, 0.0 }
  0xe4   :  { %v6887_v18 = vpop.f32.mrf.mxu0 }
  0xe5   :  { %v444_v45 = vadd.f32 %v6887_v18, %v7432_v36  ;;  %v707_v17 = vmax.f32 %v429_v60, 0.0 }
  0xe6   :  { %v438_v19 = vpop.f32.mrf.mxu0 }
  0xe7   :  { %v439_v50 = vadd.f32 %v7432_v36, %v438_v19  ;;  %v710_v56 = vmax.f32 %v444_v45, 0.0  ;;  %v389_v45 = vadd.f32 %v7432_v36, %v7405_v9  ;;  %v379_v9 = vadd.f32 %v7432_v36, %v7401_v7  ;;  %v764_v7 = vld [vmem:[%s9611_s3 + $0x18] sm:$0xff] }
  0xe8   :  { %v6890_v20 = vpop.f32.mrf.mxu0 }
  0xe9   :  { %v454_v37 = vadd.f32 %v6890_v20, %v7432_v36  ;;  %v709_v61 = vmax.f32 %v439_v50, 0.0 }
  0xea   :  { %v448_v21 = vpop.f32.mrf.mxu0 }
  0xeb   :  { %v449_v40 = vadd.f32 %v7432_v36, %v448_v21  ;;  %v712_v46 = vmax.f32 %v454_v37, 0.0  ;;  %v706_v21 = vmax.f32 %v424_v1, 0.0  ;;  %v704_v37 = vmax.f32 %v414_v14, 0.0 }
  0xec   :  { %v7417_v22 = vpop.f32.mrf.mxu0 }
  0xed   :  { %v711_v51 = vmax.f32 %v449_v40, 0.0  ;;  %v703_v40 = vmax.f32 %v409_v15, 0.0 }
  0xee   :  { %v7419_v23 = vpop.f32.mrf.mxu0 }
  0xf0   :  { %v7421_v24 = vpop.f32.mrf.mxu0 }
  0xf2   :  { %v7423_v25 = vpop.f32.mrf.mxu0 }
  0xf4   :  { %v7425_v26 = vpop.f32.mrf.mxu0 }
  0xf6   :  { %v7427_v27 = vpop.f32.mrf.mxu0 }
  0xf8   :  { %v6902_v28 = vpop.f32.mrf.mxu0 }
  0xf9   :  { %v494_v19 = vadd.f32 %v6902_v28, %v7432_v36  ;;  %v484_v28 = vadd.f32 %v7425_v26, %v7432_v36  ;;  %v474_v26 = vadd.f32 %v7421_v24, %v7432_v36  ;;  %v464_v24 = vadd.f32 %v7417_v22, %v7432_v36 }
  0xfa   :  { %v488_v29 = vpop.f32.mrf.mxu0 }
  0xfb   :  { %v718_v10 = vmax.f32 %v484_v28, 0.0  ;;  %v714_v22 = vmax.f32 %v464_v24, 0.0 }
  0xfc   :  { %v6905_v30 = vpop.f32.mrf.mxu0 }
  0xfd   :  { %v504_v63 = vadd.f32 %v6905_v30, %v7432_v36 }
  0xfe   :  { %v498_v31 = vpop.f32.mrf.mxu0 }
  0xff   :  { %v499_v4 = vadd.f32 %v7432_v36, %v498_v31  ;;  %v722_v20 = vmax.f32 %v504_v63, 0.0  ;;  %v489_v31 = vadd.f32 %v7432_v36, %v488_v29  ;;  %v479_v29 = vadd.f32 %v7432_v36, %v7427_v27 }
 0x100   :  { %v6908_v32 = vpop.f32.mrf.mxu0  ;;  %v469_v27 = vadd.f32 %v7432_v36, %v7423_v25  ;;  %v459_v25 = vadd.f32 %v7432_v36, %v7419_v23  ;;  %v761_v23 = vld [vmem:[%s9611_s3] sm:$0xff] }
 0x101   :  { %v514_v53 = vadd.f32 %v6908_v32, %v7432_v36  ;;  %v721_v32 = vmax.f32 %v499_v4, 0.0  ;;  %v719_v13 = vmax.f32 %v489_v31, 0.0 }
 0x102   :  { %v508_v33 = vpop.f32.mrf.mxu0 }
 0x103   :  { %v509_v58 = vadd.f32 %v7432_v36, %v508_v33  ;;  %v724_v0 = vmax.f32 %v514_v53, 0.0  ;;  %v705_v33 = vmax.f32 %v419_v16, 0.0  ;;  %v715_v53 = vmax.f32 %v469_v27, 0.0 }
 0x104   :  { %v6911_v34 = vpop.f32.mrf.mxu0 }
 0x105   :  { %v524_v42 = vadd.f32 %v6911_v34, %v7432_v36  ;;  %v723_v5 = vmax.f32 %v509_v58, 0.0 }
 0x106   :  { %v518_v35 = vpop.f32.mrf.mxu0 }
 0x107   :  { %v519_v48 = vadd.f32 %v7432_v36, %v518_v35  ;;  %v726_v54 = vmax.f32 %v524_v42, 0.0  ;;  %v720_v35 = vmax.f32 %v494_v19, 0.0  ;;  %v394_v42 = vadd.f32 %v7403_v8, %v7432_v36 }
 0x108   :  { %v6914_v38 = vpop.f32.mrf.mxu0  ;;  %v716_v8 = vmax.f32 %v474_v26, 0.0 }
 0x109   :  { %v534_v39 = vadd.f32 %v6914_v38, %v7432_v36  ;;  %v725_v59 = vmax.f32 %v519_v48, 0.0  ;;  %v700_v50 = vmax.f32 %v394_v42, 0.0 }
 0x10a   :  { %v528_v41 = vpop.f32.mrf.mxu0 }
 0x10b   :  { %v529_v43 = vadd.f32 %v7432_v36, %v528_v41  ;;  %v728_v44 = vmax.f32 %v534_v39, 0.0  ;;  %v399_v39 = vadd.f32 %v7432_v36, %v7409_v11  ;;  %v717_v11 = vmax.f32 %v479_v29, 0.0 }
 0x10c   :  { %v7440_v47 = vpop.f32.mrf.mxu0 }
 0x10d   :  { %v727_v49 = vmax.f32 %v529_v43, 0.0  ;;  %6692 = vmatprep.subr.mxu1 %v728_v44  ;;  %v702_v43 = vmax.f32 %v404_v12, 0.0 }
 0x10e   :  { %v7444_v52 = vpop.f32.mrf.mxu0  ;;  %6693 = vmatpush3.msra.mxu1 %v712_v46  ;;  %v701_v46 = vmax.f32 %v399_v39, 0.0 }
 0x10f   :  { %6694 = vmatprep.subr.mxu1 %v727_v49  ;;  %v384_v49 = vadd.f32 %v7399_v6, %v7432_v36  ;;  %v713_v6 = vmax.f32 %v459_v25, 0.0 }
 0x110   :  { %v7448_v57 = vpop.f32.mrf.mxu0  ;;  %6695 = vmatpush3.msra.mxu1 %v711_v51 }
 0x111   :  { %6696 = vmatprep.subr.mxu1 %v726_v54  ;;  %v699_v54 = vmax.f32 %v389_v45, 0.0 }
 0x112   :  { %v7452_v62 = vpop.f32.mrf.mxu0  ;;  %6697 = vmatpush3.msra.mxu1 %v710_v56  ;;  %v698_v56 = vmax.f32 %v384_v49, 0.0 }
 0x113   :  { %6698 = vmatprep.subr.mxu1 %v725_v59  ;;  %v697_v59 = vmax.f32 %v379_v9, 0.0 }
 0x114   :  { %v7456_v3 = vpop.f32.mrf.mxu0  ;;  %6699 = vmatpush3.msra.mxu1 %v709_v61 }
 0x115   :  { %6700 = vmatprep.subr.mxu1 %v724_v0 }
 0x116   :  { %v7461_v18 = vpop.f32.mrf.mxu0  ;;  %6701 = vmatpush3.msra.mxu1 %v708_v2 }
 0x117   :  { %6702 = vmatprep.subr.mxu1 %v723_v5 }
 0x118   :  { %v7466_v30 = vpop.f32.mrf.mxu0  ;;  %6703 = vmatpush3.msra.mxu1 %v707_v17 }
 0x119   :  { %6704 = vmatprep.subr.mxu1 %v722_v20 }
 0x11a   :  { %v7471_v34 = vpop.f32.mrf.mxu0  ;;  %6705 = vmatpush3.msra.mxu1 %v706_v21 }
 0x11b   :  { %6706 = vmatprep.subr.mxu1 %v721_v32 }
 0x11c   :  { %v7477_v38 = vpop.f32.mrf.mxu0  ;;  %6707 = vmatpush3.msra.mxu1 %v705_v33 }
 0x11d   :  { %6708 = vmatprep.subr.mxu1 %v720_v35  ;;  %v584_v25 = vadd.f32 %v7477_v38, %v7432_v36 }
 0x11e   :  { %v7483_v41 = vpop.f32.mrf.mxu0  ;;  %6709 = vmatpush3.msra.mxu1 %v704_v37 }
 0x11f   :  { %6710 = vmatprep.subr.mxu1 %v719_v13 }
 0x120   :  { %v7489_v44 = vpop.f32.mrf.mxu0  ;;  %6711 = vmatpush3.msra.mxu1 %v703_v40 }
 0x121   :  { %6712 = vmatprep.subr.mxu1 %v718_v10 }
 0x122   :  { %v7495_v48 = vpop.f32.mrf.mxu0  ;;  %6713 = vmatpush3.msra.mxu1 %v702_v43 }
 0x123   :  { %6714 = vmatprep.subr.mxu1 %v717_v11  ;;  %v594_v11 = vadd.f32 %v7489_v44, %v7432_v36 }
 0x124   :  { %v6935_v51 = vpop.f32.mrf.mxu0  ;;  %6715 = vmatpush3.msra.mxu1 %v701_v46 }
 0x125   :  { %6716 = vmatprep.subr.mxu1 %v716_v8  ;;  %v604_v13 = vadd.f32 %v6935_v51, %v7432_v36  ;;  %v589_v8 = vadd.f32 %v7432_v36, %v7495_v48 }
 0x126   :  { %v598_v55 = vpop.f32.mrf.mxu0  ;;  %6717 = vmatpush3.msra.mxu1 %v700_v50 }
 0x127   :  { %6718 = vmatprep.subr.mxu1 %v715_v53  ;;  %v599_v10 = vadd.f32 %v7432_v36, %v598_v55  ;;  %v742_v45 = vmax.f32 %v604_v13, 0.0  ;;  %v740_v53 = vmax.f32 %v594_v11, 0.0  ;;  %v739_v55 = vmax.f32 %v589_v8, 0.0  ;;  %v1070_v11 = vld [vmem:[%s9615_s7] sm:$0xff] }
 0x128   :  { %v6938_v58 = vpop.f32.mrf.mxu0  ;;  %6719 = vmatpush3.msra.mxu1 %v699_v54  ;;  %v579_v54 = vadd.f32 %v7432_v36, %v7483_v41  ;;  %v1454_v8 = vld [vmem:[%s9616_s8 + $0x180] sm:$0xff] }
 0x129   :  { %6720 = vmatprep.subr.mxu1 %v714_v22  ;;  %v614_v32 = vadd.f32 %v6938_v58, %v7432_v36  ;;  %v741_v49 = vmax.f32 %v599_v10, 0.0  ;;  %v738_v58 = vmax.f32 %v584_v25, 0.0  ;;  %v989_v10 = vld [vmem:[%s9614_s5 + $0x18] sm:$0xff] }
 0x12a   :  { %v608_v60 = vpop.f32.mrf.mxu0  ;;  %6721 = vmatpush3.msra.mxu1 %v698_v56  ;;  %v574_v56 = vadd.f32 %v7466_v30, %v7432_v36 }
 0x12b   :  { %6722 = vmatprep.subr.mxu1 %v713_v6  ;;  %v609_v28 = vadd.f32 %v7432_v36, %v608_v60  ;;  %v744_v39 = vmax.f32 %v614_v32, 0.0  ;;  %v737_v60 = vmax.f32 %v579_v54, 0.0 }
 0x12c   :  { %v7511_v61 = vpop.f32.mrf.mxu0  ;;  %6723 = vmatpush3.msra.mxu1 %v697_v59  ;;  %v569_v59 = vadd.f32 %v7432_v36, %v7471_v34 }
 0x12d   :  { %830 = vmatmul.mubr.f32.vlgmr.msra.gmra.mxu1 %v761_v23  ;;  %v743_v42 = vmax.f32 %v609_v28, 0.0 }
 0x12e   :  { %v7513_v63 = vpop.f32.mrf.mxu0  ;;  %899 = vmatprep.mubr.f32.mxu1 %v764_v7  ;;  %v564_v7 = vadd.f32 %v7456_v3, %v7432_v36  ;;  %v735_v34 = vmax.f32 %v569_v59, 0.0  ;;  %v554_v3 = vadd.f32 %v7448_v57, %v7432_v36  ;;  %v544_v57 = vadd.f32 %v7440_v47, %v7432_v36  ;;  %v763_v47 = vld [vmem:[%s9611_s3 + $0x10] sm:$0xff]  ;;  %v1422_v59 = vld [vmem:[%s9616_s8 + $0x80] sm:$0xff] }
 0x130   :  { %v7515_v0 = vpop.f32.mrf.mxu0  ;;  %v732_v32 = vmax.f32 %v554_v3, 0.0  ;;  %v1071_v3 = vld [vmem:[%s9615_s7 + $0x8] sm:$0xff] }
 0x132   :  { %v7517_v1 = vpop.f32.mrf.mxu0 }
 0x134   :  { %v6947_v2 = vpop.f32.mrf.mxu0 }
 0x135   :  { %v644_v41 = vadd.f32 %v6947_v2, %v7432_v36  ;;  %v634_v2 = vadd.f32 %v7515_v0, %v7432_v36  ;;  %v624_v0 = vadd.f32 %v7511_v61, %v7432_v36  ;;  %v730_v61 = vmax.f32 %v544_v57, 0.0  ;;  %v1530_v57 = vld [vmem:[%s9616_s8 + $0x3e0] sm:$0xff] }
 0x136   :  { %v7519_v4 = vpop.f32.mrf.mxu0 }
 0x137   :  { %v639_v30 = vadd.f32 %v7432_v36, %v7519_v4  ;;  %v629_v4 = vadd.f32 %v7432_v36, %v7517_v1  ;;  %v619_v1 = vadd.f32 %v7432_v36, %v7513_v63  ;;  %v746_v28 = vmax.f32 %v624_v0, 0.0 }
 0x138   :  { %v6950_v5 = vpop.f32.mrf.mxu0  ;;  %v7057_v63 = vmov 0.0  }
 0x139   :  { %v654_v48 = vadd.f32 %v6950_v5, %v7432_v36  ;;  %v736_v5 = vmax.f32 %v574_v56, 0.0 }
 0x13a   :  { %v648_v16 = vpop.f32.mrf.mxu0 }
 0x13b   :  { %v649_v38 = vadd.f32 %v7432_v36, %v648_v16  ;;  %v752_v23 = vmax.f32 %v654_v48, 0.0  ;;  %v1442_v48 = vld [vmem:[%s9616_s8 + $0x120] sm:$0xff] }
 0x13c   :  { %v6953_v17 = vpop.f32.mrf.mxu0 }
 0x13d   :  { %v664_v50 = vadd.f32 %v6953_v17, %v7432_v36  ;;  %v751_v16 = vmax.f32 %v649_v38, 0.0  ;;  %v559_v17 = vadd.f32 %v7432_v36, %v7461_v18  ;;  %v549_v18 = vadd.f32 %v7432_v36, %v7452_v62  ;;  %v1430_v38 = vld [vmem:[%s9616_s8 + $0xc0] sm:$0xff] }
 0x13e   :  { %v658_v19 = vpop.f32.mrf.mxu0  ;;  %v539_v62 = vadd.f32 %v7432_v36, %v7444_v52 }
 0x13f   :  { %v659_v44 = vadd.f32 %v7432_v36, %v658_v19  ;;  %v754_v22 = vmax.f32 %v664_v50, 0.0  ;;  %v750_v19 = vmax.f32 %v644_v41, 0.0 }
 0x140   :  { %v6956_v20 = vpop.f32.mrf.mxu0 }
 0x141   :  { %v674_v43 = vadd.f32 %v6956_v20, %v7432_v36  ;;  %v753_v6 = vmax.f32 %v659_v44, 0.0  ;;  %v734_v20 = vmax.f32 %v564_v7, 0.0  ;;  %v1450_v44 = vld [vmem:[%s9616_s8 + $0x160] sm:$0xff] }
 0x142   :  { %v668_v14 = vpop.f32.mrf.mxu0 }
 0x143   :  { %v669_v46 = vadd.f32 %v7432_v36, %v668_v14  ;;  %v756_v51 = vmax.f32 %v674_v43, 0.0  ;;  %v749_v14 = vmax.f32 %v639_v30, 0.0  ;;  %v987_v43 = vld [vmem:[%s9614_s5 + $0x8] sm:$0xff]  ;;  %v1418_v30 = vld [vmem:[%s9616_s8 + $0x60] sm:$0xff] }
 0x144   :  { %v6959_v21 = vpop.f32.mrf.mxu0 }
 0x145   :  { %v684_v12 = vadd.f32 %v6959_v21, %v7432_v36  ;;  %v755_v9 = vmax.f32 %v669_v46, 0.0  ;;  %v733_v21 = vmax.f32 %v559_v17, 0.0  ;;  %v1462_v46 = vld [vmem:[%s9616_s8 + $0x1c0] sm:$0xff] }
 0x146   :  { %v678_v31 = vpop.f32.mrf.mxu0 }
 0x147   :  { %v679_v40 = vadd.f32 %v7432_v36, %v678_v31  ;;  %v758_v27 = vmax.f32 %v684_v12, 0.0  ;;  %v748_v31 = vmax.f32 %v634_v2, 0.0  ;;  %v729_v12 = vmax.f32 %v539_v62, 0.0 }
 0x148   :  { %v6962_v15 = vpop.f32.mrf.mxu0  ;;  %v6024_v2 = vcombine.low %v1070_v11, %v1070_v11 }
 0x149   :  { %v694_v33 = vadd.f32 %v6962_v15, %v7432_v36  ;;  %v757_v24 = vmax.f32 %v679_v40, 0.0  ;;  %v747_v15 = vmax.f32 %v629_v4, 0.0  ;;  %v1406_v4 = vld [vmem:[%s9616_s8] sm:$0xff] }
 0x14a   :  { %v688_v35 = vpop.f32.mrf.mxu0  ;;  %v1098_v0 = vsel %vm308_vm0, %v6024_v2, 0  ;;  %v1558_v2 = vld [vmem:[%s9616_s8 + $0x4c0] sm:$0xff] }
 0x14b   :  { %v760_v37 = vmax.f32 %v694_v33, 0.0  ;;  %v689_v29 = vadd.f32 %v7432_v36, %v688_v35  ;;  %v731_v33 = vmax.f32 %v549_v18, 0.0  ;;  %v745_v35 = vmax.f32 %v619_v1, 0.0  ;;  %v905_v36 = vld [vmem:[%s9613_s4] sm:$0xff]  ;;  %s7059_s4 = smov 32  }
 0x14c   :  { %v6027_v1 = vcombine.high %v1071_v3, %v1071_v3 }
 0x14d   :  { %v759_v26 = vmax.f32 %v689_v29, 0.0  ;;  %6727 = vmatprep.subr.mxu1 %v760_v37 }
 0x14e   :  { %6728 = vmatpush3.msra.mxu1 %v744_v39 }
 0x14f   :  { %6729 = vmatprep.subr.mxu1 %v759_v26 }
 0x150   :  { %6730 = vmatpush3.msra.mxu1 %v743_v42  ;;  %v988_v42 = vld [vmem:[%s9614_s5 + $0x10] sm:$0xff] }
 0x151   :  { %6731 = vmatprep.subr.mxu1 %v758_v27  ;;  %v986_v27 = vld [vmem:[%s9614_s5] sm:$0xff] }
 0x152   :  { %6732 = vmatpush3.msra.mxu1 %v742_v45  ;;  %v6025_v45 = vcombine.high %v1070_v11, %v1070_v11 }
 0x153   :  { %6733 = vmatprep.subr.mxu1 %v757_v24  ;;  %v1466_v24 = vld [vmem:[%s9616_s8 + $0x1e0] sm:$0xff] }
 0x154   :  { %6734 = vmatpush3.msra.mxu1 %v741_v49  ;;  %v6098_v49 = vcombine.low %v1462_v46, %v1466_v24  ;;  %v6099_v50 = vcombine.high %v1462_v46, %v1466_v24 }
 0x155   :  { %6735 = vmatprep.subr.mxu1 %v756_v51  ;;  %v1458_v51 = vld [vmem:[%s9616_s8 + $0x1a0] sm:$0xff] }
 0x156   :  { %6736 = vmatpush3.msra.mxu1 %v740_v53  ;;  %v6091_v25 = vcombine.high %v1454_v8, %v1458_v51  ;;  %v1446_v53 = vld [vmem:[%s9616_s8 + $0x140] sm:$0xff]  ;;  %4478 = vmatprep.subr.bf16.mxu0 %v6099_v50 }
 0x157   :  { %6737 = vmatprep.subr.mxu1 %v755_v9  ;;  %4479 = vmatpush1.bf16.msra.mxu0 %v6098_v49  ;;  %v6090_v9 = vcombine.low %v1454_v8, %v1458_v51  ;;  %v6083_v54 = vcombine.high %v1446_v53, %v1450_v44  ;;  %v1494_v8 = vld [vmem:[%s9616_s8 + $0x2c0] sm:$0xff] }
 0x158   :  { %6738 = vmatpush3.msra.mxu1 %v739_v55  ;;  %4480 = vmatprep.subr.bf16.mxu0 %v6091_v25  ;;  %v1438_v55 = vld [vmem:[%s9616_s8 + $0x100] sm:$0xff] }
 0x159   :  { %6739 = vmatprep.subr.mxu1 %v754_v22  ;;  %v6082_v22 = vcombine.low %v1446_v53, %v1450_v44  ;;  %v6075_v56 = vcombine.high %v1438_v55, %v1442_v48  ;;  %v1498_v49 = vld [vmem:[%s9616_s8 + $0x2e0] sm:$0xff] }
 0x15a   :  { %6740 = vmatpush3.msra.mxu1 %v738_v58  ;;  %v6074_v58 = vcombine.low %v1438_v55, %v1442_v48  ;;  %v1590_v51 = vld [vmem:[%s9616_s8 + $0x5c0] sm:$0xff]  ;;  %v6131_v44 = vcombine.high %v1494_v8, %v1498_v49 }
 0x15b   :  { %6741 = vmatprep.subr.mxu1 %v753_v6  ;;  %4481 = vmatpush1.bf16.msra.mxu0 %v6090_v9  ;;  %v1434_v6 = vld [vmem:[%s9616_s8 + $0xe0] sm:$0xff] }
 0x15c   :  { %6742 = vmatpush3.msra.mxu1 %v737_v60  ;;  %4482 = vmatprep.subr.bf16.mxu0 %v6083_v54  ;;  %v6066_v60 = vcombine.low %v1430_v38, %v1434_v6  ;;  %v6067_v41 = vcombine.high %v1430_v38, %v1434_v6  ;;  %v1594_v25 = vld [vmem:[%s9616_s8 + $0x5e0] sm:$0xff] }
 0x15d   :  { %6743 = vmatprep.subr.mxu1 %v752_v23  ;;  %v1426_v23 = vld [vmem:[%s9616_s8 + $0xa0] sm:$0xff]  ;;  %v6227_v48 = vcombine.high %v1590_v51, %v1594_v25 }
 0x15e   :  { %6744 = vmatpush3.msra.mxu1 %v736_v5  ;;  %v6059_v7 = vcombine.high %v1422_v59, %v1426_v23  ;;  %v1414_v5 = vld [vmem:[%s9616_s8 + $0x40] sm:$0xff] }
 0x15f   :  { %6745 = vmatprep.subr.mxu1 %v751_v16  ;;  %4483 = vmatpush1.bf16.msra.mxu0 %v6082_v22  ;;  %v6058_v16 = vcombine.low %v1422_v59, %v1426_v23  ;;  %v6051_v17 = vcombine.high %v1414_v5, %v1418_v30  ;;  %v1486_v9 = vld [vmem:[%s9616_s8 + $0x280] sm:$0xff]  ;;  %v6130_v22 = vcombine.low %v1494_v8, %v1498_v49 }
 0x160   :  { %6746 = vmatpush3.msra.mxu1 %v735_v34  ;;  %4484 = vmatprep.subr.bf16.mxu0 %v6075_v56  ;;  %v6020_v34 = vld [vmem:[%s9617_s6] ss:$0 sm:$0xff]  ;;  %v6226_v59 = vcombine.low %v1590_v51, %v1594_v25 }
 0x161   :  { %6747 = vmatprep.subr.mxu1 %v750_v19  ;;  %v1490_v54 = vld [vmem:[%s9616_s8 + $0x2a0] sm:$0xff] }
 0x162   :  { %6748 = vmatpush3.msra.mxu1 %v734_v20  ;;  %v6050_v20 = vcombine.low %v1414_v5, %v1418_v30  ;;  %v6123_v56 = vcombine.high %v1486_v9, %v1490_v54  ;;  %v1586_v38 = vld [vmem:[%s9616_s8 + $0x5a0] sm:$0xff]  ;;  %v6122_v6 = vcombine.low %v1486_v9, %v1490_v54 }
 0x163   :  { %6749 = vmatprep.subr.mxu1 %v749_v14  ;;  %4485 = vmatpush1.bf16.msra.mxu0 %v6074_v58  ;;  %v1410_v14 = vld [vmem:[%s9616_s8 + $0x20] sm:$0xff] }
 0x164   :  { %6750 = vmatpush3.msra.mxu1 %v733_v21  ;;  %4486 = vmatprep.subr.bf16.mxu0 %v6067_v41  ;;  %v6043_v62 = vcombine.high %v1406_v4, %v1410_v14  ;;  %v1582_v58 = vld [vmem:[%s9616_s8 + $0x580] sm:$0xff] }
 0x165   :  { %6751 = vmatprep.subr.mxu1 %v748_v31  ;;  %v1526_v31 = vld [vmem:[%s9616_s8 + $0x3c0] sm:$0xff] }
 0x166   :  { %6752 = vmatpush3.msra.mxu1 %v732_v32  ;;  %v1574_v41 = vld [vmem:[%s9616_s8 + $0x540] sm:$0xff] }
 0x167   :  { %6753 = vmatprep.subr.mxu1 %v747_v15  ;;  %4487 = vmatpush1.bf16.msra.mxu0 %v6066_v60  ;;  %v6026_v15 = vcombine.low %v1071_v3, %v1071_v3  ;;  %v6219_v60 = vcombine.high %v1582_v58, %v1586_v38  ;;  %v1578_v23 = vld [vmem:[%s9616_s8 + $0x560] sm:$0xff] }
 0x168   :  { %6754 = vmatpush3.msra.mxu1 %v731_v33  ;;  %4488 = vmatprep.subr.bf16.mxu0 %v6059_v7  ;;  %v1072_v33 = vld [vmem:[%s9615_s7 + $0x10] sm:$0xff]  ;;  %v6218_v7 = vcombine.low %v1582_v58, %v1586_v38  ;;  %v6211_v5 = vcombine.high %v1574_v41, %v1578_v23  ;;  %v1566_v30 = vld [vmem:[%s9616_s8 + $0x500] sm:$0xff] }
 0x169   :  { %6755 = vmatprep.subr.mxu1 %v746_v28  ;;  %v6042_v28 = vcombine.low %v1406_v4, %v1410_v14  ;;  %v1550_v4 = vld [vmem:[%s9616_s8 + $0x480] sm:$0xff] }
 0x16a   :  { %6756 = vmatpush3.msra.mxu1 %v730_v61  ;;  %v6163_v61 = vcombine.high %v1526_v31, %v1530_v57  ;;  %v1554_v14 = vld [vmem:[%s9616_s8 + $0x4a0] sm:$0xff] }
 0x16b   :  { %6757 = vmatprep.subr.mxu1 %v745_v35  ;;  %4489 = vmatpush1.bf16.msra.mxu0 %v6058_v16  ;;  %v7060_v35 = vmov 0   ;;  %v1570_v16 = vld [vmem:[%s9616_s8 + $0x520] sm:$0xff] }
 0x16c   :  { %6758 = vmatpush3.msra.mxu1 %v729_v12  ;;  %4490 = vmatprep.subr.bf16.mxu0 %v6051_v17  ;;  %v1518_v12 = vld [vmem:[%s9616_s8 + $0x380] sm:$0xff]  ;;  %v6210_v17 = vcombine.low %v1574_v41, %v1578_v23  ;;  %v6202_v3 = vcombine.low %v1566_v30, %v1570_v16 }
 0x16d   :  { %900 = vmatmul.mubr.f32.vlgmr.msra.gmra.mxu1 %v763_v47  ;;  %6963 = vmatprep.subr.mxu1 %v7057_v63  ;;  %v1522_v47 = vld [vmem:[%s9616_s8 + $0x3a0] sm:$0xff] }
 0x16e   :  { %6964 = vmatpush3.msra.mxu1 %v905_v36  ;;  %6965 = vmatprep.mubr.msk.f32.mxu1 %vm7058_vm2, %v7057_v63  ;;  %v1104_v36 = vsel %vm308_vm0, %v6026_v15, 0  ;;  %v1534_v15 = vld [vmem:[%s9616_s8 + $0x400] sm:$0xff] }
 0x16f   :  { %6968 = vmatprep.subr.mxu1 %v7057_v63  ;;  %4491 = vmatpush1.bf16.msra.mxu0 %v6050_v20  ;;  %v1626_v8 = vld [vmem:[%s9616_s8 + $0x6e0] sm:$0xff] }
 0x170   :  { %4492 = vmatprep.subr.bf16.mxu0 %v6043_v62  ;;  %v1538_v62 = vld [vmem:[%s9616_s8 + $0x420] sm:$0xff] }
 0x171   :  { %v1470_v51 = vld [vmem:[%s9616_s8 + $0x200] sm:$0xff] }
 0x172   :  { %v1474_v25 = vld [vmem:[%s9616_s8 + $0x220] sm:$0xff] }
 0x173   :  { %4493 = vmatpush1.bf16.msra.mxu0 %v6042_v28  ;;  %v6171_v28 = vcombine.high %v1534_v15, %v1538_v62  ;;  %v6107_v9 = vcombine.high %v1470_v51, %v1474_v25  ;;  %v1618_v54 = vld [vmem:[%s9616_s8 + $0x6a0] sm:$0xff] }
 0x174   :  { %4494 = vmatprep.subr.bf16.mxu0 %v6163_v61  ;;  %v1654_v61 = vld [vmem:[%s9616_s8 + $0x7c0] sm:$0xff] }
 0x175   :  { %v7822_v58 = vld [vmem:[%s9616_s8 + $0x9c0] sm:$0xff] }
 0x1ed   :  { %v6724_v52 = vpop.f32.mrf.mxu1 }
 0x1ef   :  { %v6725_v37 = vpop.f32.mrf.mxu1 }
 0x1f0   :  { %v6726_v39 = vadd.f32 %v6725_v37, %v6724_v52  ;;  %v6029_v52 = vcombine.high %v1072_v33, %v1072_v33  ;;  %v6162_v37 = vcombine.low %v1526_v31, %v1530_v57  ;;  %v1542_v31 = vld [vmem:[%s9616_s8 + $0x440] sm:$0xff] }
 0x1f1   :  { %v1546_v57 = vld [vmem:[%s9616_s8 + $0x460] sm:$0xff] }
 0x1f2   :  { %4495 = vmatpush2.bf16.msra.mxu0 %v6162_v37 }
 0x22d   :  { %v6759_v29 = vpop.f32.mrf.mxu1 }
 0x22f   :  { %v6760_v13 = vpop.f32.mrf.mxu1 }
 0x230   :  { %v6761_v40 = vadd.f32 %v6760_v13, %v6759_v29  ;;  %v6155_v29 = vcombine.high %v1518_v12, %v1522_v47  ;;  %v1510_v13 = vld [vmem:[%s9616_s8 + $0x340] sm:$0xff] }
 0x232   :  { %v7577_v26 = vadd.f32 %v6761_v40, %v6726_v39  ;;  %v1514_v39 = vld [vmem:[%s9616_s8 + $0x360] sm:$0xff]  ;;  %v6028_v40 = vcombine.low %v1072_v33, %v1072_v33  ;;  %4496 = vmatprep.subr.bf16.mxu0 %v6155_v29  ;;  %v6178_v33 = vcombine.low %v1542_v31, %v1546_v57 }
 0x233   :  { %v6146_v46 = vcombine.low %v1510_v13, %v1514_v39  ;;  %v1638_v29 = vld [vmem:[%s9616_s8 + $0x740] sm:$0xff] }
 0x234   :  { %6966 = vmatmul.mubr.msk.f32.vlgmr.msra.gmra.mxu1 %vm911_vm3, %v7577_v26  ;;  %v1110_v11 = vsel %vm308_vm0, %v6028_v40, 0 }
 0x235   :  { %6969 = vmatpush3.msra.mxu1 %v989_v10  ;;  %6976 = vmatprep.mubr.msk.f32.mxu1 %vm7058_vm2, %v7057_v63  ;;  %v6154_v10 = vcombine.low %v1518_v12, %v1522_v47  ;;  %v6170_v12 = vcombine.low %v1534_v15, %v1538_v62 }
 0x236   :  { %6970 = vmatprep.subr.mxu1 %v7057_v63 }
 0x237   :  { %6971 = vmatpush3.msra.mxu1 %v988_v42  ;;  %v6147_v42 = vcombine.high %v1510_v13, %v1514_v39  ;;  %4497 = vmatpush2.bf16.msra.mxu0 %v6154_v10  ;;  %v1642_v13 = vld [vmem:[%s9616_s8 + $0x760] sm:$0xff] }
 0x238   :  { %6972 = vmatprep.subr.mxu1 %v7057_v63  ;;  %v6275_v40 = vcombine.high %v1638_v29, %v1642_v13  ;;  %v1634_v10 = vld [vmem:[%s9616_s8 + $0x720] sm:$0xff] }
 0x239   :  { %6973 = vmatpush3.msra.mxu1 %v987_v43  ;;  %v1502_v43 = vld [vmem:[%s9616_s8 + $0x300] sm:$0xff]  ;;  %4498 = vmatprep.subr.bf16.mxu0 %v6147_v42  ;;  %v6274_v42 = vcombine.low %v1638_v29, %v1642_v13 }
 0x23a   :  { %6974 = vmatprep.subr.mxu1 %v7057_v63  ;;  %v7674_v63 = vpack.c.bf16 %v7577_v26, %v7577_v26  ;;  %v1073_v26 = vld [vmem:[%s9615_s7 + $0x18] sm:$0xff] }
 0x23b   :  { %6975 = vmatpush3.msra.mxu1 %v986_v27  ;;  %v1506_v27 = vld [vmem:[%s9616_s8 + $0x320] sm:$0xff]  ;;  %v6030_v50 = vcombine.low %v1073_v26, %v1073_v26  ;;  %4499 = vmatpush2.bf16.msra.mxu0 %v6146_v46 }
 0x23c   :  { %6032 = vmatprep.subr.msk.bf16.mxu1 %vm308_vm0, %v6025_v45  ;;  %v6031_v45 = vcombine.high %v1073_v26, %v1073_v26  ;;  %v6139_v24 = vcombine.high %v1502_v43, %v1506_v27  ;;  %v6138_v53 = vcombine.low %v1502_v43, %v1506_v27  ;;  %v1630_v26 = vld [vmem:[%s9616_s8 + $0x700] sm:$0xff] }
 0x23d   :  { %v1116_v55 = vsel %vm308_vm0, %v6030_v50, 0  ;;  %v6267_v43 = vcombine.high %v1630_v26, %v1634_v10  ;;  %v1478_v27 = vld [vmem:[%s9616_s8 + $0x240] sm:$0xff]  ;;  %v6266_v46 = vcombine.low %v1630_v26, %v1634_v10 }
 0x23e   :  { %4500 = vmatprep.subr.bf16.mxu0 %v6139_v24 }
 0x23f   :  { %4501 = vmatpush2.bf16.msra.mxu0 %v6138_v53  ;;  %v1614_v53 = vld [vmem:[%s9616_s8 + $0x680] sm:$0xff] }
 0x240   :  { %4502 = vmatprep.subr.bf16.mxu0 %v6131_v44  ;;  %v6250_v38 = vcombine.low %v1614_v53, %v1618_v54 }
 0x243   :  { %4503 = vmatpush2.bf16.msra.mxu0 %v6130_v22  ;;  %v1606_v22 = vld [vmem:[%s9616_s8 + $0x640] sm:$0xff] }
 0x244   :  { %4504 = vmatprep.subr.bf16.mxu0 %v6123_v56  ;;  %v1610_v56 = vld [vmem:[%s9616_s8 + $0x660] sm:$0xff] }
 0x245   :  { %v6242_v23 = vcombine.low %v1606_v22, %v1610_v56 }
 0x247   :  { %4505 = vmatpush2.bf16.msra.mxu0 %v6122_v6  ;;  %v7827_v6 = vld [vmem:[%s9616_s8 + $0x9e0] sm:$0xff] }
 0x248   :  { %v6355_v41 = vcombine.high %v7822_v58, %v7827_v6 }
 0x2f4   :  { %v981_v19 = vpop.f32.mrf.mxu1 }
 0x2f5   :  { %v7652_v18 = vadd.f32 %v6020_v34, %v981_v19  ;;  %v6203_v34 = vcombine.high %v1566_v30, %v1570_v16  ;;  %v1562_v19 = vld [vmem:[%s9616_s8 + $0x4e0] sm:$0xff] }
 0x2f6   :  { %v6967_v21 = vpop.f32.mrf.mxu1  ;;  %v6195_v20 = vcombine.high %v1558_v2, %v1562_v19 }
 0x2f7   :  { %v985_v32 = vmax.f32 %v7652_v18, 0.0  ;;  %v6194_v21 = vcombine.low %v1558_v2, %v1562_v19 }
 0x2f9   :  { %5933 = vrot.lane.b32.xlu0 %v985_v32, %s7059_s4  ;;  %6977 = vmatmul.mubr.msk.f32.vlgmr.msra.gmra.mxu1 %vm995_vm4, %v985_v32  ;;  %v6186_v32 = vcombine.low %v1550_v4, %v1554_v14 }
 0x2fa   :  { %1136 = vmatpush1.bf16.msra.mxu1 %v1098_v0  ;;  %1153 = vmatprep.mubr.bf16.mxu1 %v7060_v35  ;;  %v6187_v0 = vcombine.high %v1550_v4, %v1554_v14  ;;  %v1285_v4 = vld [vmem:[%s9618_s10] ss:$8 sm:$0xf] }
 0x2fb   :  { %6034 = vmatprep.subr.msk.bf16.mxu1 %vm308_vm0, %v6027_v1  ;;  %v6179_v1 = vcombine.high %v1542_v31, %v1546_v57  ;;  %v1286_v14 = vld [vmem:[%s9618_s10] ss:$8 sm:$0xf0] }
 0x2fc   :  { %v7867_v31 = vor.u32 %v1286_v14, %v1285_v4  ;;  %v1842_v4 = vld [vmem:[%s9616_s8 + $0xda0] sm:$0xff] }
 0x2fd   :  { %6033 = vmatmul.mubr.msk.bf16.vlgmr.msra.gmra.mxu1 %vm911_vm3, %v7674_v63 }
 0x2fe   :  { %1177 = vmatpush1.bf16.msra.mxu1 %v1104_v36  ;;  %1194 = vmatprep.mubr.bf16.mxu1 %v7060_v35  ;;  %v1650_v36 = vld [vmem:[%s9616_s8 + $0x7a0] sm:$0xff] }
 0x2ff   :  { %6036 = vmatprep.subr.msk.bf16.mxu1 %vm308_vm0, %v6029_v52 }
 0x305   :  { %6035 = vmatmul.mubr.msk.bf16.vlgmr.msra.gmra.mxu1 %vm911_vm3, %v7674_v63 }
 0x306   :  { %1218 = vmatpush1.bf16.msra.mxu1 %v1110_v11  ;;  %1235 = vmatprep.mubr.bf16.mxu1 %v7060_v35  ;;  %v1482_v11 = vld [vmem:[%s9616_s8 + $0x260] sm:$0xff] }
 0x307   :  { %6038 = vmatprep.subr.msk.bf16.mxu1 %vm308_vm0, %v6031_v45  ;;  %v1622_v45 = vld [vmem:[%s9616_s8 + $0x6c0] sm:$0xff]  ;;  %v6115_v24 = vcombine.high %v1478_v27, %v1482_v11  ;;  %v6114_v49 = vcombine.low %v1478_v27, %v1482_v11 }
 0x308   :  { %v6259_v50 = vcombine.high %v1622_v45, %v1626_v8  ;;  %v6258_v44 = vcombine.low %v1622_v45, %v1626_v8 }
 0x309   :  { %4506 = vmatprep.subr.bf16.mxu0 %v6115_v24  ;;  %v1714_v24 = vld [vmem:[%s9616_s8 + $0x9a0] sm:$0xff] }
 0x30a   :  { %4507 = vmatpush2.bf16.msra.mxu0 %v6114_v49 }
 0x30b   :  { %4508 = vmatprep.subr.bf16.mxu0 %v6107_v9 }
 0x30d   :  { %6037 = vmatmul.mubr.msk.bf16.vlgmr.msra.gmra.mxu1 %vm911_vm3, %v7674_v63 }
 0x30e   :  { %1259 = vmatpush1.bf16.msra.mxu1 %v1116_v55  ;;  %1276 = vmatprep.mubr.bf16.mxu1 %v7060_v35  ;;  %v1658_v35 = vld [vmem:[%s9616_s8 + $0x7e0] sm:$0xff]  ;;  %v6106_v55 = vcombine.low %v1470_v51, %v1474_v25 }
 0x30f   :  { %4519 = vmatprep.subr.bf16.mxu1 %v6227_v48  ;;  %v6291_v47 = vcombine.high %v1654_v61, %v1658_v35  ;;  %v6290_v52 = vcombine.low %v1654_v61, %v1658_v35  ;;  %v6251_v48 = vcombine.high %v1614_v53, %v1618_v54 }
 0x310   :  { %4509 = vmatpush2.bf16.msra.mxu0 %v6106_v55 }
 0x311   :  { %4560 = vmatprep.subr.bf16.mxu0 %v6355_v41 }
 0x315   :  { %6039 = vmatmul.mubr.msk.bf16.vlgmr.msra.gmra.mxu1 %vm911_vm3, %v7674_v63  ;;  %v1646_v63 = vld [vmem:[%s9616_s8 + $0x780] sm:$0xff] }
 0x316   :  { %4520 = vmatpush1.bf16.msra.mxu1 %v6226_v59  ;;  %v6283_v37 = vcombine.high %v1646_v63, %v1650_v36  ;;  %v6282_v39 = vcombine.low %v1646_v63, %v1650_v36  ;;  %v6243_v59 = vcombine.high %v1606_v22, %v1610_v56  ;;  %v1702_v22 = vld [vmem:[%s9616_s8 + $0x940] sm:$0xff] }
 0x317   :  { %4521 = vmatprep.subr.bf16.mxu1 %v6219_v60  ;;  %v6354_v60 = vcombine.low %v7822_v58, %v7827_v6  ;;  %v1706_v56 = vld [vmem:[%s9616_s8 + $0x960] sm:$0xff] }
 0x318   :  { %v1698_v6 = vld [vmem:[%s9616_s8 + $0x920] sm:$0xff] }
 0x31a   :  { %4522 = vmatpush1.bf16.msra.mxu1 %v6218_v7  ;;  %v1598_v7 = vld [vmem:[%s9616_s8 + $0x600] sm:$0xff] }
 0x31b   :  { %4523 = vmatprep.subr.bf16.mxu1 %v6211_v5  ;;  %v1602_v5 = vld [vmem:[%s9616_s8 + $0x620] sm:$0xff] }
 0x31c   :  { %v6235_v30 = vcombine.high %v1598_v7, %v1602_v5  ;;  %v6234_v16 = vcombine.low %v1598_v7, %v1602_v5 }
 0x31e   :  { %4524 = vmatpush1.bf16.msra.mxu1 %v6210_v17  ;;  %v7842_v17 = vld [vmem:[%s9616_s8 + $0xdc0] sm:$0xff] }
 0x31f   :  { %4525 = vmatprep.subr.bf16.mxu1 %v6203_v34  ;;  %v7847_v34 = vld [vmem:[%s9616_s8 + $0xde0] sm:$0xff] }
 0x320   :  { %v6482_v2 = vcombine.low %v7842_v17, %v7847_v34  ;;  %v6483_v19 = vcombine.high %v7842_v17, %v7847_v34  ;;  %v1682_v34 = vld [vmem:[%s9616_s8 + $0x8a0] sm:$0xff] }
 0x322   :  { %4526 = vmatpush1.bf16.msra.mxu1 %v6202_v3  ;;  %v1289_v3 = vlaneseq }
 0x323   :  { %4527 = vmatprep.subr.bf16.mxu1 %v6195_v20 }
 0x324   :  { %v7853_v20 = vshrl.u32 %v1289_v3, 7 }
 0x326   :  { %4528 = vmatpush1.bf16.msra.mxu1 %v6194_v21  ;;  %v6040_v21 = vld [vmem:[%s9618_s10 + $0x1] ss:$8 sm:$0xf]  ;;  %v7870_v57 = vsub.s32 0, %v7853_v20  ;;  %v7878_v15 = vsub.s32 1, %v7853_v20  ;;  %v7911_v25 = vsub.s32 4, %v7853_v20 }
 0x327   :  { %4529 = vmatprep.subr.bf16.mxu1 %v6187_v0  ;;  %v6041_v0 = vld [vmem:[%s9618_s10 + $0x1] ss:$8 sm:$0xf0] }
 0x32a   :  { %4530 = vmatpush1.bf16.msra.mxu1 %v6186_v32  ;;  %v6022_v32 = vld [vmem:[%s9617_s6 + $0x1] ss:$0 sm:$0xff] }
 0x32b   :  { %4531 = vmatprep.subr.bf16.mxu1 %v6179_v1  ;;  %v7875_v1 = vor.u32 %v6041_v0, %v6040_v21  ;;  %v6338_v21 = vcombine.low %v1702_v22, %v1706_v56 }
 0x32d   :  { %v1345_v35 = vrot.slane %v7875_v1, %v7870_v57  ;;  %v1349_v36 = vrot.slane %v7875_v1, %v7878_v15  ;;  %v1361_v3 = vrot.slane %v7875_v1, %v7911_v25 }
 0x32e   :  { %4532 = vmatpush1.bf16.msra.mxu1 %v6178_v33 }
 0x32f   :  { %4533 = vmatprep.subr.bf16.mxu1 %v6171_v28  ;;  %v1292_v28 = vrot.slane %v7867_v31, %v7870_v57 }
 0x332   :  { %4534 = vmatpush1.bf16.msra.mxu1 %v6170_v12  ;;  %v1296_v12 = vrot.slane %v7867_v31, %v7878_v15 }
 0x333   :  { %4535 = vmatprep.subr.bf16.mxu1 %v6291_v47 }
 0x336   :  { %4536 = vmatpush2.bf16.msra.mxu1 %v6290_v52  ;;  %v7889_v52 = vsub.s32 2, %v7853_v20 }
 0x337   :  { %4537 = vmatprep.subr.bf16.mxu1 %v6283_v37 }
 0x338   :  { %v1300_v10 = vrot.slane %v7867_v31, %v7889_v52  ;;  %v1353_v11 = vrot.slane %v7875_v1, %v7889_v52 }
 0x33a   :  { %4538 = vmatpush2.bf16.msra.mxu1 %v6282_v39  ;;  %v7892_v39 = vsub.s32 3, %v7853_v20 }
 0x33b   :  { %4539 = vmatprep.subr.bf16.mxu1 %v6275_v40 }
 0x33c   :  { %v1304_v45 = vrot.slane %v7867_v31, %v7892_v39  ;;  %v1357_v51 = vrot.slane %v7875_v1, %v7892_v39 }
 0x33e   :  { %4540 = vmatpush2.bf16.msra.mxu1 %v6274_v42 }
 0x33f   :  { %4541 = vmatprep.subr.bf16.mxu1 %v6267_v43 }
 0x342   :  { %4542 = vmatpush2.bf16.msra.mxu1 %v6266_v46  ;;  %v1710_v46 = vld [vmem:[%s9616_s8 + $0x980] sm:$0xff] }
 0x343   :  { %4543 = vmatprep.subr.bf16.mxu1 %v6259_v50  ;;  %v6347_v9 = vcombine.high %v1710_v46, %v1714_v24  ;;  %v6346_v41 = vcombine.low %v1710_v46, %v1714_v24  ;;  %v1678_v46 = vld [vmem:[%s9616_s8 + $0x880] sm:$0xff] }
 0x346   :  { %4544 = vmatpush2.bf16.msra.mxu1 %v6258_v44 }
 0x347   :  { %4545 = vmatprep.subr.bf16.mxu1 %v6251_v48  ;;  %v7917_v48 = vsub.s32 5, %v7853_v20 }
 0x349   :  { %v1312_v58 = vrot.slane %v7867_v31, %v7917_v48 }
 0x34a   :  { %4546 = vmatpush2.bf16.msra.mxu1 %v6250_v38 }
 0x34b   :  { %4547 = vmatprep.subr.bf16.mxu1 %v6243_v59 }
 0x34e   :  { %4548 = vmatpush2.bf16.msra.mxu1 %v6242_v23  ;;  %v1308_v23 = vrot.slane %v7867_v31, %v7911_v25 }
 0x34f   :  { %4549 = vmatprep.subr.bf16.mxu1 %v6235_v30  ;;  %v6339_v30 = vcombine.high %v1702_v22, %v1706_v56  ;;  %v6315_v56 = vcombine.high %v1678_v46, %v1682_v34 }
 0x352   :  { %4550 = vmatpush2.bf16.msra.mxu1 %v6234_v16  ;;  %v1694_v16 = vld [vmem:[%s9616_s8 + $0x900] sm:$0xff] }
 0x353   :  { %4601 = vmatprep.subr.bf16.mxu1 %v6483_v19 }
 0x3b9   :  { %v1065_v62 = vpop.f32.mrf.mxu1 }
 0x3ba   :  { %v1066_v33 = vadd.f32 %v6022_v32, %v1065_v62  ;;  %v1365_v62 = vrot.slane %v7875_v1, %v7917_v48 }
 0x3bb   :  { %v6978_v61 = vpop.f32.mrf.mxu1 }
 0x3bc   :  { %5937 = vrot.lane.b32.xlu0 %v1066_v33, %s7061_s15  ;;  %v7952_v33 = vsub.s32 6, %v7853_v20 }
 0x3bd   :  { %v1155_v47 = vpop.f32.mrf.mxu1 }
 0x3be   :  { %v1329_v63 = vmul.f32 %v1292_v28, %v1155_v47  ;;  %v1686_v47 = vld [vmem:[%s9616_s8 + $0x8c0] sm:$0xff] }
 0x3bf   :  { %v1157_v37 = vpop.f32.mrf.mxu1 }
 0x3c0   :  { %v1382_v29 = vadd.f32 %v1345_v35, %v1329_v63  ;;  %v1330_v13 = vmul.f32 %v1296_v12, %v1157_v37  ;;  %v6331_v35 = vcombine.high %v1694_v16, %v1698_v6  ;;  %v7963_v37 = vsub.s32 7, %v7853_v20 }
 0x3c1   :  { %v1159_v40 = vpop.f32.mrf.mxu1 }
 0x3c2   :  { %v1383_v26 = vadd.f32 %v1349_v36, %v1330_v13  ;;  %v1390_v42 = vmax.f32 %v1382_v29, 0.0  ;;  %v1690_v29 = vld [vmem:[%s9616_s8 + $0x8e0] sm:$0xff]  ;;  %v1320_v17 = vrot.slane %v7867_v31, %v7963_v37 }
 0x3c3   :  { %v1160_v43 = vpop.f32.mrf.mxu1  ;;  %v1830_v13 = vld [vmem:[%s9616_s8 + $0xd40] sm:$0xff] }
 0x3c4   :  { %v1391_v27 = vmax.f32 %v1383_v26, 0.0  ;;  %v7913_v53 = vpack.c.bf16 %v1390_v42, %v1390_v42  ;;  %v1834_v40 = vld [vmem:[%s9616_s8 + $0xd60] sm:$0xff]  ;;  %v1316_v43 = vrot.slane %v7867_v31, %v7952_v33  ;;  %v1373_v31 = vrot.slane %v7875_v1, %v7963_v37 }
 0x3c5   :  { %v1196_v8 = vpop.f32.mrf.mxu1 }
 0x3c6   :  { %v7906_v49 = vpack.c.bf16 %v1391_v27, %v1391_v27  ;;  %v1331_v50 = vmul.f32 %v1300_v10, %v1196_v8  ;;  %v6330_v10 = vcombine.low %v1694_v16, %v1698_v6  ;;  %v1369_v8 = vrot.slane %v7875_v1, %v7952_v33  ;;  %v1814_v1 = vld [vmem:[%s9616_s8 + $0xcc0] sm:$0xff] }
 0x3c7   :  { %v1198_v44 = vpop.f32.mrf.mxu1 }
 0x3c8   :  { %v1384_v54 = vadd.f32 %v1353_v11, %v1331_v50  ;;  %v1332_v55 = vmul.f32 %v1304_v45, %v1198_v44  ;;  %4510 = vmatprep.mubr.bf16.mxu0 %v7906_v49  ;;  %v6323_v11 = vcombine.high %v1686_v47, %v1690_v29  ;;  %v6467_v45 = vcombine.high %v1830_v13, %v1834_v40  ;;  %v1826_v50 = vld [vmem:[%s9616_s8 + $0xd20] sm:$0xff] }
 0x3c9   :  { %v1200_v38 = vpop.f32.mrf.mxu1  ;;  %4511 = vmatmul.mubr.bf16.vlgmr.msra.gmra.mxu0 %v7913_v53  ;;  %v6322_v44 = vcombine.low %v1686_v47, %v1690_v29  ;;  %v1782_v29 = vld [vmem:[%s9616_s8 + $0xbc0] sm:$0xff] }
 0x3ca   :  { %v1385_v59 = vadd.f32 %v1357_v51, %v1332_v55  ;;  %4561 = vmatpush1.bf16.msra.mxu0 %v6354_v60  ;;  %v1392_v7 = vmax.f32 %v1384_v54, 0.0  ;;  %v1838_v60 = vld [vmem:[%s9616_s8 + $0xd80] sm:$0xff] }
 0x3cb   :  { %v1201_v5 = vpop.f32.mrf.mxu1  ;;  %4562 = vmatprep.subr.bf16.mxu0 %v6347_v9  ;;  %v6475_v12 = vcombine.high %v1838_v60, %v1842_v4  ;;  %v6474_v20 = vcombine.low %v1838_v60, %v1842_v4  ;;  %v6466_v9 = vcombine.low %v1830_v13, %v1834_v40  ;;  %v1662_v4 = vld [vmem:[%s9616_s8 + $0x800] sm:$0xff] }
 0x3cc   :  { %v1393_v19 = vmax.f32 %v1385_v59, 0.0  ;;  %v7954_v28 = vpack.c.bf16 %v1392_v7, %v1392_v7  ;;  %v1670_v59 = vld [vmem:[%s9616_s8 + $0x840] sm:$0xff] }
 0x3cd   :  { %v1237_v14 = vpop.f32.mrf.mxu1  ;;  %v1674_v7 = vld [vmem:[%s9616_s8 + $0x860] sm:$0xff] }
 0x3ce   :  { %v7947_v0 = vpack.c.bf16 %v1393_v19, %v1393_v19  ;;  %v1333_v32 = vmul.f32 %v1308_v23, %v1237_v14  ;;  %4563 = vmatpush1.bf16.msra.mxu0 %v6346_v41  ;;  %v1818_v5 = vld [vmem:[%s9616_s8 + $0xce0] sm:$0xff]  ;;  %v6314_v19 = vcombine.low %v1678_v46, %v1682_v34  ;;  %v6307_v6 = vcombine.high %v1670_v59, %v1674_v7 }
 0x3cf   :  { %v1239_v61 = vpop.f32.mrf.mxu1  ;;  %4564 = vmatprep.subr.bf16.mxu0 %v6339_v30  ;;  %v6451_v60 = vcombine.high %v1814_v1, %v1818_v5  ;;  %v1786_v13 = vld [vmem:[%s9616_s8 + $0xbe0] sm:$0xff] }
 0x3d0   :  { %v7959_v63 = vadd.f32 %v1361_v3, %v1333_v32  ;;  %v1334_v36 = vmul.f32 %v1312_v58, %v1239_v61  ;;  %4551 = vmatprep.mubr.bf16.mxu1 %v7947_v0  ;;  %v1806_v32 = vld [vmem:[%s9616_s8 + $0xc80] sm:$0xff] }
 0x3d1   :  { %v1241_v26 = vpop.f32.mrf.mxu1  ;;  %4552 = vmatmul.mubr.bf16.vlgmr.msra.gmra.mxu1 %v7954_v28  ;;  %v1798_v40 = vld [vmem:[%s9616_s8 + $0xc40] sm:$0xff] }
 0x3d2   :  { %v1387_v42 = vadd.f32 %v1365_v62, %v1334_v36  ;;  %4565 = vmatpush1.bf16.msra.mxu0 %v6338_v21  ;;  %4602 = vmatpush1.bf16.msra.mxu1 %v6482_v2  ;;  %v1822_v2 = vld [vmem:[%s9616_s8 + $0xd00] sm:$0xff] }
 0x3d3   :  { %v1242_v27 = vpop.f32.mrf.mxu1  ;;  %4566 = vmatprep.subr.bf16.mxu0 %v6331_v35  ;;  %4603 = vmatprep.subr.bf16.mxu1 %v6475_v12  ;;  %v6459_v38 = vcombine.high %v1822_v2, %v1826_v50  ;;  %v6458_v3 = vcombine.low %v1822_v2, %v1826_v50  ;;  %v1666_v21 = vld [vmem:[%s9616_s8 + $0x820] sm:$0xff]  ;;  %v6306_v35 = vcombine.low %v1670_v59, %v1674_v7 }
 0x3d4   :  { %v1395_v24 = vmax.f32 %v1387_v42, 0.0  ;;  %v1810_v62 = vld [vmem:[%s9616_s8 + $0xca0] sm:$0xff]  ;;  %v6450_v12 = vcombine.low %v1814_v1, %v1818_v5  ;;  %v6299_v47 = vcombine.high %v1662_v4, %v1666_v21 }
 0x3d5   :  { %v1278_v51 = vpop.f32.mrf.mxu1  ;;  %v6443_v36 = vcombine.high %v1806_v32, %v1810_v62  ;;  %v1802_v26 = vld [vmem:[%s9616_s8 + $0xc60] sm:$0xff]  ;;  %v6442_v42 = vcombine.low %v1806_v32, %v1810_v62 }
 0x3d6   :  { %v7996_v54 = vpack.c.bf16 %v1395_v24, %v1395_v24  ;;  %v1335_v55 = vmul.f32 %v1316_v43, %v1278_v51  ;;  %4567 = vmatpush1.bf16.msra.mxu0 %v6330_v10  ;;  %4604 = vmatpush1.bf16.msra.mxu1 %v6474_v20  ;;  %v6298_v10 = vcombine.low %v1662_v4, %v1666_v21  ;;  %v1774_v27 = vld [vmem:[%s9616_s8 + $0xb80] sm:$0xff] }
 0x3d7   :  { %v1280_v22 = vpop.f32.mrf.mxu1  ;;  %4568 = vmatprep.subr.bf16.mxu0 %v6323_v11  ;;  %4605 = vmatprep.subr.bf16.mxu1 %v6467_v45  ;;  %v6419_v20 = vcombine.high %v1782_v29, %v1786_v13  ;;  %v6435_v43 = vcombine.high %v1798_v40, %v1802_v26  ;;  %v1778_v11 = vld [vmem:[%s9616_s8 + $0xba0] sm:$0xff]  ;;  %v6418_v24 = vcombine.low %v1782_v29, %v1786_v13 }
 0x3d8   :  { %v8003_v41 = vadd.f32 %v1369_v8, %v1335_v55  ;;  %v1336_v23 = vmul.f32 %v1320_v17, %v1280_v22  ;;  %4592 = vmatprep.mubr.bf16.mxu0 %v7996_v54  ;;  %v1790_v45 = vld [vmem:[%s9616_s8 + $0xc00] sm:$0xff]  ;;  %v6434_v8 = vcombine.low %v1798_v40, %v1802_v26  ;;  %v6411_v17 = vcombine.high %v1774_v27, %v1778_v11 }
 0x3d9   :  { %v1282_v30 = vpop.f32.mrf.mxu1  ;;  %v1794_v46 = vld [vmem:[%s9616_s8 + $0xc20] sm:$0xff] }
 0x3da   :  { %v1389_v16 = vadd.f32 %v1373_v31, %v1336_v23  ;;  %4569 = vmatpush1.bf16.msra.mxu0 %v6322_v44  ;;  %4606 = vmatpush1.bf16.msra.mxu1 %v6466_v9  ;;  %v6427_v34 = vcombine.high %v1790_v45, %v1794_v46  ;;  %v1766_v2 = vld [vmem:[%s9616_s8 + $0xb40] sm:$0xff]  ;;  %v6410_v9 = vcombine.low %v1774_v27, %v1778_v11 }
 0x3db   :  { %v1283_v58 = vpop.f32.mrf.mxu1  ;;  %4570 = vmatprep.subr.bf16.mxu0 %v6315_v56  ;;  %4607 = vmatprep.subr.bf16.mxu1 %v6459_v38  ;;  %v1770_v50 = vld [vmem:[%s9616_s8 + $0xb60] sm:$0xff]  ;;  %v6426_v55 = vcombine.low %v1790_v45, %v1794_v46 }
 0x3dc   :  { %v1397_v14 = vmax.f32 %v1389_v16, 0.0  ;;  %v1910_v51 = vld [vmem:[%s9616_s8 + $0xfc0] sm:$0xff]  ;;  %v6403_v31 = vcombine.high %v1766_v2, %v1770_v50  ;;  %v6402_v7 = vcombine.low %v1766_v2, %v1770_v50 }
 0x3dd   :  { %v1914_v44 = vld [vmem:[%s9616_s8 + $0xfe0] sm:$0xff] }
 0x3de   :  { %v8027_v61 = vpack.c.bf16 %v1397_v14, %v1397_v14  ;;  %4571 = vmatpush1.bf16.msra.mxu0 %v6314_v19  ;;  %4608 = vmatpush1.bf16.msra.mxu1 %v6458_v3  ;;  %v6547_v22 = vcombine.high %v1910_v51, %v1914_v44  ;;  %v1758_v56 = vld [vmem:[%s9616_s8 + $0xb00] sm:$0xff]  ;;  %v6546_v1 = vcombine.low %v1910_v51, %v1914_v44  ;;  %v1463_v44 = vld [vmem:[%s9616_s8 + $0x1c8] sm:$0xff] }
 0x3df   :  { %4572 = vmatprep.subr.bf16.mxu0 %v6307_v6  ;;  %4609 = vmatprep.subr.bf16.mxu1 %v6451_v60  ;;  %v1762_v38 = vld [vmem:[%s9616_s8 + $0xb20] sm:$0xff] }
 0x3e0   :  { %4633 = vmatprep.mubr.bf16.mxu1 %v8027_v61  ;;  %v1902_v59 = vld [vmem:[%s9616_s8 + $0xf80] sm:$0xff]  ;;  %v6395_v5 = vcombine.high %v1758_v56, %v1762_v38  ;;  %v6394_v6 = vcombine.low %v1758_v56, %v1762_v38 }
 0x3e1   :  { %v1906_v23 = vld [vmem:[%s9616_s8 + $0xfa0] sm:$0xff] }
 0x3e2   :  { %4573 = vmatpush1.bf16.msra.mxu0 %v6306_v35  ;;  %4610 = vmatpush1.bf16.msra.mxu1 %v6450_v12  ;;  %v6539_v30 = vcombine.high %v1902_v59, %v1906_v23  ;;  %v1750_v16 = vld [vmem:[%s9616_s8 + $0xac0] sm:$0xff]  ;;  %v6538_v60 = vcombine.low %v1902_v59, %v1906_v23 }
 0x3e3   :  { %4574 = vmatprep.subr.bf16.mxu0 %v6299_v47  ;;  %4611 = vmatprep.subr.bf16.mxu1 %v6443_v36  ;;  %v1754_v19 = vld [vmem:[%s9616_s8 + $0xae0] sm:$0xff] }
 0x3e4   :  { %v1894_v3 = vld [vmem:[%s9616_s8 + $0xf40] sm:$0xff]  ;;  %v6387_v4 = vcombine.high %v1750_v16, %v1754_v19  ;;  %v6386_v12 = vcombine.low %v1750_v16, %v1754_v19  ;;  %v1447_v19 = vld [vmem:[%s9616_s8 + $0x148] sm:$0xff] }
 0x3e5   :  { %v1898_v58 = vld [vmem:[%s9616_s8 + $0xf60] sm:$0xff] }
 0x3e6   :  { %4575 = vmatpush1.bf16.msra.mxu0 %v6298_v10  ;;  %4612 = vmatpush1.bf16.msra.mxu1 %v6442_v42  ;;  %v6531_v14 = vcombine.high %v1894_v3, %v1898_v58  ;;  %v1742_v21 = vld [vmem:[%s9616_s8 + $0xa80] sm:$0xff]  ;;  %v6530_v47 = vcombine.low %v1894_v3, %v1898_v58  ;;  %v1451_v58 = vld [vmem:[%s9616_s8 + $0x168] sm:$0xff] }
 0x3e7   :  { %4576 = vmatprep.subr.bf16.mxu0 %v6419_v20  ;;  %4613 = vmatprep.subr.bf16.mxu1 %v6435_v43  ;;  %v1746_v32 = vld [vmem:[%s9616_s8 + $0xaa0] sm:$0xff] }
 0x3e8   :  { %v1886_v62 = vld [vmem:[%s9616_s8 + $0xf00] sm:$0xff]  ;;  %v6379_v36 = vcombine.high %v1742_v21, %v1746_v32  ;;  %v6378_v42 = vcombine.low %v1742_v21, %v1746_v32  ;;  %v1396_v21 = vmax.f32 %v8003_v41, 0.0  ;;  %v6085_v32 = vcombine.high %v1447_v19, %v1451_v58  ;;  %v1587_v41 = vld [vmem:[%s9616_s8 + $0x5a8] sm:$0xff] }
 0x3e9   :  { %v1890_v35 = vld [vmem:[%s9616_s8 + $0xf20] sm:$0xff] }
 0x3ea   :  { %4577 = vmatpush2.bf16.msra.mxu0 %v6418_v24  ;;  %4614 = vmatpush1.bf16.msra.mxu1 %v6434_v8  ;;  %v6523_v29 = vcombine.high %v1886_v62, %v1890_v35  ;;  %v1734_v13 = vld [vmem:[%s9616_s8 + $0xa40] sm:$0xff]  ;;  %v6522_v20 = vcombine.low %v1886_v62, %v1890_v35  ;;  %v1439_v35 = vld [vmem:[%s9616_s8 + $0x108] sm:$0xff] }
 0x3eb   :  { %4578 = vmatprep.subr.bf16.mxu0 %v6411_v17  ;;  %4615 = vmatprep.subr.bf16.mxu1 %v6427_v34  ;;  %v1738_v40 = vld [vmem:[%s9616_s8 + $0xa60] sm:$0xff] }
 0x3ec   :  { %v1878_v26 = vld [vmem:[%s9616_s8 + $0xec0] sm:$0xff]  ;;  %v6371_v43 = vcombine.high %v1734_v13, %v1738_v40  ;;  %v6370_v8 = vcombine.low %v1734_v13, %v1738_v40  ;;  %v8180_v13 = vpack.c.bf16 %v1396_v21, %v1396_v21 }
 0x3ed   :  { %v1882_v10 = vld [vmem:[%s9616_s8 + $0xee0] sm:$0xff] }
 0x3ee   :  { %4579 = vmatpush2.bf16.msra.mxu0 %v6410_v9  ;;  %4616 = vmatpush1.bf16.msra.mxu1 %v6426_v55  ;;  %v6515_v27 = vcombine.high %v1878_v26, %v1882_v10  ;;  %v1726_v11 = vld [vmem:[%s9616_s8 + $0xa00] sm:$0xff]  ;;  %v6514_v17 = vcombine.low %v1878_v26, %v1882_v10  ;;  %v1467_v9 = vld [vmem:[%s9616_s8 + $0x1e8] sm:$0xff] }
 0x3ef   :  { %4580 = vmatprep.subr.bf16.mxu0 %v6403_v31  ;;  %4617 = vmatprep.subr.bf16.mxu1 %v6547_v22  ;;  %v1730_v45 = vld [vmem:[%s9616_s8 + $0xa20] sm:$0xff]  ;;  %v1394_v22 = vmax.f32 %v7959_v63, 0.0  ;;  %v6101_v38 = vcombine.high %v1463_v44, %v1467_v9  ;;  %v1459_v63 = vld [vmem:[%s9616_s8 + $0x1a8] sm:$0xff] }
 0x3f0   :  { %v1870_v46 = vld [vmem:[%s9616_s8 + $0xe80] sm:$0xff]  ;;  %v6363_v34 = vcombine.high %v1726_v11, %v1730_v45  ;;  %v6362_v55 = vcombine.low %v1726_v11, %v1730_v45  ;;  %v1431_v26 = vld [vmem:[%s9616_s8 + $0xc8] sm:$0xff] }
 0x3f1   :  { %v1874_v24 = vld [vmem:[%s9616_s8 + $0xea0] sm:$0xff] }
 0x3f2   :  { %4581 = vmatpush2.bf16.msra.mxu0 %v6402_v7  ;;  %4618 = vmatpush2.bf16.msra.mxu1 %v6546_v1  ;;  %v6507_v2 = vcombine.high %v1870_v46, %v1874_v24  ;;  %v1862_v50 = vld [vmem:[%s9616_s8 + $0xe40] sm:$0xff]  ;;  %v6506_v31 = vcombine.low %v1870_v46, %v1874_v24  ;;  %v1455_v7 = vld [vmem:[%s9616_s8 + $0x188] sm:$0xff] }
 0x3f3   :  { %4582 = vmatprep.subr.bf16.mxu0 %v6395_v5  ;;  %4619 = vmatprep.subr.bf16.mxu1 %v6539_v30  ;;  %v1866_v51 = vld [vmem:[%s9616_s8 + $0xe60] sm:$0xff]  ;;  %v6100_v5 = vcombine.low %v1463_v44, %v1467_v9  ;;  %v8151_v30 = vpack.c.bf16 %v1394_v22, %v1394_v22  ;;  %v6093_v3 = vcombine.high %v1455_v7, %v1459_v63  ;;  %v1423_v24 = vld [vmem:[%s9616_s8 + $0x88] sm:$0xff] }
 0x3f4   :  { %v6499_v56 = vcombine.high %v1862_v50, %v1866_v51  ;;  %v1854_v59 = vld [vmem:[%s9616_s8 + $0xe00] sm:$0xff]  ;;  %v6498_v1 = vcombine.low %v1862_v50, %v1866_v51  ;;  %v1415_v9 = vld [vmem:[%s9616_s8 + $0x48] sm:$0xff] }
 0x3f5   :  { %v1858_v23 = vld [vmem:[%s9616_s8 + $0xe20] sm:$0xff]  ;;  %v1563_v22 = vld [vmem:[%s9616_s8 + $0x4e8] sm:$0xff] }
 0x3f6   :  { %4583 = vmatpush2.bf16.msra.mxu0 %v6394_v6  ;;  %4620 = vmatpush2.bf16.msra.mxu1 %v6538_v60  ;;  %v6491_v16 = vcombine.high %v1854_v59, %v1858_v23  ;;  %v1591_v6 = vld [vmem:[%s9616_s8 + $0x5c8] sm:$0xff] }
 0x3f7   :  { %4584 = vmatprep.subr.bf16.mxu0 %v6387_v4  ;;  %4621 = vmatprep.subr.bf16.mxu1 %v6531_v14  ;;  %v1595_v60 = vld [vmem:[%s9616_s8 + $0x5e8] sm:$0xff]  ;;  %v6490_v4 = vcombine.low %v1854_v59, %v1858_v23  ;;  %v6092_v14 = vcombine.low %v1455_v7, %v1459_v63 }
 0x3f8   :  { %v6229_v62 = vcombine.high %v1591_v6, %v1595_v60  ;;  %v1407_v7 = vld [vmem:[%s9616_s8 + $0x8] sm:$0xff] }
 0x3f9   :  { %v1411_v63 = vld [vmem:[%s9616_s8 + $0x28] sm:$0xff] }
 0x3fa   :  { %4585 = vmatpush2.bf16.msra.mxu0 %v6386_v12  ;;  %4622 = vmatpush2.bf16.msra.mxu1 %v6530_v47  ;;  %v1443_v12 = vld [vmem:[%s9616_s8 + $0x128] sm:$0xff]  ;;  %v6044_v21 = vcombine.low %v1407_v7, %v1411_v63 }
 0x3fb   :  { %4586 = vmatprep.subr.bf16.mxu0 %v6379_v36  ;;  %4623 = vmatprep.subr.bf16.mxu1 %v6523_v29  ;;  %v1583_v47 = vld [vmem:[%s9616_s8 + $0x588] sm:$0xff]  ;;  %v6084_v36 = vcombine.low %v1447_v19, %v1451_v58  ;;  %v6228_v29 = vcombine.low %v1591_v6, %v1595_v60  ;;  %v6077_v40 = vcombine.high %v1439_v35, %v1443_v12 }
 0x3fc   :  { %v6221_v10 = vcombine.high %v1583_v47, %v1587_v41  ;;  %v6220_v11 = vcombine.low %v1583_v47, %v1587_v41  ;;  %v1527_v6 = vld [vmem:[%s9616_s8 + $0x3c8] sm:$0xff] }
 0x3fd   :  { %v1531_v60 = vld [vmem:[%s9616_s8 + $0x3e8] sm:$0xff] }
 0x3fe   :  { %4587 = vmatpush2.bf16.msra.mxu0 %v6378_v42  ;;  %4624 = vmatpush2.bf16.msra.mxu1 %v6522_v20  ;;  %v1435_v42 = vld [vmem:[%s9616_s8 + $0xe8] sm:$0xff] }
 0x3ff   :  { %4588 = vmatprep.subr.bf16.mxu0 %v6371_v43  ;;  %4625 = vmatprep.subr.bf16.mxu1 %v6515_v27  ;;  %v1575_v20 = vld [vmem:[%s9616_s8 + $0x548] sm:$0xff]  ;;  %v6076_v27 = vcombine.low %v1439_v35, %v1443_v12  ;;  %v6069_v45 = vcombine.high %v1431_v26, %v1435_v42 }
 0x400   :  { %v1579_v43 = vld [vmem:[%s9616_s8 + $0x568] sm:$0xff] }
 0x401   :  { %v6213_v46 = vcombine.high %v1575_v20, %v1579_v43  ;;  %v6212_v50 = vcombine.low %v1575_v20, %v1579_v43  ;;  %v1519_v12 = vld [vmem:[%s9616_s8 + $0x388] sm:$0xff] }
 0x402   :  { %4589 = vmatpush2.bf16.msra.mxu0 %v6370_v8  ;;  %4626 = vmatpush2.bf16.msra.mxu1 %v6514_v17  ;;  %v1427_v8 = vld [vmem:[%s9616_s8 + $0xa8] sm:$0xff] }
 0x403   :  { %4590 = vmatprep.subr.bf16.mxu0 %v6363_v34  ;;  %4627 = vmatprep.subr.bf16.mxu1 %v6507_v2  ;;  %v1567_v17 = vld [vmem:[%s9616_s8 + $0x508] sm:$0xff]  ;;  %v6068_v2 = vcombine.low %v1431_v26, %v1435_v42  ;;  %v6061_v51 = vcombine.high %v1423_v24, %v1427_v8 }
 0x404   :  { %v1571_v34 = vld [vmem:[%s9616_s8 + $0x528] sm:$0xff] }
 0x405   :  { %v6205_v44 = vcombine.high %v1567_v17, %v1571_v34  ;;  %v1523_v47 = vld [vmem:[%s9616_s8 + $0x3a8] sm:$0xff] }
 0x406   :  { %4591 = vmatpush2.bf16.msra.mxu0 %v6362_v55  ;;  %4628 = vmatpush2.bf16.msra.mxu1 %v6506_v31  ;;  %v1419_v55 = vld [vmem:[%s9616_s8 + $0x68] sm:$0xff]  ;;  %v6157_v26 = vcombine.high %v1519_v12, %v1523_v47 }
 0x407   :  { %4629 = vmatprep.subr.bf16.mxu1 %v6499_v56  ;;  %4642 = vmatprep.subr.bf16.mxu0 %v6101_v38  ;;  %v1559_v31 = vld [vmem:[%s9616_s8 + $0x4c8] sm:$0xff]  ;;  %v6060_v56 = vcombine.low %v1423_v24, %v1427_v8  ;;  %v6204_v38 = vcombine.low %v1567_v17, %v1571_v34  ;;  %v6053_v59 = vcombine.high %v1415_v9, %v1419_v55 }
 0x408   :  { %v6197_v23 = vcombine.high %v1559_v31, %v1563_v22  ;;  %v6196_v19 = vcombine.low %v1559_v31, %v1563_v22  ;;  %v1535_v41 = vld [vmem:[%s9616_s8 + $0x408] sm:$0xff] }
 0x409   :  { %4593 = vmatmul.mubr.bf16.vlgmr.msra.gmra.mxu0 %v8151_v30  ;;  %v1511_v42 = vld [vmem:[%s9616_s8 + $0x348] sm:$0xff] }
 0x40a   :  { %4630 = vmatpush2.bf16.msra.mxu1 %v6498_v1  ;;  %4643 = vmatpush1.bf16.msra.mxu0 %v6100_v5  ;;  %v1551_v1 = vld [vmem:[%s9616_s8 + $0x488] sm:$0xff] }
 0x40b   :  { %4674 = vmatprep.mubr.bf16.mxu0 %v7906_v49  ;;  %4631 = vmatprep.subr.bf16.mxu1 %v6491_v16  ;;  %v1555_v5 = vld [vmem:[%s9616_s8 + $0x4a8] sm:$0xff]  ;;  %v6052_v16 = vcombine.low %v1415_v9, %v1419_v55 }
 0x40c   :  { %4644 = vmatprep.subr.bf16.mxu0 %v6093_v3  ;;  %v6045_v3 = vcombine.high %v1407_v7, %v1411_v63  ;;  %v6189_v58 = vcombine.high %v1551_v1, %v1555_v5  ;;  %v1515_v20 = vld [vmem:[%s9616_s8 + $0x368] sm:$0xff] }
 0x40d   :  { %v1655_v43 = vld [vmem:[%s9616_s8 + $0x7c8] sm:$0xff] }
 0x40e   :  { %4632 = vmatpush2.bf16.msra.mxu1 %v6490_v4  ;;  %4645 = vmatpush1.bf16.msra.mxu0 %v6092_v14  ;;  %v1543_v4 = vld [vmem:[%s9616_s8 + $0x448] sm:$0xff] }
 0x40f   :  { %4646 = vmatprep.subr.bf16.mxu0 %v6085_v32  ;;  %4683 = vmatprep.subr.bf16.mxu1 %v6229_v62  ;;  %v1547_v14 = vld [vmem:[%s9616_s8 + $0x468] sm:$0xff]  ;;  %v6188_v32 = vcombine.low %v1551_v1, %v1555_v5  ;;  %v6165_v62 = vcombine.high %v1527_v6, %v1531_v60 }
 0x410   :  { %v6181_v35 = vcombine.high %v1543_v4, %v1547_v14  ;;  %v1503_v8 = vld [vmem:[%s9616_s8 + $0x308] sm:$0xff] }
 0x411   :  { %4634 = vmatmul.mubr.bf16.vlgmr.msra.gmra.mxu1 %v8180_v13  ;;  %v1507_v17 = vld [vmem:[%s9616_s8 + $0x328] sm:$0xff] }
 0x412   :  { %4647 = vmatpush1.bf16.msra.mxu0 %v6084_v36  ;;  %4684 = vmatpush1.bf16.msra.mxu1 %v6228_v29  ;;  %v1539_v36 = vld [vmem:[%s9616_s8 + $0x428] sm:$0xff]  ;;  %v6164_v29 = vcombine.low %v1527_v6, %v1531_v60 }
 0x413   :  { %4715 = vmatprep.mubr.bf16.mxu1 %v7947_v0  ;;  %4648 = vmatprep.subr.bf16.mxu0 %v6077_v40  ;;  %v6180_v40 = vcombine.low %v1543_v4, %v1547_v14  ;;  %v1647_v34 = vld [vmem:[%s9616_s8 + $0x788] sm:$0xff] }
 0x414   :  { %4685 = vmatprep.subr.bf16.mxu1 %v6221_v10  ;;  %v6173_v10 = vcombine.high %v1535_v41, %v1539_v36  ;;  %v1495_v55 = vld [vmem:[%s9616_s8 + $0x2c8] sm:$0xff] }
 0x415   :  { %v1499_v31 = vld [vmem:[%s9616_s8 + $0x2e8] sm:$0xff] }
 0x416   :  { %4649 = vmatpush1.bf16.msra.mxu0 %v6076_v27  ;;  %4686 = vmatpush1.bf16.msra.mxu1 %v6220_v11  ;;  %v1659_v27 = vld [vmem:[%s9616_s8 + $0x7e8] sm:$0xff]  ;;  %v6156_v11 = vcombine.low %v1519_v12, %v1523_v47 }
 0x417   :  { %4650 = vmatprep.subr.bf16.mxu0 %v6069_v45  ;;  %4687 = vmatprep.subr.bf16.mxu1 %v6213_v46  ;;  %v6172_v45 = vcombine.low %v1535_v41, %v1539_v36  ;;  %v6149_v46 = vcombine.high %v1511_v42, %v1515_v20  ;;  %v6293_v24 = vcombine.high %v1655_v43, %v1659_v27  ;;  %v1639_v22 = vld [vmem:[%s9616_s8 + $0x748] sm:$0xff] }
 0x418   :  { %v1487_v63 = vld [vmem:[%s9616_s8 + $0x288] sm:$0xff] }
 0x419   :  { %v1491_v1 = vld [vmem:[%s9616_s8 + $0x2a8] sm:$0xff] }
 0x41a   :  { %4651 = vmatpush1.bf16.msra.mxu0 %v6068_v2  ;;  %4688 = vmatpush1.bf16.msra.mxu1 %v6212_v50  ;;  %v1651_v2 = vld [vmem:[%s9616_s8 + $0x7a8] sm:$0xff]  ;;  %v6148_v50 = vcombine.low %v1511_v42, %v1515_v20 }
 0x41b   :  { %4652 = vmatprep.subr.bf16.mxu0 %v6061_v51  ;;  %4689 = vmatprep.subr.bf16.mxu1 %v6205_v44  ;;  %v6292_v51 = vcombine.low %v1655_v43, %v1659_v27  ;;  %v6141_v44 = vcombine.high %v1503_v8, %v1507_v17  ;;  %v6285_v9 = vcombine.high %v1647_v34, %v1651_v2  ;;  %v1631_v5 = vld [vmem:[%s9616_s8 + $0x708] sm:$0xff] }
 0x41c   :  { %v1479_v60 = vld [vmem:[%s9616_s8 + $0x248] sm:$0xff] }
 0x41d   :  { %v1483_v4 = vld [vmem:[%s9616_s8 + $0x268] sm:$0xff] }
 0x41e   :  { %4653 = vmatpush1.bf16.msra.mxu0 %v6060_v56  ;;  %4690 = vmatpush1.bf16.msra.mxu1 %v6204_v38  ;;  %v1643_v56 = vld [vmem:[%s9616_s8 + $0x768] sm:$0xff]  ;;  %v6140_v38 = vcombine.low %v1503_v8, %v1507_v17 }
 0x41f   :  { %4654 = vmatprep.subr.bf16.mxu0 %v6053_v59  ;;  %4691 = vmatprep.subr.bf16.mxu1 %v6197_v23  ;;  %v6284_v59 = vcombine.low %v1647_v34, %v1651_v2  ;;  %v6133_v23 = vcombine.high %v1495_v55, %v1499_v31  ;;  %v6277_v7 = vcombine.high %v1639_v22, %v1643_v56  ;;  %v1623_v14 = vld [vmem:[%s9616_s8 + $0x6c8] sm:$0xff] }
 0x420   :  { %v1471_v47 = vld [vmem:[%s9616_s8 + $0x208] sm:$0xff] }
 0x421   :  { %v1475_v41 = vld [vmem:[%s9616_s8 + $0x228] sm:$0xff] }
 0x422   :  { %4655 = vmatpush1.bf16.msra.mxu0 %v6052_v16  ;;  %4692 = vmatpush1.bf16.msra.mxu1 %v6196_v19  ;;  %v1635_v16 = vld [vmem:[%s9616_s8 + $0x728] sm:$0xff]  ;;  %v6132_v19 = vcombine.low %v1495_v55, %v1499_v31 }
 0x423   :  { %4656 = vmatprep.subr.bf16.mxu0 %v6045_v3  ;;  %4693 = vmatprep.subr.bf16.mxu1 %v6189_v58  ;;  %v6276_v3 = vcombine.low %v1639_v22, %v1643_v56  ;;  %v6125_v58 = vcombine.high %v1487_v63, %v1491_v1  ;;  %v6269_v6 = vcombine.high %v1631_v5, %v1635_v16  ;;  %v1615_v36 = vld [vmem:[%s9616_s8 + $0x688] sm:$0xff] }
 0x424   :  { %v1607_v20 = vld [vmem:[%s9616_s8 + $0x648] sm:$0xff] }
 0x425   :  { %v1611_v43 = vld [vmem:[%s9616_s8 + $0x668] sm:$0xff] }
 0x426   :  { %4657 = vmatpush1.bf16.msra.mxu0 %v6044_v21  ;;  %4694 = vmatpush1.bf16.msra.mxu1 %v6188_v32  ;;  %v1627_v21 = vld [vmem:[%s9616_s8 + $0x6e8] sm:$0xff]  ;;  %v6124_v32 = vcombine.low %v1487_v63, %v1491_v1 }
 0x427   :  { %4658 = vmatprep.subr.bf16.mxu0 %v6165_v62  ;;  %4695 = vmatprep.subr.bf16.mxu1 %v6181_v35  ;;  %v6268_v62 = vcombine.low %v1631_v5, %v1635_v16  ;;  %v6117_v35 = vcombine.high %v1479_v60, %v1483_v4  ;;  %v6261_v12 = vcombine.high %v1623_v14, %v1627_v21  ;;  %v1719_v27 = vld [vmem:[%s9616_s8 + $0x9c8] sm:$0xff] }
 0x428   :  { %v1599_v17 = vld [vmem:[%s9616_s8 + $0x608] sm:$0xff] }
 0x429   :  { %v1603_v34 = vld [vmem:[%s9616_s8 + $0x628] sm:$0xff] }
 0x42a   :  { %4659 = vmatpush2.bf16.msra.mxu0 %v6164_v29  ;;  %4696 = vmatpush1.bf16.msra.mxu1 %v6180_v40  ;;  %v1619_v29 = vld [vmem:[%s9616_s8 + $0x6a8] sm:$0xff]  ;;  %v6116_v40 = vcombine.low %v1479_v60, %v1483_v4 }
 0x42b   :  { %4660 = vmatprep.subr.bf16.mxu0 %v6157_v26  ;;  %4697 = vmatprep.subr.bf16.mxu1 %v6173_v10  ;;  %v6260_v26 = vcombine.low %v1623_v14, %v1627_v21  ;;  %v6109_v10 = vcombine.high %v1471_v47, %v1475_v41  ;;  %v6253_v42 = vcombine.high %v1615_v36, %v1619_v29  ;;  %v1711_v2 = vld [vmem:[%s9616_s8 + $0x988] sm:$0xff] }
 0x42c   :  { %v1703_v55 = vld [vmem:[%s9616_s8 + $0x948] sm:$0xff] }
 0x42d   :  { %v1707_v22 = vld [vmem:[%s9616_s8 + $0x968] sm:$0xff] }
 0x42e   :  { %4661 = vmatpush2.bf16.msra.mxu0 %v6156_v11  ;;  %4698 = vmatpush1.bf16.msra.mxu1 %v6172_v45  ;;  %v1723_v11 = vld [vmem:[%s9616_s8 + $0x9e8] sm:$0xff]  ;;  %v6108_v45 = vcombine.low %v1471_v47, %v1475_v41 }
 0x42f   :  { %4662 = vmatprep.subr.bf16.mxu0 %v6149_v46  ;;  %4699 = vmatprep.subr.bf16.mxu1 %v6293_v24  ;;  %v6252_v46 = vcombine.low %v1615_v36, %v1619_v29  ;;  %v6245_v24 = vcombine.high %v1607_v20, %v1611_v43  ;;  %v6357_v8 = vcombine.high %v1719_v27, %v1723_v11  ;;  %v1847_v56 = vld [vmem:[%s9616_s8 + $0xdc8] sm:$0xff] }
 0x430   :  { %v1695_v1 = vld [vmem:[%s9616_s8 + $0x908] sm:$0xff] }
 0x431   :  { %v1699_v5 = vld [vmem:[%s9616_s8 + $0x928] sm:$0xff] }
 0x432   :  { %4663 = vmatpush2.bf16.msra.mxu0 %v6148_v50  ;;  %4700 = vmatpush2.bf16.msra.mxu1 %v6292_v51  ;;  %v1715_v50 = vld [vmem:[%s9616_s8 + $0x9a8] sm:$0xff]  ;;  %v6244_v51 = vcombine.low %v1607_v20, %v1611_v43 }
 0x433   :  { %4664 = vmatprep.subr.bf16.mxu0 %v6141_v44  ;;  %4701 = vmatprep.subr.bf16.mxu1 %v6285_v9  ;;  %v6356_v44 = vcombine.low %v1719_v27, %v1723_v11  ;;  %v6237_v9 = vcombine.high %v1599_v17, %v1603_v34  ;;  %v6349_v31 = vcombine.high %v1711_v2, %v1715_v50  ;;  %v1839_v16 = vld [vmem:[%s9616_s8 + $0xd88] sm:$0xff] }
 0x434   :  { %v1687_v60 = vld [vmem:[%s9616_s8 + $0x8c8] sm:$0xff] }
 0x435   :  { %v1691_v14 = vld [vmem:[%s9616_s8 + $0x8e8] sm:$0xff] }
 0x436   :  { %4665 = vmatpush2.bf16.msra.mxu0 %v6140_v38  ;;  %4702 = vmatpush2.bf16.msra.mxu1 %v6284_v59  ;;  %v1851_v38 = vld [vmem:[%s9616_s8 + $0xde8] sm:$0xff]  ;;  %v6236_v59 = vcombine.low %v1599_v17, %v1603_v34 }
 0x437   :  { %4666 = vmatprep.subr.bf16.mxu0 %v6133_v23  ;;  %4703 = vmatprep.subr.bf16.mxu1 %v6277_v7  ;;  %v6348_v23 = vcombine.low %v1711_v2, %v1715_v50  ;;  %v6341_v7 = vcombine.high %v1703_v55, %v1707_v22  ;;  %v6485_v63 = vcombine.high %v1847_v56, %v1851_v38  ;;  %v1831_v21 = vld [vmem:[%s9616_s8 + $0xd48] sm:$0xff] }
 0x438   :  { %v1679_v41 = vld [vmem:[%s9616_s8 + $0x888] sm:$0xff] }
 0x439   :  { %v1683_v36 = vld [vmem:[%s9616_s8 + $0x8a8] sm:$0xff] }
 0x43a   :  { %4667 = vmatpush2.bf16.msra.mxu0 %v6132_v19  ;;  %4704 = vmatpush2.bf16.msra.mxu1 %v6276_v3  ;;  %v1843_v19 = vld [vmem:[%s9616_s8 + $0xda8] sm:$0xff]  ;;  %v6340_v3 = vcombine.low %v1703_v55, %v1707_v22 }
 0x43b   :  { %4668 = vmatprep.subr.bf16.mxu0 %v6125_v58  ;;  %4705 = vmatprep.subr.bf16.mxu1 %v6269_v6  ;;  %v6484_v58 = vcombine.low %v1847_v56, %v1851_v38  ;;  %v6333_v6 = vcombine.high %v1695_v1, %v1699_v5  ;;  %v6477_v4 = vcombine.high %v1839_v16, %v1843_v19  ;;  %v1823_v29 = vld [vmem:[%s9616_s8 + $0xd08] sm:$0xff] }
 0x43c   :  { %v1671_v43 = vld [vmem:[%s9616_s8 + $0x848] sm:$0xff] }
 0x43d   :  { %v1675_v27 = vld [vmem:[%s9616_s8 + $0x868] sm:$0xff] }
 0x43e   :  { %4669 = vmatpush2.bf16.msra.mxu0 %v6124_v32  ;;  %4706 = vmatpush2.bf16.msra.mxu1 %v6268_v62  ;;  %v1835_v32 = vld [vmem:[%s9616_s8 + $0xd68] sm:$0xff]  ;;  %v6332_v62 = vcombine.low %v1695_v1, %v1699_v5 }
 0x43f   :  { %4670 = vmatprep.subr.bf16.mxu0 %v6117_v35  ;;  %4707 = vmatprep.subr.bf16.mxu1 %v6261_v12  ;;  %v6476_v35 = vcombine.low %v1839_v16, %v1843_v19  ;;  %v6325_v12 = vcombine.high %v1687_v60, %v1691_v14  ;;  %v6469_v47 = vcombine.high %v1831_v21, %v1835_v32  ;;  %v1815_v11 = vld [vmem:[%s9616_s8 + $0xcc8] sm:$0xff] }
 0x440   :  { %v1663_v34 = vld [vmem:[%s9616_s8 + $0x808] sm:$0xff] }
 0x441   :  { %v1667_v2 = vld [vmem:[%s9616_s8 + $0x828] sm:$0xff] }
 0x442   :  { %4671 = vmatpush2.bf16.msra.mxu0 %v6116_v40  ;;  %4708 = vmatpush2.bf16.msra.mxu1 %v6260_v26  ;;  %v1827_v40 = vld [vmem:[%s9616_s8 + $0xd28] sm:$0xff]  ;;  %v6324_v26 = vcombine.low %v1687_v60, %v1691_v14  ;;  %v6301_v55 = vcombine.high %v1663_v34, %v1667_v2 }
 0x443   :  { %4672 = vmatprep.subr.bf16.mxu0 %v6109_v10  ;;  %4709 = vmatprep.subr.bf16.mxu1 %v6253_v42  ;;  %v6468_v10 = vcombine.low %v1831_v21, %v1835_v32  ;;  %v6317_v42 = vcombine.high %v1679_v41, %v1683_v36  ;;  %v6461_v20 = vcombine.high %v1823_v29, %v1827_v40  ;;  %v1807_v50 = vld [vmem:[%s9616_s8 + $0xc88] sm:$0xff] }
 0x444   :  { %v1783_v22 = vld [vmem:[%s9616_s8 + $0xbc8] sm:$0xff] }
 0x445   :  { %v1787_v56 = vld [vmem:[%s9616_s8 + $0xbe8] sm:$0xff] }
 0x446   :  { %4673 = vmatpush2.bf16.msra.mxu0 %v6108_v45  ;;  %4710 = vmatpush2.bf16.msra.mxu1 %v6252_v46  ;;  %v1819_v45 = vld [vmem:[%s9616_s8 + $0xce8] sm:$0xff]  ;;  %v6316_v46 = vcombine.low %v1679_v41, %v1683_v36 }
 0x447   :  { %4711 = vmatprep.subr.bf16.mxu1 %v6245_v24  ;;  %4724 = vmatprep.subr.bf16.mxu0 %v6357_v8  ;;  %v6460_v24 = vcombine.low %v1823_v29, %v1827_v40  ;;  %v6309_v8 = vcombine.high %v1671_v43, %v1675_v27  ;;  %v6453_v17 = vcombine.high %v1815_v11, %v1819_v45  ;;  %v1799_v38 = vld [vmem:[%s9616_s8 + $0xc48] sm:$0xff] }
 0x448   :  { %v1775_v5 = vld [vmem:[%s9616_s8 + $0xb88] sm:$0xff] }
 0x449   :  { %4675 = vmatmul.mubr.bf16.vlgmr.msra.gmra.mxu0 %v7913_v53  ;;  %v1779_v16 = vld [vmem:[%s9616_s8 + $0xba8] sm:$0xff] }
 0x44a   :  { %4712 = vmatpush2.bf16.msra.mxu1 %v6244_v51  ;;  %4725 = vmatpush1.bf16.msra.mxu0 %v6356_v44  ;;  %v1811_v51 = vld [vmem:[%s9616_s8 + $0xca8] sm:$0xff]  ;;  %v6308_v44 = vcombine.low %v1671_v43, %v1675_v27  ;;  %v6413_v60 = vcombine.high %v1775_v5, %v1779_v16 }
 0x44b   :  { %4756 = vmatprep.mubr.bf16.mxu0 %v7996_v54  ;;  %4713 = vmatprep.subr.bf16.mxu1 %v6237_v9  ;;  %v6452_v9 = vcombine.low %v1815_v11, %v1819_v45  ;;  %v1791_v19 = vld [vmem:[%s9616_s8 + $0xc08] sm:$0xff] }
 0x44c   :  { %4726 = vmatprep.subr.bf16.mxu0 %v6349_v31  ;;  %v6445_v31 = vcombine.high %v1807_v50, %v1811_v51  ;;  %v1767_v14 = vld [vmem:[%s9616_s8 + $0xb48] sm:$0xff] }
 0x44d   :  { %v1771_v21 = vld [vmem:[%s9616_s8 + $0xb68] sm:$0xff] }
 0x44e   :  { %4714 = vmatpush2.bf16.msra.mxu1 %v6236_v59  ;;  %4727 = vmatpush1.bf16.msra.mxu0 %v6348_v23  ;;  %v1803_v59 = vld [vmem:[%s9616_s8 + $0xc68] sm:$0xff]  ;;  %v6300_v23 = vcombine.low %v1663_v34, %v1667_v2 }
 0x44f   :  { %4728 = vmatprep.subr.bf16.mxu0 %v6341_v7  ;;  %4765 = vmatprep.subr.bf16.mxu1 %v6485_v63  ;;  %v6444_v7 = vcombine.low %v1807_v50, %v1811_v51  ;;  %v6421_v63 = vcombine.high %v1783_v22, %v1787_v56  ;;  %v6437_v1 = vcombine.high %v1799_v38, %v1803_v59  ;;  %v1911_v32 = vld [vmem:[%s9616_s8 + $0xfc8] sm:$0xff] }
 0x450   :  { %v1759_v36 = vld [vmem:[%s9616_s8 + $0xb08] sm:$0xff] }
 0x451   :  { %4716 = vmatmul.mubr.bf16.vlgmr.msra.gmra.mxu1 %v7954_v28  ;;  %v1763_v29 = vld [vmem:[%s9616_s8 + $0xb28] sm:$0xff] }
 0x452   :  { %4729 = vmatpush1.bf16.msra.mxu0 %v6340_v3  ;;  %4766 = vmatpush1.bf16.msra.mxu1 %v6484_v58  ;;  %v1795_v3 = vld [vmem:[%s9616_s8 + $0xc28] sm:$0xff]  ;;  %v6420_v58 = vcombine.low %v1783_v22, %v1787_v56 }
 0x453   :  { %4797 = vmatprep.mubr.bf16.mxu1 %v8027_v61  ;;  %4730 = vmatprep.subr.bf16.mxu0 %v6333_v6  ;;  %v6436_v6 = vcombine.low %v1799_v38, %v1803_v59  ;;  %v1903_v40 = vld [vmem:[%s9616_s8 + $0xf88] sm:$0xff] }
 0x454   :  { %4767 = vmatprep.subr.bf16.mxu1 %v6477_v4  ;;  %v6429_v4 = vcombine.high %v1791_v19, %v1795_v3  ;;  %v1751_v27 = vld [vmem:[%s9616_s8 + $0xac8] sm:$0xff] }
 0x455   :  { %v1755_v11 = vld [vmem:[%s9616_s8 + $0xae8] sm:$0xff] }
 0x456   :  { %4731 = vmatpush1.bf16.msra.mxu0 %v6332_v62  ;;  %4768 = vmatpush1.bf16.msra.mxu1 %v6476_v35  ;;  %v1915_v62 = vld [vmem:[%s9616_s8 + $0xfe8] sm:$0xff]  ;;  %v6412_v35 = vcombine.low %v1775_v5, %v1779_v16 }
 0x457   :  { %4732 = vmatprep.subr.bf16.mxu0 %v6325_v12  ;;  %4769 = vmatprep.subr.bf16.mxu1 %v6469_v47  ;;  %v6428_v12 = vcombine.low %v1791_v19, %v1795_v3  ;;  %v6405_v47 = vcombine.high %v1767_v14, %v1771_v21  ;;  %v6549_v41 = vcombine.high %v1911_v32, %v1915_v62  ;;  %v1895_v45 = vld [vmem:[%s9616_s8 + $0xf48] sm:$0xff] }
 0x458   :  { %v1743_v2 = vld [vmem:[%s9616_s8 + $0xa88] sm:$0xff] }
 0x459   :  { %v1747_v50 = vld [vmem:[%s9616_s8 + $0xaa8] sm:$0xff] }
 0x45a   :  { %4733 = vmatpush1.bf16.msra.mxu0 %v6324_v26  ;;  %4770 = vmatpush1.bf16.msra.mxu1 %v6468_v10  ;;  %v1907_v26 = vld [vmem:[%s9616_s8 + $0xfa8] sm:$0xff]  ;;  %v6404_v10 = vcombine.low %v1767_v14, %v1771_v21 }
 0x45b   :  { %4734 = vmatprep.subr.bf16.mxu0 %v6317_v42  ;;  %4771 = vmatprep.subr.bf16.mxu1 %v6461_v20  ;;  %v6548_v42 = vcombine.low %v1911_v32, %v1915_v62  ;;  %v6397_v20 = vcombine.high %v1759_v36, %v1763_v29  ;;  %v6541_v43 = vcombine.high %v1903_v40, %v1907_v26  ;;  %v1887_v51 = vld [vmem:[%s9616_s8 + $0xf08] sm:$0xff]  ;;  %v1464_v62 = vld [vmem:[%s9616_s8 + $0x1d0] sm:$0xff] }
 0x45c   :  { %v1735_v56 = vld [vmem:[%s9616_s8 + $0xa48] sm:$0xff] }
 0x45d   :  { %v1739_v38 = vld [vmem:[%s9616_s8 + $0xa68] sm:$0xff] }
 0x45e   :  { %4735 = vmatpush1.bf16.msra.mxu0 %v6316_v46  ;;  %4772 = vmatpush1.bf16.msra.mxu1 %v6460_v24  ;;  %v1899_v46 = vld [vmem:[%s9616_s8 + $0xf68] sm:$0xff]  ;;  %v6396_v24 = vcombine.low %v1759_v36, %v1763_v29 }
 0x45f   :  { %4736 = vmatprep.subr.bf16.mxu0 %v6309_v8  ;;  %4773 = vmatprep.subr.bf16.mxu1 %v6453_v17  ;;  %v6540_v8 = vcombine.low %v1903_v40, %v1907_v26  ;;  %v6389_v17 = vcombine.high %v1751_v27, %v1755_v11  ;;  %v6533_v34 = vcombine.high %v1895_v45, %v1899_v46  ;;  %v1879_v59 = vld [vmem:[%s9616_s8 + $0xec8] sm:$0xff]  ;;  %v1456_v26 = vld [vmem:[%s9616_s8 + $0x190] sm:$0xff] }
 0x460   :  { %v1727_v16 = vld [vmem:[%s9616_s8 + $0xa08] sm:$0xff] }
 0x461   :  { %v1731_v19 = vld [vmem:[%s9616_s8 + $0xa28] sm:$0xff] }
 0x462   :  { %4737 = vmatpush1.bf16.msra.mxu0 %v6308_v44  ;;  %4774 = vmatpush1.bf16.msra.mxu1 %v6452_v9  ;;  %v1891_v44 = vld [vmem:[%s9616_s8 + $0xf28] sm:$0xff]  ;;  %v6388_v9 = vcombine.low %v1751_v27, %v1755_v11  ;;  %v1448_v27 = vld [vmem:[%s9616_s8 + $0x150] sm:$0xff] }
 0x463   :  { %4738 = vmatprep.subr.bf16.mxu0 %v6301_v55  ;;  %4775 = vmatprep.subr.bf16.mxu1 %v6445_v31  ;;  %v6532_v55 = vcombine.low %v1895_v45, %v1899_v46  ;;  %v6381_v31 = vcombine.high %v1743_v2, %v1747_v50  ;;  %v6525_v22 = vcombine.high %v1887_v51, %v1891_v44  ;;  %v1871_v3 = vld [vmem:[%s9616_s8 + $0xe88] sm:$0xff]  ;;  %v1452_v45 = vld [vmem:[%s9616_s8 + $0x170] sm:$0xff] }
 0x464   :  { %v1863_v21 = vld [vmem:[%s9616_s8 + $0xe48] sm:$0xff]  ;;  %v1592_v46 = vld [vmem:[%s9616_s8 + $0x5d0] sm:$0xff] }
 0x465   :  { %v1867_v32 = vld [vmem:[%s9616_s8 + $0xe68] sm:$0xff] }
 0x466   :  { %4739 = vmatpush1.bf16.msra.mxu0 %v6300_v23  ;;  %4776 = vmatpush1.bf16.msra.mxu1 %v6444_v7  ;;  %v1883_v23 = vld [vmem:[%s9616_s8 + $0xee8] sm:$0xff]  ;;  %v6380_v7 = vcombine.low %v1743_v2, %v1747_v50  ;;  %v6087_v50 = vcombine.high %v1448_v27, %v1452_v45 }
 0x467   :  { %4740 = vmatprep.subr.bf16.mxu0 %v6421_v63  ;;  %4777 = vmatprep.subr.bf16.mxu1 %v6437_v1  ;;  %v6524_v63 = vcombine.low %v1887_v51, %v1891_v44  ;;  %v6373_v1 = vcombine.high %v1735_v56, %v1739_v38  ;;  %v6517_v5 = vcombine.high %v1879_v59, %v1883_v23  ;;  %v1855_v29 = vld [vmem:[%s9616_s8 + $0xe08] sm:$0xff]  ;;  %v1440_v44 = vld [vmem:[%s9616_s8 + $0x110] sm:$0xff] }
 0x468   :  { %v1859_v40 = vld [vmem:[%s9616_s8 + $0xe28] sm:$0xff] }
 0x46a   :  { %4741 = vmatpush2.bf16.msra.mxu0 %v6420_v58  ;;  %4778 = vmatpush1.bf16.msra.mxu1 %v6436_v6  ;;  %v1875_v58 = vld [vmem:[%s9616_s8 + $0xea8] sm:$0xff]  ;;  %v6372_v6 = vcombine.low %v1735_v56, %v1739_v38  ;;  %v6086_v56 = vcombine.low %v1448_v27, %v1452_v45 }
 0x46b   :  { %4742 = vmatprep.subr.bf16.mxu0 %v6413_v60  ;;  %4779 = vmatprep.subr.bf16.mxu1 %v6429_v4  ;;  %v6516_v60 = vcombine.low %v1879_v59, %v1883_v23  ;;  %v6365_v4 = vcombine.high %v1727_v16, %v1731_v19  ;;  %v6509_v14 = vcombine.high %v1871_v3, %v1875_v58 }
 0x46e   :  { %4743 = vmatpush2.bf16.msra.mxu0 %v6412_v35  ;;  %4780 = vmatpush1.bf16.msra.mxu1 %v6428_v12  ;;  %v1468_v35 = vld [vmem:[%s9616_s8 + $0x1f0] sm:$0xff]  ;;  %v6364_v12 = vcombine.low %v1727_v16, %v1731_v19 }
 0x46f   :  { %4744 = vmatprep.subr.bf16.mxu0 %v6405_v47  ;;  %4781 = vmatprep.subr.bf16.mxu1 %v6549_v41  ;;  %v6508_v47 = vcombine.low %v1871_v3, %v1875_v58  ;;  %v6501_v41 = vcombine.high %v1863_v21, %v1867_v32  ;;  %v6103_v36 = vcombine.high %v1464_v62, %v1468_v35  ;;  %v1580_v16 = vld [vmem:[%s9616_s8 + $0x570] sm:$0xff] }
 0x472   :  { %4745 = vmatpush2.bf16.msra.mxu0 %v6404_v10  ;;  %4782 = vmatpush2.bf16.msra.mxu1 %v6548_v42  ;;  %v1460_v10 = vld [vmem:[%s9616_s8 + $0x1b0] sm:$0xff]  ;;  %v6500_v42 = vcombine.low %v1863_v21, %v1867_v32 }
 0x473   :  { %4746 = vmatprep.subr.bf16.mxu0 %v6397_v20  ;;  %4783 = vmatprep.subr.bf16.mxu1 %v6541_v43  ;;  %v6102_v20 = vcombine.low %v1464_v62, %v1468_v35  ;;  %v6493_v43 = vcombine.high %v1855_v29, %v1859_v40  ;;  %v6095_v11 = vcombine.high %v1456_v26, %v1460_v10  ;;  %v1424_v21 = vld [vmem:[%s9616_s8 + $0x90] sm:$0xff] }
 0x474   :  { %v1428_v62 = vld [vmem:[%s9616_s8 + $0xb0] sm:$0xff] }
 0x475   :  { %v1568_v35 = vld [vmem:[%s9616_s8 + $0x510] sm:$0xff]  ;;  %v6062_v27 = vcombine.low %v1424_v21, %v1428_v62 }
 0x476   :  { %4747 = vmatpush2.bf16.msra.mxu0 %v6396_v24  ;;  %4784 = vmatpush2.bf16.msra.mxu1 %v6540_v8  ;;  %v1596_v24 = vld [vmem:[%s9616_s8 + $0x5f0] sm:$0xff] }
 0x477   :  { %4748 = vmatprep.subr.bf16.mxu0 %v6389_v17  ;;  %4785 = vmatprep.subr.bf16.mxu1 %v6533_v34  ;;  %v6492_v17 = vcombine.low %v1855_v29, %v1859_v40  ;;  %v6094_v34 = vcombine.low %v1456_v26, %v1460_v10  ;;  %v6231_v51 = vcombine.high %v1592_v46, %v1596_v24  ;;  %v1416_v10 = vld [vmem:[%s9616_s8 + $0x50] sm:$0xff] }
 0x478   :  { %v6230_v38 = vcombine.low %v1592_v46, %v1596_v24  ;;  %v6063_v40 = vcombine.high %v1424_v21, %v1428_v62  ;;  %v1408_v24 = vld [vmem:[%s9616_s8 + $0x10] sm:$0xff] }
 0x479   :  { %v1660_v21 = vld [vmem:[%s9616_s8 + $0x7f0] sm:$0xff] }
 0x47a   :  { %4749 = vmatpush2.bf16.msra.mxu0 %v6388_v9  ;;  %4786 = vmatpush2.bf16.msra.mxu1 %v6532_v55  ;;  %v1444_v9 = vld [vmem:[%s9616_s8 + $0x130] sm:$0xff] }
 0x47b   :  { %4750 = vmatprep.subr.bf16.mxu0 %v6381_v31  ;;  %4787 = vmatprep.subr.bf16.mxu1 %v6525_v22  ;;  %v1584_v31 = vld [vmem:[%s9616_s8 + $0x590] sm:$0xff]  ;;  %v6079_v23 = vcombine.high %v1440_v44, %v1444_v9  ;;  %v6078_v58 = vcombine.low %v1440_v44, %v1444_v9 }
 0x47c   :  { %v1588_v22 = vld [vmem:[%s9616_s8 + $0x5b0] sm:$0xff] }
 0x47d   :  { %v1528_v9 = vld [vmem:[%s9616_s8 + $0x3d0] sm:$0xff] }
 0x47e   :  { %4751 = vmatpush2.bf16.msra.mxu0 %v6380_v7  ;;  %4788 = vmatpush2.bf16.msra.mxu1 %v6524_v63  ;;  %v1432_v7 = vld [vmem:[%s9616_s8 + $0xd0] sm:$0xff]  ;;  %v6223_v63 = vcombine.high %v1584_v31, %v1588_v22 }
 0x47f   :  { %4752 = vmatprep.subr.bf16.mxu0 %v6373_v1  ;;  %4789 = vmatprep.subr.bf16.mxu1 %v6517_v5  ;;  %v1436_v1 = vld [vmem:[%s9616_s8 + $0xf0] sm:$0xff] }
 0x480   :  { %v1576_v5 = vld [vmem:[%s9616_s8 + $0x550] sm:$0xff] }
 0x482   :  { %4753 = vmatpush2.bf16.msra.mxu0 %v6372_v6  ;;  %4790 = vmatpush2.bf16.msra.mxu1 %v6516_v60  ;;  %v6222_v6 = vcombine.low %v1584_v31, %v1588_v22  ;;  %v1544_v31 = vld [vmem:[%s9616_s8 + $0x450] sm:$0xff] }
 0x483   :  { %4754 = vmatprep.subr.bf16.mxu0 %v6365_v4  ;;  %4791 = vmatprep.subr.bf16.mxu1 %v6509_v14  ;;  %v6071_v4 = vcombine.high %v1432_v7, %v1436_v1  ;;  %v6215_v14 = vcombine.high %v1576_v5, %v1580_v16  ;;  %v1548_v22 = vld [vmem:[%s9616_s8 + $0x470] sm:$0xff] }
 0x486   :  { %4755 = vmatpush2.bf16.msra.mxu0 %v6364_v12  ;;  %4792 = vmatpush2.bf16.msra.mxu1 %v6508_v47  ;;  %v1572_v12 = vld [vmem:[%s9616_s8 + $0x530] sm:$0xff] }
 0x487   :  { %4793 = vmatprep.subr.bf16.mxu1 %v6501_v41  ;;  %4806 = vmatprep.subr.bf16.mxu0 %v6103_v36  ;;  %v6070_v41 = vcombine.low %v1432_v7, %v1436_v1  ;;  %v6214_v36 = vcombine.low %v1576_v5, %v1580_v16  ;;  %v6207_v26 = vcombine.high %v1568_v35, %v1572_v12  ;;  %v1520_v7 = vld [vmem:[%s9616_s8 + $0x390] sm:$0xff] }
 0x488   :  { %v1536_v1 = vld [vmem:[%s9616_s8 + $0x410] sm:$0xff] }
 0x489   :  { %4757 = vmatmul.mubr.bf16.vlgmr.msra.gmra.mxu0 %v8151_v30  ;;  %v4512_v8 = vpop.f32.mrf.mxu0  ;;  %v1540_v5 = vld [vmem:[%s9616_s8 + $0x430] sm:$0xff] }
 0x48a   :  { %4794 = vmatpush2.bf16.msra.mxu1 %v6500_v42  ;;  %4807 = vmatpush1.bf16.msra.mxu0 %v6102_v20  ;;  %v1420_v42 = vld [vmem:[%s9616_s8 + $0x70] sm:$0xff] }
 0x48b   :  { %4838 = vmatprep.mubr.bf16.mxu0 %v7906_v49  ;;  %v4514_v2 = vpop.f32.mrf.mxu0  ;;  %4795 = vmatprep.subr.bf16.mxu1 %v6493_v43  ;;  %v1560_v20 = vld [vmem:[%s9616_s8 + $0x4d0] sm:$0xff]  ;;  %v6055_v45 = vcombine.high %v1416_v10, %v1420_v42 }
 0x48c   :  { %4808 = vmatprep.subr.bf16.mxu0 %v6095_v11  ;;  %v1564_v43 = vld [vmem:[%s9616_s8 + $0x4f0] sm:$0xff]  ;;  %v6206_v11 = vcombine.low %v1568_v35, %v1572_v12  ;;  %v6174_v35 = vcombine.low %v1536_v1, %v1540_v5 }
 0x48d   :  { %v4516_v55 = vpop.f32.mrf.mxu0  ;;  %v6199_v46 = vcombine.high %v1560_v20, %v1564_v43 }
 0x48e   :  { %4796 = vmatpush2.bf16.msra.mxu1 %v6492_v17  ;;  %4809 = vmatpush1.bf16.msra.mxu0 %v6094_v34  ;;  %v1552_v17 = vld [vmem:[%s9616_s8 + $0x490] sm:$0xff] }
 0x48f   :  { %v4517_v59 = vpop.f32.mrf.mxu0  ;;  %4810 = vmatprep.subr.bf16.mxu0 %v6087_v50  ;;  %4847 = vmatprep.subr.bf16.mxu1 %v6231_v51  ;;  %v1556_v34 = vld [vmem:[%s9616_s8 + $0x4b0] sm:$0xff]  ;;  %v6198_v50 = vcombine.low %v1560_v20, %v1564_v43 }
 0x490   :  { %v6191_v44 = vcombine.high %v1552_v17, %v1556_v34  ;;  %v1532_v55 = vld [vmem:[%s9616_s8 + $0x3f0] sm:$0xff] }
 0x491   :  { %4798 = vmatmul.mubr.bf16.vlgmr.msra.gmra.mxu1 %v8180_v13  ;;  %v4553_v19 = vpop.f32.mrf.mxu1  ;;  %v6167_v59 = vcombine.high %v1528_v9, %v1532_v55  ;;  %v6166_v16 = vcombine.low %v1528_v9, %v1532_v55  ;;  %v1496_v43 = vld [vmem:[%s9616_s8 + $0x2d0] sm:$0xff] }
 0x492   :  { %v8587_v3 = vadd.f32 %v4553_v19, %v4512_v8  ;;  %4811 = vmatpush1.bf16.msra.mxu0 %v6086_v56  ;;  %4848 = vmatpush1.bf16.msra.mxu1 %v6230_v38  ;;  %v1412_v8 = vld [vmem:[%s9616_s8 + $0x30] sm:$0xff]  ;;  %v6190_v38 = vcombine.low %v1552_v17, %v1556_v34  ;;  %v6182_v19 = vcombine.low %v1544_v31, %v1548_v22 }
 0x493   :  { %4879 = vmatprep.mubr.bf16.mxu1 %v7947_v0  ;;  %v4555_v60 = vpop.f32.mrf.mxu1  ;;  %4812 = vmatprep.subr.bf16.mxu0 %v6079_v23  ;;  %v6047_v51 = vcombine.high %v1408_v24, %v1412_v8  ;;  %v6046_v56 = vcombine.low %v1408_v24, %v1412_v8  ;;  %v6183_v23 = vcombine.high %v1544_v31, %v1548_v22  ;;  %v1488_v34 = vld [vmem:[%s9616_s8 + $0x290] sm:$0xff] }
 0x494   :  { %v8593_v32 = vadd.f32 %v4555_v60, %v4514_v2  ;;  %4849 = vmatprep.subr.bf16.mxu1 %v6223_v63  ;;  %v6054_v2 = vcombine.low %v1416_v10, %v1420_v42  ;;  %v1524_v63 = vld [vmem:[%s9616_s8 + $0x3b0] sm:$0xff] }
 0x495   :  { %v4557_v47 = vpop.f32.mrf.mxu1  ;;  %v1512_v60 = vld [vmem:[%s9616_s8 + $0x350] sm:$0xff]  ;;  %v6158_v62 = vcombine.low %v1520_v7, %v1524_v63 }
 0x496   :  { %4813 = vmatpush1.bf16.msra.mxu0 %v6078_v58  ;;  %4850 = vmatpush1.bf16.msra.mxu1 %v6222_v6  ;;  %v6159_v58 = vcombine.high %v1520_v7, %v1524_v63  ;;  %v6175_v6 = vcombine.high %v1536_v1, %v1540_v5  ;;  %v1480_v22 = vld [vmem:[%s9616_s8 + $0x250] sm:$0xff] }
 0x497   :  { %v4558_v29 = vpop.f32.mrf.mxu1  ;;  %4814 = vmatprep.subr.bf16.mxu0 %v6071_v4  ;;  %4851 = vmatprep.subr.bf16.mxu1 %v6215_v14  ;;  %v1516_v4 = vld [vmem:[%s9616_s8 + $0x370] sm:$0xff] }
 0x498   :  { %v1656_v14 = vld [vmem:[%s9616_s8 + $0x7d0] sm:$0xff]  ;;  %v6151_v12 = vcombine.high %v1512_v60, %v1516_v4 }
 0x499   :  { %v6295_v47 = vcombine.high %v1656_v14, %v1660_v21  ;;  %v1648_v29 = vld [vmem:[%s9616_s8 + $0x790] sm:$0xff]  ;;  %v6294_v10 = vcombine.low %v1656_v14, %v1660_v21 }
 0x49a   :  { %4815 = vmatpush1.bf16.msra.mxu0 %v6070_v41  ;;  %4852 = vmatpush1.bf16.msra.mxu1 %v6214_v36  ;;  %v1504_v41 = vld [vmem:[%s9616_s8 + $0x310] sm:$0xff] }
 0x49b   :  { %4816 = vmatprep.subr.bf16.mxu0 %v6063_v40  ;;  %4853 = vmatprep.subr.bf16.mxu1 %v6207_v26  ;;  %v1508_v36 = vld [vmem:[%s9616_s8 + $0x330] sm:$0xff]  ;;  %v6150_v26 = vcombine.low %v1512_v60, %v1516_v4 }
 0x49c   :  { %v1652_v40 = vld [vmem:[%s9616_s8 + $0x7b0] sm:$0xff]  ;;  %v6143_v42 = vcombine.high %v1504_v41, %v1508_v36 }
 0x49d   :  { %v6287_v20 = vcombine.high %v1648_v29, %v1652_v40  ;;  %v6286_v24 = vcombine.low %v1648_v29, %v1652_v40  ;;  %v1472_v5 = vld [vmem:[%s9616_s8 + $0x210] sm:$0xff] }
 0x49e   :  { %4817 = vmatpush1.bf16.msra.mxu0 %v6062_v27  ;;  %4854 = vmatpush1.bf16.msra.mxu1 %v6206_v11  ;;  %v1500_v27 = vld [vmem:[%s9616_s8 + $0x2f0] sm:$0xff] }
 0x49f   :  { %4818 = vmatprep.subr.bf16.mxu0 %v6055_v45  ;;  %4855 = vmatprep.subr.bf16.mxu1 %v6199_v46  ;;  %v1640_v11 = vld [vmem:[%s9616_s8 + $0x750] sm:$0xff]  ;;  %v6142_v46 = vcombine.low %v1504_v41, %v1508_v36  ;;  %v6135_v8 = vcombine.high %v1496_v43, %v1500_v27 }
 0x4a0   :  { %v1644_v45 = vld [vmem:[%s9616_s8 + $0x770] sm:$0xff] }
 0x4a1   :  { %v6279_v17 = vcombine.high %v1640_v11, %v1644_v45  ;;  %v6278_v9 = vcombine.low %v1640_v11, %v1644_v45  ;;  %v1608_v21 = vld [vmem:[%s9616_s8 + $0x650] sm:$0xff] }
 0x4a2   :  { %4819 = vmatpush1.bf16.msra.mxu0 %v6054_v2  ;;  %4856 = vmatpush1.bf16.msra.mxu1 %v6198_v50  ;;  %v1492_v2 = vld [vmem:[%s9616_s8 + $0x2b0] sm:$0xff] }
 0x4a3   :  { %4820 = vmatprep.subr.bf16.mxu0 %v6047_v51  ;;  %4857 = vmatprep.subr.bf16.mxu1 %v6191_v44  ;;  %v1632_v50 = vld [vmem:[%s9616_s8 + $0x710] sm:$0xff]  ;;  %v6134_v44 = vcombine.low %v1496_v43, %v1500_v27  ;;  %v6127_v55 = vcombine.high %v1488_v34, %v1492_v2 }
 0x4a4   :  { %v1636_v51 = vld [vmem:[%s9616_s8 + $0x730] sm:$0xff] }
 0x4a5   :  { %v6271_v31 = vcombine.high %v1632_v50, %v1636_v51  ;;  %v6270_v7 = vcombine.low %v1632_v50, %v1636_v51  ;;  %v1600_v40 = vld [vmem:[%s9616_s8 + $0x610] sm:$0xff] }
 0x4a6   :  { %4821 = vmatpush1.bf16.msra.mxu0 %v6046_v56  ;;  %4858 = vmatpush1.bf16.msra.mxu1 %v6190_v38  ;;  %v1484_v56 = vld [vmem:[%s9616_s8 + $0x270] sm:$0xff] }
 0x4a7   :  { %4822 = vmatprep.subr.bf16.mxu0 %v6167_v59  ;;  %4859 = vmatprep.subr.bf16.mxu1 %v6183_v23  ;;  %v1624_v38 = vld [vmem:[%s9616_s8 + $0x6d0] sm:$0xff]  ;;  %v6126_v23 = vcombine.low %v1488_v34, %v1492_v2  ;;  %v6119_v63 = vcombine.high %v1480_v22, %v1484_v56 }
 0x4a8   :  { %v1628_v59 = vld [vmem:[%s9616_s8 + $0x6f0] sm:$0xff] }
 0x4a9   :  { %v6263_v1 = vcombine.high %v1624_v38, %v1628_v59  ;;  %v6262_v60 = vcombine.low %v1624_v38, %v1628_v59  ;;  %v1704_v11 = vld [vmem:[%s9616_s8 + $0x950] sm:$0xff] }
 0x4aa   :  { %4823 = vmatpush2.bf16.msra.mxu0 %v6166_v16  ;;  %4860 = vmatpush1.bf16.msra.mxu1 %v6182_v19  ;;  %v1476_v16 = vld [vmem:[%s9616_s8 + $0x230] sm:$0xff] }
 0x4ab   :  { %4824 = vmatprep.subr.bf16.mxu0 %v6159_v58  ;;  %4861 = vmatprep.subr.bf16.mxu1 %v6175_v6  ;;  %v1616_v19 = vld [vmem:[%s9616_s8 + $0x690] sm:$0xff]  ;;  %v6118_v6 = vcombine.low %v1480_v22, %v1484_v56  ;;  %v6111_v4 = vcombine.high %v1472_v5, %v1476_v16 }
 0x4ac   :  { %v1620_v58 = vld [vmem:[%s9616_s8 + $0x6b0] sm:$0xff] }
 0x4ad   :  { %v6255_v14 = vcombine.high %v1616_v19, %v1620_v58  ;;  %v6254_v41 = vcombine.low %v1616_v19, %v1620_v58  ;;  %v1840_v56 = vld [vmem:[%s9616_s8 + $0xd90] sm:$0xff] }
 0x4ae   :  { %4825 = vmatpush2.bf16.msra.mxu0 %v6158_v62  ;;  %4862 = vmatpush1.bf16.msra.mxu1 %v6174_v35  ;;  %v1612_v62 = vld [vmem:[%s9616_s8 + $0x670] sm:$0xff] }
 0x4af   :  { %4826 = vmatprep.subr.bf16.mxu0 %v6151_v12  ;;  %4863 = vmatprep.subr.bf16.mxu1 %v6295_v47  ;;  %v1720_v35 = vld [vmem:[%s9616_s8 + $0x9d0] sm:$0xff]  ;;  %v6110_v47 = vcombine.low %v1472_v5, %v1476_v16  ;;  %v6247_v36 = vcombine.high %v1608_v21, %v1612_v62 }
 0x4b0   :  { %v1724_v12 = vld [vmem:[%s9616_s8 + $0x9f0] sm:$0xff] }
 0x4b1   :  { %v6359_v29 = vcombine.high %v1720_v35, %v1724_v12  ;;  %v6358_v43 = vcombine.low %v1720_v35, %v1724_v12  ;;  %v1844_v38 = vld [vmem:[%s9616_s8 + $0xdb0] sm:$0xff] }
 0x4b2   :  { %4827 = vmatpush2.bf16.msra.mxu0 %v6150_v26  ;;  %4864 = vmatpush2.bf16.msra.mxu1 %v6294_v10  ;;  %v1604_v26 = vld [vmem:[%s9616_s8 + $0x630] sm:$0xff] }
 0x4b3   :  { %4828 = vmatprep.subr.bf16.mxu0 %v6143_v42  ;;  %4865 = vmatprep.subr.bf16.mxu1 %v6287_v20  ;;  %v1712_v10 = vld [vmem:[%s9616_s8 + $0x990] sm:$0xff]  ;;  %v6246_v20 = vcombine.low %v1608_v21, %v1612_v62  ;;  %v6239_v27 = vcombine.high %v1600_v40, %v1604_v26  ;;  %v6238_v2 = vcombine.low %v1600_v40, %v1604_v26 }
 0x4b4   :  { %v1716_v42 = vld [vmem:[%s9616_s8 + $0x9b0] sm:$0xff] }
 0x4b5   :  { %v6351_v45 = vcombine.high %v1712_v10, %v1716_v42  ;;  %v6350_v50 = vcombine.low %v1712_v10, %v1716_v42  ;;  %v1692_v5 = vld [vmem:[%s9616_s8 + $0x8f0] sm:$0xff] }
 0x4b6   :  { %4829 = vmatpush2.bf16.msra.mxu0 %v6142_v46  ;;  %4866 = vmatpush2.bf16.msra.mxu1 %v6286_v24  ;;  %v1708_v46 = vld [vmem:[%s9616_s8 + $0x970] sm:$0xff] }
 0x4b7   :  { %4830 = vmatprep.subr.bf16.mxu0 %v6135_v8  ;;  %4867 = vmatprep.subr.bf16.mxu1 %v6279_v17  ;;  %v1848_v24 = vld [vmem:[%s9616_s8 + $0xdd0] sm:$0xff] }
 0x4b8   :  { %v1852_v8 = vld [vmem:[%s9616_s8 + $0xdf0] sm:$0xff] }
 0x4b9   :  { %v6486_v59 = vcombine.low %v1848_v24, %v1852_v8  ;;  %v1832_v16 = vld [vmem:[%s9616_s8 + $0xd50] sm:$0xff] }
 0x4ba   :  { %4831 = vmatpush2.bf16.msra.mxu0 %v6134_v44  ;;  %4868 = vmatpush2.bf16.msra.mxu1 %v6278_v9  ;;  %v6343_v44 = vcombine.high %v1704_v11, %v1708_v46  ;;  %v6487_v9 = vcombine.high %v1848_v24, %v1852_v8  ;;  %v1836_v19 = vld [vmem:[%s9616_s8 + $0xd70] sm:$0xff] }
 0x4bb   :  { %4832 = vmatprep.subr.bf16.mxu0 %v6127_v55  ;;  %4869 = vmatprep.subr.bf16.mxu1 %v6271_v31  ;;  %v1696_v31 = vld [vmem:[%s9616_s8 + $0x910] sm:$0xff]  ;;  %v6471_v62 = vcombine.high %v1832_v16, %v1836_v19  ;;  %v6470_v26 = vcombine.low %v1832_v16, %v1836_v19 }
 0x4bc   :  { %v1680_v35 = vld [vmem:[%s9616_s8 + $0x890] sm:$0xff] }
 0x4bd   :  { %v1796_v16 = vld [vmem:[%s9616_s8 + $0xc30] sm:$0xff] }
 0x4be   :  { %4833 = vmatpush2.bf16.msra.mxu0 %v6126_v23  ;;  %4870 = vmatpush2.bf16.msra.mxu1 %v6270_v7 }
 0x4bf   :  { %4834 = vmatprep.subr.bf16.mxu0 %v6119_v63  ;;  %4871 = vmatprep.subr.bf16.mxu1 %v6263_v1  ;;  %v1688_v63 = vld [vmem:[%s9616_s8 + $0x8d0] sm:$0xff]  ;;  %v6479_v1 = vcombine.high %v1840_v56, %v1844_v38 }
 0x4c0   :  { %v6327_v21 = vcombine.high %v1688_v63, %v1692_v5  ;;  %v6326_v40 = vcombine.low %v1688_v63, %v1692_v5  ;;  %v1776_v63 = vld [vmem:[%s9616_s8 + $0xb90] sm:$0xff] }
 0x4c1   :  { %v1792_v5 = vld [vmem:[%s9616_s8 + $0xc10] sm:$0xff] }
 0x4c2   :  { %4835 = vmatpush2.bf16.msra.mxu0 %v6118_v6  ;;  %4872 = vmatpush2.bf16.msra.mxu1 %v6262_v60 }
 0x4c3   :  { %4836 = vmatprep.subr.bf16.mxu0 %v6111_v4  ;;  %4873 = vmatprep.subr.bf16.mxu1 %v6255_v14  ;;  %v6478_v4 = vcombine.low %v1840_v56, %v1844_v38  ;;  %v1800_v56 = vld [vmem:[%s9616_s8 + $0xc50] sm:$0xff] }
 0x4c4   :  { %v1804_v38 = vld [vmem:[%s9616_s8 + $0xc70] sm:$0xff] }
 0x4c6   :  { %4837 = vmatpush2.bf16.msra.mxu0 %v6110_v47  ;;  %4874 = vmatpush2.bf16.msra.mxu1 %v6254_v41  ;;  %v1684_v47 = vld [vmem:[%s9616_s8 + $0x8b0] sm:$0xff] }
 0x4c7   :  { %4875 = vmatprep.subr.bf16.mxu1 %v6247_v36  ;;  %4888 = vmatprep.subr.bf16.mxu0 %v6359_v29  ;;  %v1824_v41 = vld [vmem:[%s9616_s8 + $0xd10] sm:$0xff]  ;;  %v6319_v42 = vcombine.high %v1680_v35, %v1684_v47 }
 0x4c8   :  { %v1828_v36 = vld [vmem:[%s9616_s8 + $0xd30] sm:$0xff] }
 0x4c9   :  { %v4594_v17 = vpop.f32.mrf.mxu0  ;;  %4839 = vmatmul.mubr.bf16.vlgmr.msra.gmra.mxu0 %v7913_v53  ;;  %v6462_v24 = vcombine.low %v1824_v41, %v1828_v36 }
 0x4ca   :  { %v4595_v34 = vadd.f32 %v4594_v17, %v8587_v3  ;;  %4876 = vmatpush2.bf16.msra.mxu1 %v6246_v20  ;;  %4889 = vmatpush1.bf16.msra.mxu0 %v6358_v43  ;;  %v1700_v3 = vld [vmem:[%s9616_s8 + $0x930] sm:$0xff]  ;;  %v6463_v20 = vcombine.high %v1824_v41, %v1828_v36  ;;  %v6430_v41 = vcombine.low %v1792_v5, %v1796_v16 }
 0x4cb   :  { %4920 = vmatprep.mubr.bf16.mxu0 %v7996_v54  ;;  %v4596_v51 = vpop.f32.mrf.mxu0  ;;  %4877 = vmatprep.subr.bf16.mxu1 %v6239_v27  ;;  %v6335_v7 = vcombine.high %v1696_v31, %v1700_v3  ;;  %v6334_v60 = vcombine.low %v1696_v31, %v1700_v3  ;;  %v1672_v43 = vld [vmem:[%s9616_s8 + $0x850] sm:$0xff] }
 0x4cc   :  { %v4597_v55 = vadd.f32 %v4596_v51, %v8593_v32  ;;  %4890 = vmatprep.subr.bf16.mxu0 %v6351_v45  ;;  %v6342_v32 = vcombine.low %v1704_v11, %v1708_v46  ;;  %v1676_v27 = vld [vmem:[%s9616_s8 + $0x870] sm:$0xff]  ;;  %v6318_v46 = vcombine.low %v1680_v35, %v1684_v47 }
 0x4cd   :  { %v4598_v22 = vpop.f32.mrf.mxu0  ;;  %v1816_v11 = vld [vmem:[%s9616_s8 + $0xcd0] sm:$0xff]  ;;  %v6311_v8 = vcombine.high %v1672_v43, %v1676_v27 }
 0x4ce   :  { %4878 = vmatpush2.bf16.msra.mxu1 %v6238_v2  ;;  %4891 = vmatpush1.bf16.msra.mxu0 %v6350_v50  ;;  %v1820_v45 = vld [vmem:[%s9616_s8 + $0xcf0] sm:$0xff] }
 0x4cf   :  { %v4599_v23 = vpop.f32.mrf.mxu0  ;;  %4892 = vmatprep.subr.bf16.mxu0 %v6343_v44  ;;  %4929 = vmatprep.subr.bf16.mxu1 %v6487_v9  ;;  %v6455_v17 = vcombine.high %v1816_v11, %v1820_v45  ;;  %v1668_v2 = vld [vmem:[%s9616_s8 + $0x830] sm:$0xff]  ;;  %v6310_v44 = vcombine.low %v1672_v43, %v1676_v27  ;;  %v6454_v9 = vcombine.low %v1816_v11, %v1820_v45 }
 0x4d0   :  { %v1808_v50 = vld [vmem:[%s9616_s8 + $0xc90] sm:$0xff] }
 0x4d1   :  { %v4635_v58 = vpop.f32.mrf.mxu1  ;;  %4880 = vmatmul.mubr.bf16.vlgmr.msra.gmra.mxu1 %v7954_v28  ;;  %v1812_v51 = vld [vmem:[%s9616_s8 + $0xcb0] sm:$0xff] }
 0x4d2   :  { %v8789_v6 = vadd.f32 %v4635_v58, %v4595_v34  ;;  %4893 = vmatpush1.bf16.msra.mxu0 %v6342_v32  ;;  %4930 = vmatpush1.bf16.msra.mxu1 %v6486_v59  ;;  %v1664_v34 = vld [vmem:[%s9616_s8 + $0x810] sm:$0xff]  ;;  %v6447_v31 = vcombine.high %v1808_v50, %v1812_v51  ;;  %v6446_v59 = vcombine.low %v1808_v50, %v1812_v51 }
 0x4d3   :  { %4961 = vmatprep.mubr.bf16.mxu1 %v8027_v61  ;;  %v4637_v14 = vpop.f32.mrf.mxu1  ;;  %4894 = vmatprep.subr.bf16.mxu0 %v6335_v7  ;;  %v1784_v3 = vld [vmem:[%s9616_s8 + $0xbd0] sm:$0xff]  ;;  %v6302_v32 = vcombine.low %v1664_v34, %v1668_v2  ;;  %v6439_v7 = vcombine.high %v1800_v56, %v1804_v38  ;;  %v6438_v58 = vcombine.low %v1800_v56, %v1804_v38 }
 0x4d4   :  { %v8795_v12 = vadd.f32 %v4637_v14, %v4597_v55  ;;  %4931 = vmatprep.subr.bf16.mxu1 %v6479_v1  ;;  %v6303_v55 = vcombine.high %v1664_v34, %v1668_v2  ;;  %v1788_v22 = vld [vmem:[%s9616_s8 + $0xbf0] sm:$0xff] }
 0x4d5   :  { %v4639_v29 = vpop.f32.mrf.mxu1  ;;  %v6423_v23 = vcombine.high %v1784_v3, %v1788_v22  ;;  %v1780_v1 = vld [vmem:[%s9616_s8 + $0xbb0] sm:$0xff]  ;;  %v6422_v19 = vcombine.low %v1784_v3, %v1788_v22 }
 0x4d6   :  { %4895 = vmatpush1.bf16.msra.mxu0 %v6334_v60  ;;  %4932 = vmatpush1.bf16.msra.mxu1 %v6478_v4  ;;  %v6415_v60 = vcombine.high %v1776_v63, %v1780_v1  ;;  %v6431_v4 = vcombine.high %v1792_v5, %v1796_v16  ;;  %v1768_v14 = vld [vmem:[%s9616_s8 + $0xb50] sm:$0xff]  ;;  %v6414_v47 = vcombine.low %v1776_v63, %v1780_v1 }
 0x4d7   :  { %v4640_v10 = vpop.f32.mrf.mxu1  ;;  %4896 = vmatprep.subr.bf16.mxu0 %v6327_v21  ;;  %4933 = vmatprep.subr.bf16.mxu1 %v6471_v62  ;;  %v1772_v21 = vld [vmem:[%s9616_s8 + $0xb70] sm:$0xff] }
 0x4d8   :  { %v1912_v62 = vld [vmem:[%s9616_s8 + $0xfd0] sm:$0xff]  ;;  %v6407_v36 = vcombine.high %v1768_v14, %v1772_v21 }
 0x4d9   :  { %v1916_v35 = vld [vmem:[%s9616_s8 + $0xff0] sm:$0xff] }
 0x4da   :  { %4897 = vmatpush1.bf16.msra.mxu0 %v6326_v40  ;;  %4934 = vmatpush1.bf16.msra.mxu1 %v6470_v26  ;;  %v6551_v29 = vcombine.high %v1912_v62, %v1916_v35  ;;  %v1760_v40 = vld [vmem:[%s9616_s8 + $0xb10] sm:$0xff]  ;;  %v6550_v43 = vcombine.low %v1912_v62, %v1916_v35 }
 0x4db   :  { %4898 = vmatprep.subr.bf16.mxu0 %v6319_v42  ;;  %4935 = vmatprep.subr.bf16.mxu1 %v6463_v20  ;;  %v1764_v26 = vld [vmem:[%s9616_s8 + $0xb30] sm:$0xff]  ;;  %v6406_v20 = vcombine.low %v1768_v14, %v1772_v21 }
 0x4dc   :  { %v1904_v10 = vld [vmem:[%s9616_s8 + $0xf90] sm:$0xff]  ;;  %v6399_v27 = vcombine.high %v1760_v40, %v1764_v26 }
 0x4dd   :  { %v1908_v42 = vld [vmem:[%s9616_s8 + $0xfb0] sm:$0xff] }
 0x4de   :  { %4899 = vmatpush1.bf16.msra.mxu0 %v6318_v46  ;;  %4936 = vmatpush1.bf16.msra.mxu1 %v6462_v24  ;;  %v6543_v11 = vcombine.high %v1904_v10, %v1908_v42  ;;  %v1752_v45 = vld [vmem:[%s9616_s8 + $0xad0] sm:$0xff]  ;;  %v6542_v34 = vcombine.low %v1904_v10, %v1908_v42 }
 0x4df   :  { %4900 = vmatprep.subr.bf16.mxu0 %v6311_v8  ;;  %4937 = vmatprep.subr.bf16.mxu1 %v6455_v17  ;;  %v1756_v46 = vld [vmem:[%s9616_s8 + $0xaf0] sm:$0xff]  ;;  %v6398_v17 = vcombine.low %v1760_v40, %v1764_v26 }
 0x4e0   :  { %v1896_v24 = vld [vmem:[%s9616_s8 + $0xf50] sm:$0xff]  ;;  %v6391_v2 = vcombine.high %v1752_v45, %v1756_v46 }
 0x4e1   :  { %v1900_v8 = vld [vmem:[%s9616_s8 + $0xf70] sm:$0xff] }
 0x4e2   :  { %4901 = vmatpush1.bf16.msra.mxu0 %v6310_v44  ;;  %4938 = vmatpush1.bf16.msra.mxu1 %v6454_v9  ;;  %v6535_v50 = vcombine.high %v1896_v24, %v1900_v8  ;;  %v1744_v51 = vld [vmem:[%s9616_s8 + $0xa90] sm:$0xff]  ;;  %v6534_v3 = vcombine.low %v1896_v24, %v1900_v8  ;;  %v1449_v24 = vld [vmem:[%s9616_s8 + $0x158] sm:$0xff] }
 0x4e3   :  { %4902 = vmatprep.subr.bf16.mxu0 %v6303_v55  ;;  %4939 = vmatprep.subr.bf16.mxu1 %v6447_v31  ;;  %v1748_v44 = vld [vmem:[%s9616_s8 + $0xab0] sm:$0xff]  ;;  %v6390_v31 = vcombine.low %v1752_v45, %v1756_v46  ;;  %v1453_v8 = vld [vmem:[%s9616_s8 + $0x178] sm:$0xff] }
 0x4e4   :  { %v1888_v9 = vld [vmem:[%s9616_s8 + $0xf10] sm:$0xff]  ;;  %v6383_v22 = vcombine.high %v1744_v51, %v1748_v44 }
 0x4e5   :  { %v1892_v55 = vld [vmem:[%s9616_s8 + $0xf30] sm:$0xff] }
 0x4e6   :  { %4903 = vmatpush1.bf16.msra.mxu0 %v6302_v32  ;;  %4940 = vmatpush1.bf16.msra.mxu1 %v6446_v59  ;;  %v6527_v56 = vcombine.high %v1888_v9, %v1892_v55  ;;  %v1736_v38 = vld [vmem:[%s9616_s8 + $0xa50] sm:$0xff]  ;;  %v6526_v63 = vcombine.low %v1888_v9, %v1892_v55  ;;  %v6089_v55 = vcombine.high %v1449_v24, %v1453_v8 }
 0x4e7   :  { %4904 = vmatprep.subr.bf16.mxu0 %v6423_v23  ;;  %4941 = vmatprep.subr.bf16.mxu1 %v6439_v7  ;;  %v1740_v32 = vld [vmem:[%s9616_s8 + $0xa70] sm:$0xff]  ;;  %v6382_v7 = vcombine.low %v1744_v51, %v1748_v44 }
 0x4e8   :  { %v1880_v59 = vld [vmem:[%s9616_s8 + $0xed0] sm:$0xff]  ;;  %v6375_v1 = vcombine.high %v1736_v38, %v1740_v32 }
 0x4e9   :  { %v1884_v23 = vld [vmem:[%s9616_s8 + $0xef0] sm:$0xff] }
 0x4ea   :  { %4905 = vmatpush2.bf16.msra.mxu0 %v6422_v19  ;;  %4942 = vmatpush1.bf16.msra.mxu1 %v6438_v58  ;;  %v6519_v5 = vcombine.high %v1880_v59, %v1884_v23  ;;  %v1728_v16 = vld [vmem:[%s9616_s8 + $0xa10] sm:$0xff]  ;;  %v6518_v14 = vcombine.low %v1880_v59, %v1884_v23  ;;  %v1433_v23 = vld [vmem:[%s9616_s8 + $0xd8] sm:$0xff] }
 0x4eb   :  { %4906 = vmatprep.subr.bf16.mxu0 %v6415_v60  ;;  %4943 = vmatprep.subr.bf16.mxu1 %v6431_v4  ;;  %v1732_v19 = vld [vmem:[%s9616_s8 + $0xa30] sm:$0xff]  ;;  %v6374_v4 = vcombine.low %v1736_v38, %v1740_v32  ;;  %v6088_v32 = vcombine.low %v1449_v24, %v1453_v8 }
 0x4ec   :  { %v1872_v58 = vld [vmem:[%s9616_s8 + $0xe90] sm:$0xff]  ;;  %v6367_v21 = vcombine.high %v1728_v16, %v1732_v19 }
 0x4ed   :  { %v1876_v60 = vld [vmem:[%s9616_s8 + $0xeb0] sm:$0xff] }
 0x4ee   :  { %4907 = vmatpush2.bf16.msra.mxu0 %v6414_v47  ;;  %4944 = vmatpush1.bf16.msra.mxu1 %v6430_v41  ;;  %v6511_v62 = vcombine.high %v1872_v58, %v1876_v60  ;;  %v1864_v35 = vld [vmem:[%s9616_s8 + $0xe50] sm:$0xff]  ;;  %v1465_v41 = vld [vmem:[%s9616_s8 + $0x1d8] sm:$0xff]  ;;  %v6510_v40 = vcombine.low %v1872_v58, %v1876_v60 }
 0x4ef   :  { %4908 = vmatprep.subr.bf16.mxu0 %v6407_v36  ;;  %4945 = vmatprep.subr.bf16.mxu1 %v6551_v29  ;;  %v1868_v47 = vld [vmem:[%s9616_s8 + $0xe70] sm:$0xff]  ;;  %v1469_v36 = vld [vmem:[%s9616_s8 + $0x1f8] sm:$0xff]  ;;  %v6366_v29 = vcombine.low %v1728_v16, %v1732_v19 }
 0x4f0   :  { %v6503_v26 = vcombine.high %v1864_v35, %v1868_v47  ;;  %v6105_v10 = vcombine.high %v1465_v41, %v1469_v36  ;;  %v1856_v42 = vld [vmem:[%s9616_s8 + $0xe10] sm:$0xff]  ;;  %v6104_v45 = vcombine.low %v1465_v41, %v1469_v36  ;;  %v1577_v16 = vld [vmem:[%s9616_s8 + $0x558] sm:$0xff] }
 0x4f1   :  { %v1581_v19 = vld [vmem:[%s9616_s8 + $0x578] sm:$0xff] }
 0x4f2   :  { %4909 = vmatpush2.bf16.msra.mxu0 %v6406_v20  ;;  %4946 = vmatpush2.bf16.msra.mxu1 %v6550_v43  ;;  %v1860_v20 = vld [vmem:[%s9616_s8 + $0xe30] sm:$0xff]  ;;  %v1457_v43 = vld [vmem:[%s9616_s8 + $0x198] sm:$0xff]  ;;  %v6217_v41 = vcombine.high %v1577_v16, %v1581_v19 }
 0x4f3   :  { %4910 = vmatprep.subr.bf16.mxu0 %v6399_v27  ;;  %4947 = vmatprep.subr.bf16.mxu1 %v6543_v11  ;;  %v1461_v27 = vld [vmem:[%s9616_s8 + $0x1b8] sm:$0xff]  ;;  %v6502_v11 = vcombine.low %v1864_v35, %v1868_v47  ;;  %v6495_v46 = vcombine.high %v1856_v42, %v1860_v20  ;;  %v6494_v51 = vcombine.low %v1856_v42, %v1860_v20 }
 0x4f4   :  { %v6096_v44 = vcombine.low %v1457_v43, %v1461_v27  ;;  %v1417_v42 = vld [vmem:[%s9616_s8 + $0x58] sm:$0xff] }
 0x4f6   :  { %4911 = vmatpush2.bf16.msra.mxu0 %v6398_v17  ;;  %4948 = vmatpush2.bf16.msra.mxu1 %v6542_v34  ;;  %v1593_v17 = vld [vmem:[%s9616_s8 + $0x5d8] sm:$0xff]  ;;  %v6097_v34 = vcombine.high %v1457_v43, %v1461_v27 }
 0x4f7   :  { %4912 = vmatprep.subr.bf16.mxu0 %v6391_v2  ;;  %4949 = vmatprep.subr.bf16.mxu1 %v6535_v50  ;;  %v1597_v2 = vld [vmem:[%s9616_s8 + $0x5f8] sm:$0xff] }
 0x4f8   :  { %v6232_v59 = vcombine.low %v1593_v17, %v1597_v2 }
 0x4fa   :  { %4913 = vmatpush2.bf16.msra.mxu0 %v6390_v31  ;;  %4950 = vmatpush2.bf16.msra.mxu1 %v6534_v3  ;;  %v6233_v31 = vcombine.high %v1593_v17, %v1597_v2  ;;  %v1441_v3 = vld [vmem:[%s9616_s8 + $0x118] sm:$0xff] }
 0x4fb   :  { %4914 = vmatprep.subr.bf16.mxu0 %v6383_v22  ;;  %4951 = vmatprep.subr.bf16.mxu1 %v6527_v56  ;;  %v1445_v22 = vld [vmem:[%s9616_s8 + $0x138] sm:$0xff] }
 0x4fc   :  { %v1585_v56 = vld [vmem:[%s9616_s8 + $0x598] sm:$0xff] }
 0x4fd   :  { %v1409_v17 = vld [vmem:[%s9616_s8 + $0x18] sm:$0xff] }
 0x4fe   :  { %4915 = vmatpush2.bf16.msra.mxu0 %v6382_v7  ;;  %4952 = vmatpush2.bf16.msra.mxu1 %v6526_v63  ;;  %v1437_v7 = vld [vmem:[%s9616_s8 + $0xf8] sm:$0xff] }
 0x4ff   :  { %4916 = vmatprep.subr.bf16.mxu0 %v6375_v1  ;;  %4953 = vmatprep.subr.bf16.mxu1 %v6519_v5  ;;  %v6081_v1 = vcombine.high %v1441_v3, %v1445_v22  ;;  %v6073_v47 = vcombine.high %v1433_v23, %v1437_v7 }
 0x502   :  { %4917 = vmatpush2.bf16.msra.mxu0 %v6374_v4  ;;  %4954 = vmatpush2.bf16.msra.mxu1 %v6518_v14  ;;  %v6080_v4 = vcombine.low %v1441_v3, %v1445_v22  ;;  %v1533_v3 = vld [vmem:[%s9616_s8 + $0x3f8] sm:$0xff] }
 0x503   :  { %4918 = vmatprep.subr.bf16.mxu0 %v6367_v21  ;;  %4955 = vmatprep.subr.bf16.mxu1 %v6511_v62  ;;  %v1425_v21 = vld [vmem:[%s9616_s8 + $0x98] sm:$0xff] }
 0x504   :  { %v1429_v62 = vld [vmem:[%s9616_s8 + $0xb8] sm:$0xff] }
 0x505   :  { %v6065_v43 = vcombine.high %v1425_v21, %v1429_v62  ;;  %v6064_v24 = vcombine.low %v1425_v21, %v1429_v62  ;;  %v1657_v21 = vld [vmem:[%s9616_s8 + $0x7d8] sm:$0xff] }
 0x506   :  { %4919 = vmatpush2.bf16.msra.mxu0 %v6366_v29  ;;  %4956 = vmatpush2.bf16.msra.mxu1 %v6510_v40  ;;  %v1569_v29 = vld [vmem:[%s9616_s8 + $0x518] sm:$0xff] }
 0x507   :  { %4957 = vmatprep.subr.bf16.mxu1 %v6503_v26  ;;  %4970 = vmatprep.subr.bf16.mxu0 %v6105_v10  ;;  %v1573_v40 = vld [vmem:[%s9616_s8 + $0x538] sm:$0xff]  ;;  %v6072_v10 = vcombine.low %v1433_v23, %v1437_v7 }
 0x508   :  { %v6209_v27 = vcombine.high %v1569_v29, %v1573_v40  ;;  %v6208_v8 = vcombine.low %v1569_v29, %v1573_v40  ;;  %v1521_v23 = vld [vmem:[%s9616_s8 + $0x398] sm:$0xff] }
 0x509   :  { %v4676_v50 = vpop.f32.mrf.mxu0  ;;  %4921 = vmatmul.mubr.bf16.vlgmr.msra.gmra.mxu0 %v8151_v30  ;;  %v1525_v7 = vld [vmem:[%s9616_s8 + $0x3b8] sm:$0xff] }
 0x50a   :  { %4958 = vmatpush2.bf16.msra.mxu1 %v6502_v11  ;;  %4971 = vmatpush1.bf16.msra.mxu0 %v6104_v45  ;;  %v1421_v11 = vld [vmem:[%s9616_s8 + $0x78] sm:$0xff]  ;;  %v6161_v62 = vcombine.high %v1521_v23, %v1525_v7 }
 0x50b   :  { %5002 = vmatprep.mubr.bf16.mxu0 %v7906_v49  ;;  %v4678_v9 = vpop.f32.mrf.mxu0  ;;  %4959 = vmatprep.subr.bf16.mxu1 %v6495_v46  ;;  %v1589_v49 = vld [vmem:[%s9616_s8 + $0x5b8] sm:$0xff]  ;;  %v6057_v2 = vcombine.high %v1417_v42, %v1421_v11 }
 0x50c   :  { %4972 = vmatprep.subr.bf16.mxu0 %v6097_v34  ;;  %v6225_v5 = vcombine.high %v1585_v56, %v1589_v49  ;;  %v6224_v14 = vcombine.low %v1585_v56, %v1589_v49  ;;  %v1561_v45 = vld [vmem:[%s9616_s8 + $0x4d8] sm:$0xff] }
 0x50d   :  { %v4680_v38 = vpop.f32.mrf.mxu0  ;;  %v1565_v46 = vld [vmem:[%s9616_s8 + $0x4f8] sm:$0xff] }
 0x50e   :  { %4960 = vmatpush2.bf16.msra.mxu1 %v6494_v51  ;;  %4973 = vmatpush1.bf16.msra.mxu0 %v6096_v44  ;;  %v1413_v34 = vld [vmem:[%s9616_s8 + $0x38] sm:$0xff] }
 0x50f   :  { %v4681_v63 = vpop.f32.mrf.mxu0  ;;  %4974 = vmatprep.subr.bf16.mxu0 %v6089_v55  ;;  %5011 = vmatprep.subr.bf16.mxu1 %v6233_v31  ;;  %v1553_v51 = vld [vmem:[%s9616_s8 + $0x498] sm:$0xff]  ;;  %v6200_v55 = vcombine.low %v1561_v45, %v1565_v46  ;;  %v6049_v22 = vcombine.high %v1409_v17, %v1413_v34 }
 0x510   :  { %v1557_v44 = vld [vmem:[%s9616_s8 + $0x4b8] sm:$0xff] }
 0x511   :  { %v4717_v58 = vpop.f32.mrf.mxu1  ;;  %4962 = vmatmul.mubr.bf16.vlgmr.msra.gmra.mxu1 %v8180_v13  ;;  %v1529_v31 = vld [vmem:[%s9616_s8 + $0x3d8] sm:$0xff]  ;;  %v6193_v56 = vcombine.high %v1553_v51, %v1557_v44 }
 0x512   :  { %v8989_v60 = vadd.f32 %v4717_v58, %v4676_v50  ;;  %4975 = vmatpush1.bf16.msra.mxu0 %v6088_v32  ;;  %5012 = vmatpush1.bf16.msra.mxu1 %v6232_v59  ;;  %v6201_v50 = vcombine.high %v1561_v45, %v1565_v46  ;;  %v1545_v38 = vld [vmem:[%s9616_s8 + $0x458] sm:$0xff]  ;;  %v6048_v32 = vcombine.low %v1409_v17, %v1413_v34 }
 0x513   :  { %5043 = vmatprep.mubr.bf16.mxu1 %v7947_v0  ;;  %v4719_v35 = vpop.f32.mrf.mxu1  ;;  %4976 = vmatprep.subr.bf16.mxu0 %v6081_v1  ;;  %v6216_v0 = vcombine.low %v1577_v16, %v1581_v19  ;;  %v1549_v49 = vld [vmem:[%s9616_s8 + $0x478] sm:$0xff]  ;;  %v6192_v59 = vcombine.low %v1553_v51, %v1557_v44  ;;  %v6169_v63 = vcombine.high %v1529_v31, %v1533_v3 }
 0x514   :  { %v8998_v36 = vadd.f32 %v4719_v35, %v4678_v9  ;;  %5013 = vmatprep.subr.bf16.mxu1 %v6225_v5  ;;  %v6056_v9 = vcombine.low %v1417_v42, %v1421_v11  ;;  %v6185_v1 = vcombine.high %v1545_v38, %v1549_v49  ;;  %v1537_v5 = vld [vmem:[%s9616_s8 + $0x418] sm:$0xff]  ;;  %v6168_v19 = vcombine.low %v1529_v31, %v1533_v3 }
 0x515   :  { %v4721_v26 = vpop.f32.mrf.mxu1  ;;  %v1541_v16 = vld [vmem:[%s9616_s8 + $0x438] sm:$0xff]  ;;  %v6184_v58 = vcombine.low %v1545_v38, %v1549_v49 }
 0x516   :  { %4977 = vmatpush1.bf16.msra.mxu0 %v6080_v4  ;;  %5014 = vmatpush1.bf16.msra.mxu1 %v6224_v14  ;;  %v1513_v4 = vld [vmem:[%s9616_s8 + $0x358] sm:$0xff]  ;;  %v6177_v35 = vcombine.high %v1537_v5, %v1541_v16  ;;  %v6176_v29 = vcombine.low %v1537_v5, %v1541_v16 }
 0x517   :  { %v4722_v20 = vpop.f32.mrf.mxu1  ;;  %4978 = vmatprep.subr.bf16.mxu0 %v6073_v47  ;;  %5015 = vmatprep.subr.bf16.mxu1 %v6217_v41  ;;  %v1517_v14 = vld [vmem:[%s9616_s8 + $0x378] sm:$0xff]  ;;  %v6160_v41 = vcombine.low %v1521_v23, %v1525_v7 }
 0x518   :  { %v1661_v47 = vld [vmem:[%s9616_s8 + $0x7f8] sm:$0xff] }
 0x519   :  { %v1505_v40 = vld [vmem:[%s9616_s8 + $0x318] sm:$0xff]  ;;  %v6297_v42 = vcombine.high %v1657_v21, %v1661_v47 }
 0x51a   :  { %4979 = vmatpush1.bf16.msra.mxu0 %v6072_v10  ;;  %5016 = vmatpush1.bf16.msra.mxu1 %v6216_v0  ;;  %v1509_v26 = vld [vmem:[%s9616_s8 + $0x338] sm:$0xff]  ;;  %v6153_v0 = vcombine.high %v1513_v4, %v1517_v14 }
 0x51b   :  { %4980 = vmatprep.subr.bf16.mxu0 %v6065_v43  ;;  %5017 = vmatprep.subr.bf16.mxu1 %v6209_v27  ;;  %v1649_v10 = vld [vmem:[%s9616_s8 + $0x798] sm:$0xff]  ;;  %v6152_v43 = vcombine.low %v1513_v4, %v1517_v14  ;;  %v6296_v27 = vcombine.low %v1657_v21, %v1661_v47  ;;  %v6144_v34 = vcombine.low %v1505_v40, %v1509_v26 }
 0x51c   :  { %v1653_v20 = vld [vmem:[%s9616_s8 + $0x7b8] sm:$0xff] }
 0x51d   :  { %v1497_v11 = vld [vmem:[%s9616_s8 + $0x2d8] sm:$0xff]  ;;  %v6289_v17 = vcombine.high %v1649_v10, %v1653_v20 }
 0x51e   :  { %4981 = vmatpush1.bf16.msra.mxu0 %v6064_v24  ;;  %5018 = vmatpush1.bf16.msra.mxu1 %v6208_v8  ;;  %v1501_v45 = vld [vmem:[%s9616_s8 + $0x2f8] sm:$0xff]  ;;  %v6145_v8 = vcombine.high %v1505_v40, %v1509_v26 }
 0x51f   :  { %4982 = vmatprep.subr.bf16.mxu0 %v6057_v2  ;;  %5019 = vmatprep.subr.bf16.mxu1 %v6201_v50  ;;  %v1641_v46 = vld [vmem:[%s9616_s8 + $0x758] sm:$0xff]  ;;  %v6288_v2 = vcombine.low %v1649_v10, %v1653_v20  ;;  %v6136_v3 = vcombine.low %v1497_v11, %v1501_v45 }
 0x520   :  { %v1645_v24 = vld [vmem:[%s9616_s8 + $0x778] sm:$0xff] }
 0x521   :  { %v1489_v50 = vld [vmem:[%s9616_s8 + $0x298] sm:$0xff]  ;;  %v6281_v31 = vcombine.high %v1641_v46, %v1645_v24 }
 0x522   :  { %4983 = vmatpush1.bf16.msra.mxu0 %v6056_v9  ;;  %5020 = vmatpush1.bf16.msra.mxu1 %v6200_v55  ;;  %v1493_v51 = vld [vmem:[%s9616_s8 + $0x2b8] sm:$0xff]  ;;  %v6137_v55 = vcombine.high %v1497_v11, %v1501_v45 }
 0x523   :  { %4984 = vmatprep.subr.bf16.mxu0 %v6049_v22  ;;  %5021 = vmatprep.subr.bf16.mxu1 %v6193_v56  ;;  %v1633_v44 = vld [vmem:[%s9616_s8 + $0x718] sm:$0xff]  ;;  %v6280_v22 = vcombine.low %v1641_v46, %v1645_v24  ;;  %v6128_v7 = vcombine.low %v1489_v50, %v1493_v51 }
 0x524   :  { %v1637_v9 = vld [vmem:[%s9616_s8 + $0x738] sm:$0xff] }
 0x525   :  { %v1481_v56 = vld [vmem:[%s9616_s8 + $0x258] sm:$0xff]  ;;  %v6273_v23 = vcombine.high %v1633_v44, %v1637_v9 }
 0x526   :  { %4985 = vmatpush1.bf16.msra.mxu0 %v6048_v32  ;;  %5022 = vmatpush1.bf16.msra.mxu1 %v6192_v59  ;;  %v1485_v38 = vld [vmem:[%s9616_s8 + $0x278] sm:$0xff]  ;;  %v6129_v59 = vcombine.high %v1489_v50, %v1493_v51 }
 0x527   :  { %4986 = vmatprep.subr.bf16.mxu0 %v6169_v63  ;;  %5023 = vmatprep.subr.bf16.mxu1 %v6185_v1  ;;  %v1625_v49 = vld [vmem:[%s9616_s8 + $0x6d8] sm:$0xff]  ;;  %v6272_v63 = vcombine.low %v1633_v44, %v1637_v9  ;;  %v6120_v14 = vcombine.low %v1481_v56, %v1485_v38 }
 0x528   :  { %v1629_v32 = vld [vmem:[%s9616_s8 + $0x6f8] sm:$0xff] }
 0x529   :  { %v1473_v1 = vld [vmem:[%s9616_s8 + $0x218] sm:$0xff]  ;;  %v6265_v4 = vcombine.high %v1625_v49, %v1629_v32  ;;  %v6264_v21 = vcombine.low %v1625_v49, %v1629_v32 }
 0x52a   :  { %4987 = vmatpush2.bf16.msra.mxu0 %v6168_v19  ;;  %5024 = vmatpush1.bf16.msra.mxu1 %v6184_v58  ;;  %v1477_v5 = vld [vmem:[%s9616_s8 + $0x238] sm:$0xff]  ;;  %v6121_v58 = vcombine.high %v1481_v56, %v1485_v38 }
 0x52b   :  { %4988 = vmatprep.subr.bf16.mxu0 %v6161_v62  ;;  %5025 = vmatprep.subr.bf16.mxu1 %v6177_v35  ;;  %v1617_v16 = vld [vmem:[%s9616_s8 + $0x698] sm:$0xff]  ;;  %v6113_v35 = vcombine.high %v1473_v1, %v1477_v5  ;;  %v6112_v26 = vcombine.low %v1473_v1, %v1477_v5 }
 0x52c   :  { %v1621_v19 = vld [vmem:[%s9616_s8 + $0x6b8] sm:$0xff] }
 0x52d   :  { %v1609_v62 = vld [vmem:[%s9616_s8 + $0x658] sm:$0xff]  ;;  %v6257_v47 = vcombine.high %v1617_v16, %v1621_v19  ;;  %v6256_v10 = vcombine.low %v1617_v16, %v1621_v19 }
 0x52e   :  { %4989 = vmatpush2.bf16.msra.mxu0 %v6160_v41  ;;  %5026 = vmatpush1.bf16.msra.mxu1 %v6176_v29  ;;  %v1613_v41 = vld [vmem:[%s9616_s8 + $0x678] sm:$0xff] }
 0x52f   :  { %4990 = vmatprep.subr.bf16.mxu0 %v6153_v0  ;;  %5027 = vmatprep.subr.bf16.mxu1 %v6297_v42  ;;  %v1721_v29 = vld [vmem:[%s9616_s8 + $0x9d8] sm:$0xff]  ;;  %v6249_v0 = vcombine.high %v1609_v62, %v1613_v41  ;;  %v6248_v45 = vcombine.low %v1609_v62, %v1613_v41 }
 0x530   :  { %v1725_v40 = vld [vmem:[%s9616_s8 + $0x9f8] sm:$0xff] }
 0x531   :  { %v6361_v42 = vcombine.high %v1721_v29, %v1725_v40  ;;  %v1601_v20 = vld [vmem:[%s9616_s8 + $0x618] sm:$0xff]  ;;  %v6360_v46 = vcombine.low %v1721_v29, %v1725_v40 }
 0x532   :  { %4991 = vmatpush2.bf16.msra.mxu0 %v6152_v43  ;;  %5028 = vmatpush2.bf16.msra.mxu1 %v6296_v27  ;;  %v1605_v43 = vld [vmem:[%s9616_s8 + $0x638] sm:$0xff] }
 0x533   :  { %4992 = vmatprep.subr.bf16.mxu0 %v6145_v8  ;;  %5029 = vmatprep.subr.bf16.mxu1 %v6289_v17  ;;  %v1713_v27 = vld [vmem:[%s9616_s8 + $0x998] sm:$0xff]  ;;  %v6241_v24 = vcombine.high %v1601_v20, %v1605_v43  ;;  %v6240_v9 = vcombine.low %v1601_v20, %v1605_v43 }
 0x534   :  { %v1717_v11 = vld [vmem:[%s9616_s8 + $0x9b8] sm:$0xff] }
 0x535   :  { %v1705_v8 = vld [vmem:[%s9616_s8 + $0x958] sm:$0xff]  ;;  %v6353_v17 = vcombine.high %v1713_v27, %v1717_v11 }
 0x536   :  { %4993 = vmatpush2.bf16.msra.mxu0 %v6144_v34  ;;  %5030 = vmatpush2.bf16.msra.mxu1 %v6288_v2  ;;  %v1709_v34 = vld [vmem:[%s9616_s8 + $0x978] sm:$0xff] }
 0x537   :  { %4994 = vmatprep.subr.bf16.mxu0 %v6137_v55  ;;  %5031 = vmatprep.subr.bf16.mxu1 %v6281_v31  ;;  %v1849_v2 = vld [vmem:[%s9616_s8 + $0xdd8] sm:$0xff]  ;;  %v6352_v55 = vcombine.low %v1713_v27, %v1717_v11  ;;  %v6344_v49 = vcombine.low %v1705_v8, %v1709_v34 }
 0x538   :  { %v1853_v50 = vld [vmem:[%s9616_s8 + $0xdf8] sm:$0xff] }
 0x539   :  { %v1697_v56 = vld [vmem:[%s9616_s8 + $0x918] sm:$0xff]  ;;  %v6488_v32 = vcombine.low %v1849_v2, %v1853_v50 }
 0x53a   :  { %4995 = vmatpush2.bf16.msra.mxu0 %v6136_v3  ;;  %5032 = vmatpush2.bf16.msra.mxu1 %v6280_v22  ;;  %v6345_v3 = vcombine.high %v1705_v8, %v1709_v34  ;;  %v6489_v22 = vcombine.high %v1849_v2, %v1853_v50  ;;  %v1841_v38 = vld [vmem:[%s9616_s8 + $0xd98] sm:$0xff] }
 0x53b   :  { %4996 = vmatprep.subr.bf16.mxu0 %v6129_v59  ;;  %5033 = vmatprep.subr.bf16.mxu1 %v6273_v23  ;;  %v1693_v1 = vld [vmem:[%s9616_s8 + $0x8f8] sm:$0xff] }
 0x53c   :  { %v1833_v5 = vld [vmem:[%s9616_s8 + $0xd58] sm:$0xff] }
 0x53d   :  { %v1837_v16 = vld [vmem:[%s9616_s8 + $0xd78] sm:$0xff] }
 0x53e   :  { %4997 = vmatpush2.bf16.msra.mxu0 %v6128_v7  ;;  %5034 = vmatpush2.bf16.msra.mxu1 %v6272_v63  ;;  %v1689_v7 = vld [vmem:[%s9616_s8 + $0x8d8] sm:$0xff] }
 0x53f   :  { %4998 = vmatprep.subr.bf16.mxu0 %v6121_v58  ;;  %5035 = vmatprep.subr.bf16.mxu1 %v6265_v4  ;;  %v6329_v62 = vcombine.high %v1689_v7, %v1693_v1  ;;  %v1825_v41 = vld [vmem:[%s9616_s8 + $0xd18] sm:$0xff]  ;;  %v6328_v40 = vcombine.low %v1689_v7, %v1693_v1 }
 0x540   :  { %v1673_v20 = vld [vmem:[%s9616_s8 + $0x858] sm:$0xff] }
 0x541   :  { %v1677_v43 = vld [vmem:[%s9616_s8 + $0x878] sm:$0xff] }
 0x542   :  { %4999 = vmatpush2.bf16.msra.mxu0 %v6120_v14  ;;  %5036 = vmatpush2.bf16.msra.mxu1 %v6264_v21  ;;  %v1817_v27 = vld [vmem:[%s9616_s8 + $0xcd8] sm:$0xff] }
 0x543   :  { %5000 = vmatprep.subr.bf16.mxu0 %v6113_v35  ;;  %5037 = vmatprep.subr.bf16.mxu1 %v6257_v47  ;;  %v6473_v35 = vcombine.high %v1833_v5, %v1837_v16  ;;  %v1681_v47 = vld [vmem:[%s9616_s8 + $0x898] sm:$0xff] }
 0x544   :  { %v1821_v11 = vld [vmem:[%s9616_s8 + $0xcf8] sm:$0xff] }
 0x545   :  { %v6457_v8 = vcombine.high %v1817_v27, %v1821_v11  ;;  %v1669_v34 = vld [vmem:[%s9616_s8 + $0x838] sm:$0xff] }
 0x546   :  { %5001 = vmatpush2.bf16.msra.mxu0 %v6112_v26  ;;  %5038 = vmatpush2.bf16.msra.mxu1 %v6256_v10  ;;  %v6472_v26 = vcombine.low %v1833_v5, %v1837_v16  ;;  %v1809_v2 = vld [vmem:[%s9616_s8 + $0xc98] sm:$0xff] }
 0x547   :  { %5039 = vmatprep.subr.bf16.mxu1 %v6249_v0  ;;  %5052 = vmatprep.subr.bf16.mxu0 %v6361_v42  ;;  %v1813_v50 = vld [vmem:[%s9616_s8 + $0xcb8] sm:$0xff] }
 0x548   :  { %v1797_v7 = vld [vmem:[%s9616_s8 + $0xc38] sm:$0xff] }
 0x549   :  { %v4758_v51 = vpop.f32.mrf.mxu0  ;;  %5003 = vmatmul.mubr.bf16.vlgmr.msra.gmra.mxu0 %v7913_v53  ;;  %v1701_v53 = vld [vmem:[%s9616_s8 + $0x938] sm:$0xff] }
 0x54a   :  { %v4759_v44 = vadd.f32 %v4758_v51, %v8989_v60  ;;  %5040 = vmatpush2.bf16.msra.mxu1 %v6248_v45  ;;  %5053 = vmatpush1.bf16.msra.mxu0 %v6360_v46  ;;  %v6337_v23 = vcombine.high %v1697_v56, %v1701_v53  ;;  %v6336_v4 = vcombine.low %v1697_v56, %v1701_v53  ;;  %v1801_v56 = vld [vmem:[%s9616_s8 + $0xc58] sm:$0xff] }
 0x54b   :  { %5084 = vmatprep.mubr.bf16.mxu0 %v7996_v54  ;;  %v9165_v31 = vpop.f32.mrf.mxu0  ;;  %5041 = vmatprep.subr.bf16.mxu1 %v6241_v24  ;;  %v1845_v54 = vld [vmem:[%s9616_s8 + $0xdb8] sm:$0xff]  ;;  %v6313_v24 = vcombine.high %v1673_v20, %v1677_v43  ;;  %v6312_v51 = vcombine.low %v1673_v20, %v1677_v43 }
 0x54c   :  { %5054 = vmatprep.subr.bf16.mxu0 %v6353_v17  ;;  %v6481_v63 = vcombine.high %v1841_v38, %v1845_v54  ;;  %v6480_v14 = vcombine.low %v1841_v38, %v1845_v54  ;;  %v1665_v17 = vld [vmem:[%s9616_s8 + $0x818] sm:$0xff]  ;;  %v6448_v38 = vcombine.low %v1809_v2, %v1813_v50 }
 0x54d   :  { %v4762_v60 = vpop.f32.mrf.mxu0  ;;  %v1805_v53 = vld [vmem:[%s9616_s8 + $0xc78] sm:$0xff] }
 0x54e   :  { %5042 = vmatpush2.bf16.msra.mxu1 %v6240_v9  ;;  %5055 = vmatpush1.bf16.msra.mxu0 %v6352_v55  ;;  %v6305_v9 = vcombine.high %v1665_v17, %v1669_v34  ;;  %v6449_v55 = vcombine.high %v1809_v2, %v1813_v50  ;;  %v6304_v60 = vcombine.low %v1665_v17, %v1669_v34  ;;  %v1753_v43 = vld [vmem:[%s9616_s8 + $0xad8] sm:$0xff] }
 0x54f   :  { %v4763_v59 = vpop.f32.mrf.mxu0  ;;  %5056 = vmatprep.subr.bf16.mxu0 %v6345_v3  ;;  %5093 = vmatprep.subr.bf16.mxu1 %v6489_v22  ;;  %v1785_v3 = vld [vmem:[%s9616_s8 + $0xbd8] sm:$0xff]  ;;  %v6440_v1 = vcombine.low %v1801_v56, %v1805_v53 }
 0x550   :  { %v1789_v22 = vld [vmem:[%s9616_s8 + $0xbf8] sm:$0xff] }
 0x551   :  { %v4799_v19 = vpop.f32.mrf.mxu1  ;;  %5044 = vmatmul.mubr.bf16.vlgmr.msra.gmra.mxu1 %v7954_v28  ;;  %v1685_v28 = vld [vmem:[%s9616_s8 + $0x8b8] sm:$0xff]  ;;  %v6425_v54 = vcombine.high %v1785_v3, %v1789_v22 }
 0x552   :  { %v9192_v58 = vadd.f32 %v4799_v19, %v4759_v44  ;;  %5057 = vmatpush1.bf16.msra.mxu0 %v6344_v49  ;;  %5094 = vmatpush1.bf16.msra.mxu1 %v6488_v32  ;;  %v6321_v0 = vcombine.high %v1681_v47, %v1685_v28  ;;  %v6320_v45 = vcombine.low %v1681_v47, %v1685_v28  ;;  %v1777_v32 = vld [vmem:[%s9616_s8 + $0xb98] sm:$0xff] }
 0x553   :  { %5125 = vmatprep.mubr.bf16.mxu1 %v8027_v61  ;;  %v9195_v21 = vpop.f32.mrf.mxu1  ;;  %5058 = vmatprep.subr.bf16.mxu0 %v6337_v23  ;;  %v1829_v61 = vld [vmem:[%s9616_s8 + $0xd38] sm:$0xff]  ;;  %v6456_v44 = vcombine.low %v1817_v27, %v1821_v11  ;;  %v6441_v49 = vcombine.high %v1801_v56, %v1805_v53 }
 0x554   :  { %5095 = vmatprep.subr.bf16.mxu1 %v6481_v63  ;;  %v6465_v42 = vcombine.high %v1825_v41, %v1829_v61  ;;  %v6464_v46 = vcombine.low %v1825_v41, %v1829_v61  ;;  %v1781_v59 = vld [vmem:[%s9616_s8 + $0xbb8] sm:$0xff]  ;;  %v6424_v63 = vcombine.low %v1785_v3, %v1789_v22 }
 0x555   :  { %v4803_v29 = vpop.f32.mrf.mxu1  ;;  %v1793_v23 = vld [vmem:[%s9616_s8 + $0xc18] sm:$0xff]  ;;  %v6417_v5 = vcombine.high %v1777_v32, %v1781_v59 }
 0x556   :  { %5059 = vmatpush1.bf16.msra.mxu0 %v6336_v4  ;;  %5096 = vmatpush1.bf16.msra.mxu1 %v6480_v14  ;;  %v6433_v16 = vcombine.high %v1793_v23, %v1797_v7  ;;  %v1769_v19 = vld [vmem:[%s9616_s8 + $0xb58] sm:$0xff]  ;;  %v6432_v47 = vcombine.low %v1793_v23, %v1797_v7 }
 0x557   :  { %v4804_v10 = vpop.f32.mrf.mxu1  ;;  %5060 = vmatprep.subr.bf16.mxu0 %v6329_v62  ;;  %5097 = vmatprep.subr.bf16.mxu1 %v6473_v35  ;;  %v1773_v4 = vld [vmem:[%s9616_s8 + $0xb78] sm:$0xff]  ;;  %v6416_v35 = vcombine.low %v1777_v32, %v1781_v59 }
 0x558   :  { %v1913_v14 = vld [vmem:[%s9616_s8 + $0xfd8] sm:$0xff]  ;;  %v6409_v28 = vcombine.high %v1769_v19, %v1773_v4  ;;  %v6408_v10 = vcombine.low %v1769_v19, %v1773_v4 }
 0x559   :  { %v1917_v62 = vld [vmem:[%s9616_s8 + $0xff8] sm:$0xff] }
 0x55a   :  { %5061 = vmatpush1.bf16.msra.mxu0 %v6328_v40  ;;  %5098 = vmatpush1.bf16.msra.mxu1 %v6472_v26  ;;  %v6553_v41 = vcombine.high %v1913_v14, %v1917_v62  ;;  %v1761_v61 = vld [vmem:[%s9616_s8 + $0xb18] sm:$0xff] }
 0x55b   :  { %5062 = vmatprep.subr.bf16.mxu0 %v6321_v0  ;;  %5099 = vmatprep.subr.bf16.mxu1 %v6465_v42  ;;  %v1765_v29 = vld [vmem:[%s9616_s8 + $0xb38] sm:$0xff]  ;;  %v6552_v0 = vcombine.low %v1913_v14, %v1917_v62 }
 0x55c   :  { %v1905_v40 = vld [vmem:[%s9616_s8 + $0xf98] sm:$0xff]  ;;  %v6401_v42 = vcombine.high %v1761_v61, %v1765_v29 }
 0x55d   :  { %v1909_v26 = vld [vmem:[%s9616_s8 + $0xfb8] sm:$0xff] }
 0x55e   :  { %5063 = vmatpush1.bf16.msra.mxu0 %v6320_v45  ;;  %5100 = vmatpush1.bf16.msra.mxu1 %v6464_v46  ;;  %v6545_v20 = vcombine.high %v1905_v40, %v1909_v26  ;;  %v1757_v27 = vld [vmem:[%s9616_s8 + $0xaf8] sm:$0xff] }
 0x55f   :  { %5064 = vmatprep.subr.bf16.mxu0 %v6313_v24  ;;  %5101 = vmatprep.subr.bf16.mxu1 %v6457_v8  ;;  %v1897_v11 = vld [vmem:[%s9616_s8 + $0xf58] sm:$0xff]  ;;  %v6400_v24 = vcombine.low %v1761_v61, %v1765_v29  ;;  %v6544_v8 = vcombine.low %v1905_v40, %v1909_v26  ;;  %v6393_v34 = vcombine.high %v1753_v43, %v1757_v27 }
 0x560   :  { %v1901_v45 = vld [vmem:[%s9616_s8 + $0xf78] sm:$0xff]  ;;  %v6392_v3 = vcombine.low %v1753_v43, %v1757_v27  ;;  %v4761_v61 = vadd.f32 %v9165_v31, %v8998_v36 }
 0x561   :  { %v6554_v46 = vld [vmem:[%s9618_s10 + $0x2] ss:$8 sm:$0xf]  ;;  %v6537_v2 = vcombine.high %v1897_v11, %v1901_v45  ;;  %v6536_v22 = vcombine.low %v1897_v11, %v1901_v45  ;;  %v6557_v53 = vld [vmem:[%s9618_s10 + $0x3] ss:$8 sm:$0xf0] }
 0x562   :  { %5065 = vmatpush1.bf16.msra.mxu0 %v6312_v51  ;;  %5102 = vmatpush1.bf16.msra.mxu1 %v6456_v44  ;;  %v6555_v17 = vld [vmem:[%s9618_s10 + $0x2] ss:$8 sm:$0xf0] }
 0x563   :  { %5066 = vmatprep.subr.bf16.mxu0 %v6305_v9  ;;  %5103 = vmatprep.subr.bf16.mxu1 %v6449_v55  ;;  %v1745_v50 = vld [vmem:[%s9616_s8 + $0xa98] sm:$0xff]  ;;  %v9314_v56 = vor.u32 %v6555_v17, %v6554_v46  ;;  %v6995_v17 = vld [vmem:[%s9619_s9 + $0x70] sm:$0xff]  }
 0x564   :  { %v1749_v51 = vld [vmem:[%s9616_s8 + $0xab8] sm:$0xff] }
 0x565   :  { %v1889_v44 = vld [vmem:[%s9616_s8 + $0xf18] sm:$0xff]  ;;  %v5146_v23 = vrot.slane %v9314_v56, %v7878_v15  ;;  %v6384_v7 = vcombine.low %v1745_v50, %v1749_v51 }
 0x566   :  { %5067 = vmatpush1.bf16.msra.mxu0 %v6304_v60  ;;  %5104 = vmatpush1.bf16.msra.mxu1 %v6448_v38  ;;  %v1893_v9 = vld [vmem:[%s9616_s8 + $0xf38] sm:$0xff]  ;;  %v6385_v60 = vcombine.high %v1745_v50, %v1749_v51  ;;  %v6996_v51 = vld [vmem:[%s9619_s9 + $0x30] sm:$0xff]  }
 0x567   :  { %5068 = vmatprep.subr.bf16.mxu0 %v6425_v54  ;;  %5105 = vmatprep.subr.bf16.mxu1 %v6441_v49  ;;  %v6556_v55 = vld [vmem:[%s9618_s10 + $0x3] ss:$8 sm:$0xf]  ;;  %v6529_v38 = vcombine.high %v1889_v44, %v1893_v9 }
 0x568   :  { %v1737_v54 = vld [vmem:[%s9616_s8 + $0xa58] sm:$0xff] }
 0x569   :  { %v1741_v49 = vld [vmem:[%s9616_s8 + $0xa78] sm:$0xff] }
 0x56a   :  { %5069 = vmatpush2.bf16.msra.mxu0 %v6424_v63  ;;  %5106 = vmatpush1.bf16.msra.mxu1 %v6440_v1  ;;  %v1881_v32 = vld [vmem:[%s9616_s8 + $0xed8] sm:$0xff]  ;;  %v6528_v63 = vcombine.low %v1889_v44, %v1893_v9  ;;  %v9333_v1 = vor.u32 %v6557_v53, %v6556_v55  ;;  %v6997_v9 = vld [vmem:[%s9619_s9 + $0x68] sm:$0xff]  }
 0x56b   :  { %5070 = vmatprep.subr.bf16.mxu0 %v6417_v5  ;;  %5107 = vmatprep.subr.bf16.mxu1 %v6433_v16  ;;  %v1885_v59 = vld [vmem:[%s9616_s8 + $0xef8] sm:$0xff]  ;;  %v6377_v5 = vcombine.high %v1737_v54, %v1741_v49 }
 0x56c   :  { %v6521_v16 = vcombine.high %v1881_v32, %v1885_v59  ;;  %v1729_v19 = vld [vmem:[%s9616_s8 + $0xa18] sm:$0xff]  ;;  %v5207_v11 = vrot.slane %v9333_v1, %v7892_v39 }
 0x56d   :  { %v1733_v4 = vld [vmem:[%s9616_s8 + $0xa38] sm:$0xff] }
 0x56e   :  { %5071 = vmatpush2.bf16.msra.mxu0 %v6416_v35  ;;  %5108 = vmatpush1.bf16.msra.mxu1 %v6432_v47  ;;  %v1873_v14 = vld [vmem:[%s9616_s8 + $0xe98] sm:$0xff]  ;;  %v5180_v35 = vmul.f32 %v5146_v23, %v8795_v12  ;;  %v5199_v47 = vrot.slane %v9333_v1, %v7878_v15  ;;  %v6369_v29 = vcombine.high %v1729_v19, %v1733_v4  ;;  %v7004_v23 = vld [vmem:[%s9619_s9 + $0xb0] sm:$0xff]  }
 0x56f   :  { %5072 = vmatprep.subr.bf16.mxu0 %v6409_v28  ;;  %5109 = vmatprep.subr.bf16.mxu1 %v6553_v41  ;;  %v1877_v62 = vld [vmem:[%s9616_s8 + $0xeb8] sm:$0xff]  ;;  %v6376_v28 = vcombine.low %v1737_v54, %v1741_v49  ;;  %v6520_v41 = vcombine.low %v1881_v32, %v1885_v59  ;;  %v6368_v36 = vcombine.low %v1729_v19, %v1733_v4  ;;  %v7002_v54 = vld [vmem:[%s9619_s9 + $0xf0] sm:$0xff]   ;;  %v7003_v59 = vld [vmem:[%s9619_s9 + $0x20] sm:$0xff]  }
 0x570   :  { %v6513_v40 = vcombine.high %v1873_v14, %v1877_v62  ;;  %v1865_v26 = vld [vmem:[%s9616_s8 + $0xe58] sm:$0xff]  ;;  %v5233_v15 = vadd.f32 %v5199_v47, %v5180_v35  ;;  %v6512_v31 = vcombine.low %v1873_v14, %v1877_v62  ;;  %v7008_v19 = vld [vmem:[%s9619_s9 + $0xa8] sm:$0xff]   ;;  %v5142_v4 = vrot.slane %v9314_v56, %v7870_v57  ;;  %v7009_v62 = vld [vmem:[%s9619_s9 + $0x50] sm:$0xff]  }
 0x571   :  { %v1869_v12 = vld [vmem:[%s9616_s8 + $0xe78] sm:$0xff]  ;;  %v7010_v35 = vld [vmem:[%s9619_s9 + $0xe0] sm:$0xff]   ;;  %v7011_v47 = vld [vmem:[%s9619_s9 + $0x10] sm:$0xff]  }
 0x572   :  { %5073 = vmatpush2.bf16.msra.mxu0 %v6408_v10  ;;  %5110 = vmatpush2.bf16.msra.mxu1 %v6552_v0  ;;  %v4802_v10 = vadd.f32 %v9195_v21, %v4761_v61  ;;  %v5154_v0 = vrot.slane %v9314_v56, %v7892_v39  ;;  %v1857_v43 = vld [vmem:[%s9616_s8 + $0xe18] sm:$0xff]  ;;  %v5241_v45 = vmax.f32 %v5233_v15, 0.0  ;;  %v6504_v46 = vcombine.low %v1865_v26, %v1869_v12  ;;  %v7017_v15 = vld [vmem:[%s9619_s9 + $0x40] sm:$0xff]  }
 0x573   :  { %5074 = vmatprep.subr.bf16.mxu0 %v6401_v42  ;;  %5111 = vmatprep.subr.bf16.mxu1 %v6545_v20  ;;  %v6505_v42 = vcombine.high %v1865_v26, %v1869_v12  ;;  %v6993_v20 = vld [vmem:[%s9619_s9 + $0x78] sm:$0xff]   ;;  %v5195_v61 = vrot.slane %v9333_v1, %v7870_v57  ;;  %v7015_v26 = vld [vmem:[%s9619_s9 + $0x8] sm:$0xff]   ;;  %v5150_v12 = vrot.slane %v9314_v56, %v7889_v52 }
 0x574   :  { %v1861_v21 = vld [vmem:[%s9616_s8 + $0xe38] sm:$0xff]  ;;  %v5182_v27 = vmul.f32 %v5154_v0, %v4802_v10  ;;  %v5249_v39 = vpack.c.bf16 %v5241_v45, %v5241_v45  ;;  %v7018_v10 = vld [vmem:[%s9619_s9 + $0xd0] sm:$0xff]   ;;  %v7019_v0 = vld [vmem:[%s9619_s9] sm:$0xff]  }
 0x575   :  { %v6496_v50 = vcombine.low %v1857_v43, %v1861_v21  ;;  %v7000_v53 = vld [vmem:[%s9619_s9 + $0xb8] sm:$0xff]   ;;  %v7023_v45 = vld [vmem:[%s9619_s9 + $0xc0] sm:$0xff]  }
 0x576   :  { %5075 = vmatpush2.bf16.msra.mxu0 %v6400_v24  ;;  %5112 = vmatpush2.bf16.msra.mxu1 %v6544_v8  ;;  %v6994_v24 = vld [vmem:[%s9619_s9 + $0x38] sm:$0xff]   ;;  %v6497_v8 = vcombine.high %v1857_v43, %v1861_v21  ;;  %v7021_v43 = vld [vmem:[%s9619_s9 + $0xc8] sm:$0xff]  }
 0x577   :  { %5076 = vmatprep.subr.bf16.mxu0 %v6393_v34  ;;  %5113 = vmatprep.subr.bf16.mxu1 %v6537_v2  ;;  %v5235_v34 = vadd.f32 %v5207_v11, %v5182_v27  ;;  %v7016_v57 = vld [vmem:[%s9619_s9 + $0x98] sm:$0xff]   ;;  %v7022_v27 = vld [vmem:[%s9619_s9 + $0x88] sm:$0xff]  }
 0x578   :  { %v7025_v21 = vld [vmem:[%s9619_s9 + $0x178] sm:$0xff]  }
 0x57a   :  { %5077 = vmatpush2.bf16.msra.mxu0 %v6392_v3  ;;  %5114 = vmatpush2.bf16.msra.mxu1 %v6536_v22  ;;  %v5243_v3 = vmax.f32 %v5235_v34, 0.0  ;;  %v6999_v22 = vld [vmem:[%s9619_s9 + $0x28] sm:$0xff]  }
 0x57b   :  { %5078 = vmatprep.subr.bf16.mxu0 %v6385_v60  ;;  %5115 = vmatprep.subr.bf16.mxu1 %v6529_v38  ;;  %v7001_v38 = vld [vmem:[%s9619_s9 + $0x60] sm:$0xff]   ;;  %v7029_v34 = vld [vmem:[%s9619_s9 + $0x168] sm:$0xff]  }
 0x57c   :  { %v5251_v32 = vpack.c.bf16 %v5243_v3, %v5243_v3  ;;  %v7032_v3 = vld [vmem:[%s9619_s9 + $0x120] sm:$0xff]  }
 0x57e   :  { %5079 = vmatpush2.bf16.msra.mxu0 %v6384_v7  ;;  %5116 = vmatpush2.bf16.msra.mxu1 %v6528_v63  ;;  %v7005_v63 = vld [vmem:[%s9619_s9 + $0x58] sm:$0xff]  }
 0x57f   :  { %5080 = vmatprep.subr.bf16.mxu0 %v6377_v5  ;;  %5117 = vmatprep.subr.bf16.mxu1 %v6521_v16  ;;  %v7007_v16 = vld [vmem:[%s9619_s9 + $0x18] sm:$0xff]  }
 0x582   :  { %5081 = vmatpush2.bf16.msra.mxu0 %v6376_v28  ;;  %5118 = vmatpush2.bf16.msra.mxu1 %v6520_v41  ;;  %v7012_v28 = vld [vmem:[%s9619_s9 + $0xa0] sm:$0xff]   ;;  %v5179_v41 = vmul.f32 %v5142_v4, %v8789_v6 }
 0x583   :  { %5082 = vmatprep.subr.bf16.mxu0 %v6369_v29  ;;  %5119 = vmatprep.subr.bf16.mxu1 %v6513_v40  ;;  %v7013_v29 = vld [vmem:[%s9619_s9 + $0x48] sm:$0xff]   ;;  %v7014_v40 = vld [vmem:[%s9619_s9 + $0xd8] sm:$0xff]  }
 0x584   :  { %v5232_v6 = vadd.f32 %v5195_v61, %v5179_v41  ;;  %v7050_v41 = vld [vmem:[%s9619_s9 + $0x198] sm:$0xff]  }
 0x586   :  { %5083 = vmatpush2.bf16.msra.mxu0 %v6368_v36  ;;  %5120 = vmatpush2.bf16.msra.mxu1 %v6512_v31  ;;  %v7020_v36 = vld [vmem:[%s9619_s9 + $0x90] sm:$0xff]   ;;  %v5240_v31 = vmax.f32 %v5232_v6, 0.0  ;;  %v5162_v6 = vrot.slane %v9314_v56, %v7917_v48 }
 0x587   :  { %5121 = vmatprep.subr.bf16.mxu1 %v6505_v42  ;;  %6769 = vmatprep.subr.bf16.mxu0 %v6993_v20  ;;  %v5181_v42 = vmul.f32 %v5150_v12, %v9192_v58  ;;  %v5203_v20 = vrot.slane %v9333_v1, %v7889_v52  ;;  %v7026_v52 = vld [vmem:[%s9619_s9 + $0x138] sm:$0xff]   ;;  %v7051_v12 = vld [vmem:[%s9619_s9 + $0x1d0] sm:$0xff]  }
 0x588   :  { %v5248_v58 = vpack.c.bf16 %v5240_v31, %v5240_v31 }
 0x589   :  { %v9378_v2 = vpop.f32.mrf.mxu0  ;;  %5085 = vmatmul.mubr.bf16.vlgmr.msra.gmra.mxu0 %v8151_v30  ;;  %v6998_v30 = vld [vmem:[%s9619_s9 + $0xf8] sm:$0xff]   ;;  %v5234_v11 = vadd.f32 %v5203_v20, %v5181_v42  ;;  %v7053_v42 = vld [vmem:[%s9619_s9 + $0x1c8] sm:$0xff]  }
 0x58a   :  { %5122 = vmatpush2.bf16.msra.mxu1 %v6504_v46  ;;  %6770 = vmatpush3.bf16.msra.mxu0 %v6994_v24  ;;  %v7027_v46 = vld [vmem:[%s9619_s9 + $0x170] sm:$0xff]   ;;  %v7024_v24 = vld [vmem:[%s9619_s9 + $0x80] sm:$0xff]  }
 0x58b   :  { %5805 = vmatprep.mubr.bf16.mxu0 %v5249_v39  ;;  %v9384_v44 = vpop.f32.mrf.mxu0  ;;  %5123 = vmatprep.subr.bf16.mxu1 %v6497_v8  ;;  %v7028_v8 = vld [vmem:[%s9619_s9 + $0x130] sm:$0xff]   ;;  %v7041_v39 = vld [vmem:[%s9619_s9 + $0x1f8] sm:$0xff]  }
 0x58c   :  { %6771 = vmatprep.subr.bf16.mxu0 %v6995_v17  ;;  %v5242_v17 = vmax.f32 %v5234_v11, 0.0 }
 0x58d   :  { %v4844_v55 = vpop.f32.mrf.mxu0 }
 0x58e   :  { %5124 = vmatpush2.bf16.msra.mxu1 %v6496_v50  ;;  %6772 = vmatpush3.bf16.msra.mxu0 %v6996_v51  ;;  %v7030_v50 = vld [vmem:[%s9619_s9 + $0x128] sm:$0xff]   ;;  %v7042_v51 = vld [vmem:[%s9619_s9 + $0x1b8] sm:$0xff]   ;;  %v7043_v55 = vld [vmem:[%s9619_s9 + $0x1f0] sm:$0xff]  }
 0x58f   :  { %v4845_v60 = vpop.f32.mrf.mxu0  ;;  %6773 = vmatprep.subr.bf16.mxu0 %v6997_v9  ;;  %6791 = vmatprep.subr.bf16.mxu1 %v6998_v30  ;;  %v5250_v9 = vpack.c.bf16 %v5242_v17, %v5242_v17  ;;  %v7031_v30 = vld [vmem:[%s9619_s9 + $0x160] sm:$0xff]  }
 0x590   :  { %v7045_v60 = vld [vmem:[%s9619_s9 + $0x1e8] sm:$0xff]  }
 0x591   :  { %v9404_v49 = vpop.f32.mrf.mxu1  ;;  %5126 = vmatmul.mubr.bf16.vlgmr.msra.gmra.mxu1 %v8180_v13  ;;  %v7006_v13 = vld [vmem:[%s9619_s9 + $0xe8] sm:$0xff]  }
 0x592   :  { %6774 = vmatpush3.bf16.msra.mxu0 %v6999_v22  ;;  %6792 = vmatpush3.bf16.msra.mxu1 %v7000_v53  ;;  %v7044_v22 = vld [vmem:[%s9619_s9 + $0x1b0] sm:$0xff]   ;;  %v7033_v53 = vld [vmem:[%s9619_s9 + $0x158] sm:$0xff]  }
 0x593   :  { %5845 = vmatprep.mubr.bf16.mxu1 %v5251_v32  ;;  %v9413_v7 = vpop.f32.mrf.mxu1  ;;  %6775 = vmatprep.subr.bf16.mxu0 %v7001_v38  ;;  %v7034_v38 = vld [vmem:[%s9619_s9 + $0x118] sm:$0xff]   ;;  %v7035_v32 = vld [vmem:[%s9619_s9 + $0x150] sm:$0xff]  }
 0x594   :  { %6793 = vmatprep.subr.bf16.mxu1 %v7002_v54  ;;  %v7046_v54 = vld [vmem:[%s9619_s9 + $0x1a8] sm:$0xff]   ;;  %v4884_v61 = vadd.f32 %v9413_v7, %v9384_v44  ;;  %v7052_v7 = vld [vmem:[%s9619_s9 + $0x190] sm:$0xff]  }
 0x595   :  { %v4885_v5 = vpop.f32.mrf.mxu1 }
 0x596   :  { %6776 = vmatpush3.bf16.msra.mxu0 %v7003_v59  ;;  %6794 = vmatpush3.bf16.msra.mxu1 %v7004_v23  ;;  %v7036_v59 = vld [vmem:[%s9619_s9 + $0x110] sm:$0xff]   ;;  %v7037_v23 = vld [vmem:[%s9619_s9 + $0x148] sm:$0xff]   ;;  %v7040_v5 = vld [vmem:[%s9619_s9 + $0x100] sm:$0xff]  }
 0x597   :  { %v4886_v14 = vpop.f32.mrf.mxu1  ;;  %6777 = vmatprep.subr.bf16.mxu0 %v7005_v63  ;;  %6795 = vmatprep.subr.bf16.mxu1 %v7006_v13  ;;  %v7038_v63 = vld [vmem:[%s9619_s9 + $0x108] sm:$0xff]   ;;  %v7039_v13 = vld [vmem:[%s9619_s9 + $0x140] sm:$0xff]  }
 0x598   :  { %v7048_v14 = vld [vmem:[%s9619_s9 + $0x1a0] sm:$0xff]  }
 0x59a   :  { %6778 = vmatpush3.bf16.msra.mxu0 %v7007_v16  ;;  %6796 = vmatpush3.bf16.msra.mxu1 %v7008_v19  ;;  %v7047_v19 = vld [vmem:[%s9619_s9 + $0x1e0] sm:$0xff]  }
 0x59b   :  { %6779 = vmatprep.subr.bf16.mxu0 %v7009_v62  ;;  %6797 = vmatprep.subr.bf16.mxu1 %v7010_v35  ;;  %v4882_v35 = vadd.f32 %v9404_v49, %v9378_v2 }
 0x59e   :  { %6780 = vmatpush3.bf16.msra.mxu0 %v7011_v47  ;;  %6798 = vmatpush3.bf16.msra.mxu1 %v7012_v28  ;;  %v7049_v47 = vld [vmem:[%s9619_s9 + $0x1d8] sm:$0xff]  }
 0x59f   :  { %6781 = vmatprep.subr.bf16.mxu0 %v7013_v29  ;;  %6799 = vmatprep.subr.bf16.mxu1 %v7014_v40  ;;  %v5158_v40 = vrot.slane %v9314_v56, %v7911_v25 }
 0x5a2   :  { %6782 = vmatpush3.bf16.msra.mxu0 %v7015_v26  ;;  %6800 = vmatpush3.bf16.msra.mxu1 %v7016_v57  ;;  %v5211_v57 = vrot.slane %v9333_v1, %v7911_v25 }
 0x5a3   :  { %6783 = vmatprep.subr.bf16.mxu0 %v7017_v15  ;;  %6801 = vmatprep.subr.bf16.mxu1 %v7018_v10 }
 0x5a6   :  { %6784 = vmatpush3.bf16.msra.mxu0 %v7019_v0  ;;  %6802 = vmatpush3.bf16.msra.mxu1 %v7020_v36  ;;  %v5215_v0 = vrot.slane %v9333_v1, %v7917_v48  ;;  %v7055_v48 = vld [vmem:[%s9619_s9 + $0x1c0] sm:$0xff]  }
 0x5a7   :  { %6803 = vmatprep.subr.bf16.mxu1 %v7021_v43  ;;  %6813 = vmatprep.subr.bf16.mxu0 %v7025_v21  ;;  %v7054_v43 = vld [vmem:[%s9619_s9 + $0x188] sm:$0xff]  }
 0x5a9   :  { %5806 = vmatmul.mubr.bf16.vlgmr.msra.gmra.mxu0 %v5248_v58  ;;  %v7056_v58 = vld [vmem:[%s9619_s9 + $0x180] sm:$0xff]  }
 0x5aa   :  { %6804 = vmatpush3.bf16.msra.mxu1 %v7022_v27  ;;  %6814 = vmatpush3.bf16.msra.mxu0 %v7026_v52 }
 0x5ab   :  { %6805 = vmatprep.subr.bf16.mxu1 %v7023_v45  ;;  %6815 = vmatprep.subr.bf16.mxu0 %v7027_v46 }
 0x5ae   :  { %6806 = vmatpush3.bf16.msra.mxu1 %v7024_v24  ;;  %6816 = vmatpush3.bf16.msra.mxu0 %v7028_v8 }
 0x5af   :  { %6817 = vmatprep.subr.bf16.mxu0 %v7029_v34  ;;  %6835 = vmatprep.subr.bf16.mxu1 %v7041_v39 }
 0x5b1   :  { %5846 = vmatmul.mubr.bf16.vlgmr.msra.gmra.mxu1 %v5250_v9 }
 0x5b2   :  { %6818 = vmatpush3.bf16.msra.mxu0 %v7030_v50  ;;  %6836 = vmatpush3.bf16.msra.mxu1 %v7042_v51 }
 0x5b3   :  { %6819 = vmatprep.subr.bf16.mxu0 %v7031_v30  ;;  %6837 = vmatprep.subr.bf16.mxu1 %v7043_v55 }
 0x5b6   :  { %6820 = vmatpush3.bf16.msra.mxu0 %v7032_v3  ;;  %6838 = vmatpush3.bf16.msra.mxu1 %v7044_v22 }
 0x5b7   :  { %6821 = vmatprep.subr.bf16.mxu0 %v7033_v53  ;;  %6839 = vmatprep.subr.bf16.mxu1 %v7045_v60 }
 0x5ba   :  { %6822 = vmatpush3.bf16.msra.mxu0 %v7034_v38  ;;  %6840 = vmatpush3.bf16.msra.mxu1 %v7046_v54  ;;  %v5166_v38 = vrot.slane %v9314_v56, %v7952_v33 }
 0x5bb   :  { %6823 = vmatprep.subr.bf16.mxu0 %v7035_v32  ;;  %6841 = vmatprep.subr.bf16.mxu1 %v7047_v19  ;;  %v5223_v19 = vrot.slane %v9333_v1, %v7963_v37 }
 0x5be   :  { %6824 = vmatpush3.bf16.msra.mxu0 %v7036_v59  ;;  %6842 = vmatpush3.bf16.msra.mxu1 %v7048_v14 }
 0x5bf   :  { %6825 = vmatprep.subr.bf16.mxu0 %v7037_v23  ;;  %6843 = vmatprep.subr.bf16.mxu1 %v7049_v47  ;;  %v5219_v23 = vrot.slane %v9333_v1, %v7952_v33 }
 0x5c2   :  { %6826 = vmatpush3.bf16.msra.mxu0 %v7038_v63  ;;  %6844 = vmatpush3.bf16.msra.mxu1 %v7050_v41  ;;  %v5170_v63 = vrot.slane %v9314_v56, %v7963_v37  ;;  %v6558_v37 = vld [vmem:[%s9617_s6 + $0x2] ss:$0 sm:$0xff]  ;;  %s7062_s6 = smov 96  }
 0x5c3   :  { %6827 = vmatprep.subr.bf16.mxu0 %v7039_v13  ;;  %6845 = vmatprep.subr.bf16.mxu1 %v7051_v12 }
 0x5c6   :  { %6828 = vmatpush3.bf16.msra.mxu0 %v7040_v5  ;;  %6846 = vmatpush3.bf16.msra.mxu1 %v7052_v7 }
 0x5c7   :  { %6847 = vmatprep.subr.bf16.mxu1 %v7053_v42 }
 0x5c9   :  { %v4922_v16 = vpop.f32.mrf.mxu0 }
 0x5ca   :  { %v4923_v29 = vadd.f32 %v4922_v16, %v4882_v35  ;;  %6848 = vmatpush3.bf16.msra.mxu1 %v7054_v43 }
 0x5cb   :  { %v4924_v4 = vpop.f32.mrf.mxu0  ;;  %6849 = vmatprep.subr.bf16.mxu1 %v7055_v48  ;;  %v5934_v48 = vpop.permute.xlu0 %5933 }
 0x5cc   :  { %v4925_v2 = vadd.f32 %v4924_v4, %v4884_v61 }
 0x5cd   :  { %v4926_v62 = vpop.f32.mrf.mxu0 }
 0x5ce   :  { %6850 = vmatpush3.bf16.msra.mxu1 %v7056_v58 }
 0x5cf   :  { %v4927_v28 = vpop.f32.mrf.mxu0  ;;  %v5938_v58 = vpop.permute.xlu0 %5937 }
 0x5d1   :  { %v4963_v26 = vpop.f32.mrf.mxu1 }
 0x5d2   :  { %v4964_v49 = vadd.f32 %v4963_v26, %v4923_v29 }
 0x5d3   :  { %v4965_v44 = vpop.f32.mrf.mxu1 }
 0x5d4   :  { %v5183_v15 = vmul.f32 %v5158_v40, %v4964_v49  ;;  %v4966_v10 = vadd.f32 %v4965_v44, %v4925_v2 }
 0x5d5   :  { %v4967_v36 = vpop.f32.mrf.mxu1 }
 0x5d6   :  { %v5236_v25 = vadd.f32 %v5211_v57, %v5183_v15  ;;  %v5184_v31 = vmul.f32 %v5162_v6, %v4966_v10 }
 0x5d7   :  { %v4968_v20 = vpop.f32.mrf.mxu1 }
 0x5d8   :  { %v5237_v21 = vadd.f32 %v5215_v0, %v5184_v31  ;;  %v5244_v27 = vmax.f32 %v5236_v25, 0.0 }
 0x5da   :  { %v5245_v52 = vmax.f32 %v5237_v21, 0.0  ;;  %v5252_v45 = vpack.c.bf16 %v5244_v27, %v5244_v27 }
 0x5dc   :  { %v5253_v11 = vpack.c.bf16 %v5245_v52, %v5245_v52 }
 0x5de   :  { %5885 = vmatprep.mubr.bf16.mxu0 %v5253_v11  ;;  %v5944_v11 = vsel %vm995_vm4, %v7652_v18, %v5934_v48 }
 0x5df   :  { %5886 = vmatmul.mubr.bf16.vlgmr.msra.gmra.mxu0 %v5252_v45  ;;  %v5946_v45 = vsel %vm5945_vm5, %v5944_v11, %v5938_v58 }
 0x609   :  { %v5004_v46 = vpop.f32.mrf.mxu0 }
 0x60b   :  { %v5006_v24 = vpop.f32.mrf.mxu0 }
 0x60d   :  { %v5008_v8 = vpop.f32.mrf.mxu0 }
 0x60f   :  { %v5009_v17 = vpop.f32.mrf.mxu0 }
 0x611   :  { %v5045_v34 = vpop.f32.mrf.mxu1 }
 0x612   :  { %v5046_v3 = vadd.f32 %v5045_v34, %v5004_v46 }
 0x613   :  { %v5047_v39 = vpop.f32.mrf.mxu1 }
 0x614   :  { %v5048_v53 = vadd.f32 %v5047_v39, %v5006_v24 }
 0x615   :  { %v5049_v50 = vpop.f32.mrf.mxu1 }
 0x617   :  { %v5050_v51 = vpop.f32.mrf.mxu1 }
 0x649   :  { %v5086_v9 = vpop.f32.mrf.mxu0 }
 0x64a   :  { %v5087_v60 = vadd.f32 %v5086_v9, %v5046_v3 }
 0x64b   :  { %v5088_v30 = vpop.f32.mrf.mxu0 }
 0x64c   :  { %v5089_v32 = vadd.f32 %v5088_v30, %v5048_v53 }
 0x64d   :  { %v5090_v55 = vpop.f32.mrf.mxu0 }
 0x64f   :  { %v5091_v22 = vpop.f32.mrf.mxu0 }
 0x651   :  { %v5127_v54 = vpop.f32.mrf.mxu1 }
 0x652   :  { %v5128_v59 = vadd.f32 %v5127_v54, %v5087_v60 }
 0x653   :  { %v5129_v13 = vpop.f32.mrf.mxu1 }
 0x654   :  { %v5185_v5 = vmul.f32 %v5166_v38, %v5128_v59  ;;  %v5130_v16 = vadd.f32 %v5129_v13, %v5089_v32 }
 0x655   :  { %v5131_v4 = vpop.f32.mrf.mxu1 }
 0x656   :  { %v5238_v14 = vadd.f32 %v5219_v23, %v5185_v5  ;;  %v5186_v62 = vmul.f32 %v5170_v63, %v5130_v16 }
 0x657   :  { %v5132_v35 = vpop.f32.mrf.mxu1 }
 0x658   :  { %v5239_v47 = vadd.f32 %v5223_v19, %v5186_v62  ;;  %v5246_v28 = vmax.f32 %v5238_v14, 0.0 }
 0x65a   :  { %v5247_v41 = vmax.f32 %v5239_v47, 0.0  ;;  %v5254_v29 = vpack.c.bf16 %v5246_v28, %v5246_v28 }
 0x65c   :  { %v5255_v61 = vpack.c.bf16 %v5247_v41, %v5247_v41 }
 0x65e   :  { %5925 = vmatprep.mubr.bf16.mxu1 %v5255_v61 }
 0x65f   :  { %5926 = vmatmul.mubr.bf16.vlgmr.msra.gmra.mxu1 %v5254_v29 }
 0x669   :  { %v6785_v33 = vpop.f32.mrf.mxu0 }
 0x66b   :  { %v6786_v40 = vpop.f32.mrf.mxu0 }
 0x66c   :  { %v6787_v56 = vadd.f32 %v6786_v40, %v6785_v33 }
 0x66d   :  { %v6788_v26 = vpop.f32.mrf.mxu0 }
 0x66e   :  { %v5808_v57 = vadd.f32 %v6787_v56, %v6558_v37 }
 0x66f   :  { %v6789_v2 = vpop.f32.mrf.mxu0 }
 0x671   :  { %v6807_v1 = vpop.f32.mrf.mxu1 }
 0x673   :  { %v6808_v49 = vpop.f32.mrf.mxu1 }
 0x674   :  { %v6809_v6 = vadd.f32 %v6808_v49, %v6807_v1 }
 0x675   :  { %v6810_v12 = vpop.f32.mrf.mxu1 }
 0x676   :  { %v5848_v44 = vadd.f32 %v6809_v6, %v5808_v57 }
 0x677   :  { %v6811_v7 = vpop.f32.mrf.mxu1 }
 0x69f   :  { %v6829_v15 = vpop.f32.mrf.mxu0 }
 0x6a1   :  { %v6830_v10 = vpop.f32.mrf.mxu0 }
 0x6a2   :  { %v6831_v0 = vadd.f32 %v6830_v10, %v6829_v15 }
 0x6a3   :  { %v6832_v36 = vpop.f32.mrf.mxu0 }
 0x6a4   :  { %v5888_v25 = vadd.f32 %v6831_v0, %v5848_v44 }
 0x6a5   :  { %v6833_v31 = vpop.f32.mrf.mxu0 }
 0x71f   :  { %v6851_v42 = vpop.f32.mrf.mxu1 }
 0x721   :  { %v6852_v20 = vpop.f32.mrf.mxu1 }
 0x722   :  { %v6853_v43 = vadd.f32 %v6852_v20, %v6851_v42 }
 0x723   :  { %v6854_v21 = vpop.f32.mrf.mxu1 }
 0x724   :  { %v5928_v27 = vadd.f32 %v6853_v43, %v5888_v25 }
 0x725   :  { %v6855_v52 = vpop.f32.mrf.mxu1 }
 0x726   :  { %5941 = vrot.lane.b32.xlu1 %v5928_v27, %s7062_s6 }
 0x798   :  { %v5942_v46 = vpop.permute.xlu1 %5941 }
 0x799   :  { %v5948_v24 = vsel %vm5947_vm6, %v5946_v45, %v5942_v46 }
 0x79a   :  { %5949 = vst [vmem:[%s9620_s11] sm:$0xff] %v5948_v24 }

</bundles_post_ra>
